<compile_context>
chip_gen: v7x
topology: tpu7x:2x2x1
jax: 0.10.0
libtpu: 0.0.40
codegen_flags: <defaults>
</compile_context>

<pallas_src>
import numpy as np
import jax
import jax.numpy as jnp
from jax import lax
from jax.experimental import pallas as pl
from jax.experimental.pallas import tpu as pltpu

# ----------------------------- configuration --------------------------------
WINDOW_SIZE = 4
H = W = 8                       # input_resolution (divisible by window_size)
DIM = 32
NUM_HEADS = 4                   # DIM % NUM_HEADS == 0
MLP_RATIO = 4
BATCH = 2

SHIFT = WINDOW_SIZE // 2
N_TOK = WINDOW_SIZE * WINDOW_SIZE                 # tokens per window (16)
HEAD_DIM = DIM // NUM_HEADS                       # 8
SCALE = HEAD_DIM ** (-0.5)
HIDDEN = DIM * MLP_RATIO                          # 128
NW = (H // WINDOW_SIZE) * (W // WINDOW_SIZE)      # windows per image (4)
TOK = BATCH * H * W                               # all tokens in the batch (128)
LN_EPS = 1e-5
NEG_INF = np.float32(-1e9)


# -------------------- static buffers (mask, relative index) -----------------
def _window_partition_np(x, ws):
    # 'b (hNum w1) (wNum w2) c -> (hNum wNum b) w1 w2 c'  (reference ordering)
    B, Hh, Ww, C = x.shape
    hn, wn = Hh // ws, Ww // ws
    x = x.reshape(B, hn, ws, wn, ws, C)
    x = x.transpose(1, 3, 0, 2, 4, 5)
    return x.reshape(hn * wn * B, ws, ws, C)


def build_attn_mask():
    img_mask = np.zeros((1, H, W, 1), dtype=np.float32)
    slices = (slice(0, -WINDOW_SIZE), slice(-WINDOW_SIZE, -SHIFT), slice(-SHIFT, None))
    cnt = 0
    for hs in slices:
        for wsl in slices:
            img_mask[:, hs, wsl, :] = cnt
            cnt += 1
    mask_windows = _window_partition_np(img_mask, WINDOW_SIZE).reshape(-1, N_TOK)
    attn_mask = mask_windows[:, None, :] - mask_windows[:, :, None]
    return np.where(attn_mask != 0, -100.0, 0.0).astype(np.float32)      # (NW, N, N)


def build_relative_position_index():
    coords = np.stack(np.meshgrid(np.arange(WINDOW_SIZE), np.arange(WINDOW_SIZE),
                                  indexing="ij"))
    cf = coords.reshape(2, -1)
    rel = cf[:, :, None] - cf[:, None, :]
    rel = rel.transpose(1, 2, 0).copy()
    rel[:, :, 0] += WINDOW_SIZE - 1
    rel[:, :, 1] += WINDOW_SIZE - 1
    rel[:, :, 0] *= 2 * WINDOW_SIZE - 1
    return rel.sum(-1).astype(np.int32)                                  # (N, N)


def build_permutations():
    """Static (TOK, TOK) one-hot matrices folding roll+window_partition (fwd) and
    window_reverse (rev), reproducing the reference einops orderings exactly
    (including the window-major vs batch-major mismatch for BATCH > 1)."""
    ws, wn_num = WINDOW_SIZE, W // WINDOW_SIZE

    # forward:  xw_flat[g] = x_flat[src]   with flat window index '(hNum wNum b)'
    p_fwd = np.zeros((TOK, TOK), dtype=np.float32)
    for g in range(TOK):
        f, t = divmod(g, N_TOK)
        w1, w2 = divmod(t, ws)
        hw, b = divmod(f, BATCH)                 # window-major, batch-minor
        hn, wn = divmod(hw, wn_num)
        ho = (hn * ws + w1 + SHIFT) % H          # torch.roll(shifts=(-SHIFT,-SHIFT))
        wo = (wn * ws + w2 + SHIFT) % W
        p_fwd[g, b * (H * W) + ho * W + wo] = 1.0

    # reverse:  ar_flat[r] = aw_flat[g]    window_reverse reads '(b hNum wNum)';
    # NB: the reference does NOT roll back after window_reverse.
    p_rev = np.zeros((TOK, TOK), dtype=np.float32)
    for r in range(TOK):
        b, hw_idx = divmod(r, H * W)
        hh, ww = divmod(hw_idx, W)
        hn, w1 = divmod(hh, ws)
        wn, w2 = divmod(ww, ws)
        g = (b * NW + hn * wn_num + wn) * N_TOK + w1 * ws + w2
        p_rev[r, g] = 1.0
    return p_fwd, p_rev


def build_block_bias(rel_table, attn_mask_np, rel_idx_np):
    """(NUM_HEADS, TOK, TOK) block-diagonal bias: each window's diagonal block =
    relative-position bias + shift mask; everything else -1e9.  Lets all heads' /
    all windows' attention run through one vectorised masked softmax."""
    rel_bias = rel_table[rel_idx_np.reshape(-1)]
    rel_bias = rel_bias.reshape(N_TOK, N_TOK, NUM_HEADS).transpose(2, 0, 1)  # (heads,N,N)
    mask = jnp.asarray(attn_mask_np)                                          # (NW,N,N)
    big = jnp.full((NUM_HEADS, TOK, TOK), NEG_INF, dtype=jnp.float32)
    for f in range(TOK // N_TOK):
        # mask index == flat_window % NW : reproduces the reference's .view()
        # arithmetic in WindowAttention.forward verbatim.
        blk = rel_bias + mask[f % NW][None]
        s = f * N_TOK
        big = big.at[:, s:s + N_TOK, s:s + N_TOK].set(blk)
    return big


def prepare_fused_params(params, attn_mask_np, rel_idx_np):
    """One-time parameter folding: qk scale into W_qkv, rel-bias+mask into one
    head-major (NUM_HEADS*TOK, TOK) tensor, weights pre-transposed for the
    feature-major kernel, biases shaped (features, 1) for lane-broadcast."""
    p_fwd, p_rev = build_permutations()
    w_qkv = params["w_qkv"]                              # (C, 3C), used as x @ w_qkv
    # qkv_bias=False in ShiftWMSA -> no qkv bias; fold qk scale into Q columns.
    w_qkv = jnp.concatenate([w_qkv[:, :DIM] * np.float32(SCALE), w_qkv[:, DIM:]], axis=1)
    bias = build_block_bias(params["rel_table"], attn_mask_np, rel_idx_np)
    return dict(
        p_fwd_t=jnp.asarray(np.ascontiguousarray(p_fwd.T)),          # (TOK, TOK)
        p_rev_t=jnp.asarray(np.ascontiguousarray(p_rev.T)),          # (TOK, TOK)
        bias=bias.reshape(NUM_HEADS * TOK, TOK),                     # (512, 128)
        w_qkv_t=jnp.transpose(w_qkv),                                # (3C, C)
        w_proj_t=jnp.transpose(params["w_proj"]),                    # (C, C)
        b_proj_t=params["b_proj"].reshape(DIM, 1),
        gamma_t=params["ln_gamma"].reshape(DIM, 1),
        beta_t=params["ln_beta"].reshape(DIM, 1),
        w1_t=jnp.transpose(params["w1"]),                            # (HIDDEN, C)
        b1_t=params["b1"].reshape(HIDDEN, 1),
        w2_t=jnp.transpose(params["w2"]),                            # (C, HIDDEN)
        b2_t=params["b2"].reshape(DIM, 1),
    )


# ------------------------------- kernel --------------------------------------
def _gelu_tanh(x):
    # TODO(synk): nn.GELU() default is the exact erf GELU; tanh approximation is
    # used here (~1e-3 max deviation) since erf has no guaranteed Mosaic lowering.
    c0 = np.float32(0.7978845608028654)       # sqrt(2/pi)
    c1 = np.float32(0.044715)
    return np.float32(0.5) * x * (np.float32(1.0) + jnp.tanh(c0 * (x + c1 * x * x * x)))


def _fused_kernel(xt_ref, pfwdt_ref, prevt_ref, bias_ref, wqkvt_ref, wprojt_ref,
                  bprojt_ref, gammat_ref, betat_ref, w1t_ref, b1t_ref, w2t_ref,
                  b2t_ref, ot_ref):
    # Everything inside is feature-major: (features, TOK) with TOK = 128 lanes.
    x_t = xt_ref[...]                                                  # (C, TOK)

    # roll + window_partition folded into a permutation matmul (K = 128, full MXU)
    xw_t = jnp.dot(x_t, pfwdt_ref[...], preferred_element_type=jnp.float32)

    # one qkv matmul for every window/token, emitted feature-major so each head's
    # q/k/v slice is a whole (8,128) native tile (free view, no relayout).
    qkv_t = jnp.dot(wqkvt_ref[...], xw_t,
                    preferred_element_type=jnp.float32)                # (3C, TOK)

    # per-head scores q_h^T @ k_h on single-tile operands (4 tiny MXU calls);
    # a batched 3-D dot here would contract over the sublane axis and force a
    # Mosaic relayout, so only the softmax / PV / projection are head-batched.
    scores = []
    for h in range(NUM_HEADS):
        lo = h * HEAD_DIM
        q_h = qkv_t[lo:lo + HEAD_DIM, :]                               # (HD, TOK)
        k_h = qkv_t[DIM + lo:DIM + lo + HEAD_DIM, :]                   # (HD, TOK)
        scores.append(jnp.dot(q_h.T, k_h, preferred_element_type=jnp.float32))
    s = jnp.concatenate(scores, axis=0)                  # (NUM_HEADS*TOK, TOK)

    # single bias add + ONE vectorised softmax over all heads & windows
    # (block-diagonal bias already holds rel-pos bias + shift mask, -1e9 off-window)
    s = s + bias_ref[...]
    s = s - jnp.max(s, axis=-1, keepdims=True)
    p = jnp.exp(s)
    p = p * pl.reciprocal(jnp.sum(p, axis=-1, keepdims=True), approx=True)

    # head-batched P @ V (contract-last / batch-first einsum, feature-major output),
    # then ONE output projection matmul for all heads.
    p3 = p.reshape(NUM_HEADS, TOK, TOK)
    v3 = qkv_t[2 * DIM:3 * DIM, :].reshape(NUM_HEADS, HEAD_DIM, TOK)
    attn_t = jnp.einsum('hdu,htu->hdt', v3, p3,
                        preferred_element_type=jnp.float32)            # (NH, HD, TOK)
    attn_t = attn_t.reshape(DIM, TOK)                                  # head-major C
    proj_t = jnp.dot(wprojt_ref[...], attn_t,
                     preferred_element_type=jnp.float32) + bprojt_ref[...]

    # window_reverse back to original token order (permutation matmul) + residual
    y1_t = x_t + jnp.dot(proj_t, prevt_ref[...], preferred_element_type=jnp.float32)

    # LayerNorm over channels (sublane axis); rsqrt on the EUP
    mu = jnp.mean(y1_t, axis=0, keepdims=True)                         # (1, TOK)
    xc = y1_t - mu
    var = jnp.mean(xc * xc, axis=0, keepdims=True)
    xn = xc * lax.rsqrt(var + np.float32(LN_EPS))
    xn = xn * gammat_ref[...] + betat_ref[...]

    # MLP: fc1 -> GELU(tanh) -> fc2, + residual   (drop / drop_path are identity)
    hid = jnp.dot(w1t_ref[...], xn, preferred_element_type=jnp.float32) + b1t_ref[...]
    hid = _gelu_tanh(hid)
    y2_t = jnp.dot(w2t_ref[...], hid, preferred_element_type=jnp.float32) + b2t_ref[...]

    # (C, TOK) store: 128-lane dense -> full unmasked vector stores
    ot_ref[...] = y1_t + y2_t


# ------------------------------ full forward ----------------------------------
def shift_wmsa_forward(x, fused):
    # x: (B, H*W, C)
    B, L, C = x.shape
    assert B * L == TOK and C == DIM
    # wrapper-side layout plumbing: present a feature-major (C, TOK) slab so all
    # in-kernel tensors are lane-dense (tokens = 128 lanes).
    x_t = x.reshape(TOK, C).T                                          # (C, TOK)

    out_t = pl.pallas_call(
        _fused_kernel,
        out_shape=jax.ShapeDtypeStruct((DIM, TOK), jnp.float32),
        grid=(1,),
        in_specs=[
            pl.BlockSpec((DIM, TOK), lambda i: (0, 0)),                  # x^T
            pl.BlockSpec((TOK, TOK), lambda i: (0, 0)),                  # P_fwd^T
            pl.BlockSpec((TOK, TOK), lambda i: (0, 0)),                  # P_rev^T
            pl.BlockSpec((NUM_HEADS * TOK, TOK), lambda i: (0, 0)),      # block bias
            pl.BlockSpec((3 * DIM, DIM), lambda i: (0, 0)),              # W_qkv^T (scaled)
            pl.BlockSpec((DIM, DIM), lambda i: (0, 0)),                  # W_proj^T
            pl.BlockSpec((DIM, 1), lambda i: (0, 0)),                    # b_proj
            pl.BlockSpec((DIM, 1), lambda i: (0, 0)),                    # ln gamma
            pl.BlockSpec((DIM, 1), lambda i: (0, 0)),                    # ln beta
            pl.BlockSpec((HIDDEN, DIM), lambda i: (0, 0)),               # W1^T
            pl.BlockSpec((HIDDEN, 1), lambda i: (0, 0)),                 # b1
            pl.BlockSpec((DIM, HIDDEN), lambda i: (0, 0)),               # W2^T
            pl.BlockSpec((DIM, 1), lambda i: (0, 0)),                    # b2
        ],
        out_specs=pl.BlockSpec((DIM, TOK), lambda i: (0, 0)),
        compiler_params=pltpu.CompilerParams(dimension_semantics=("arbitrary",)),
    )(x_t, fused["p_fwd_t"], fused["p_rev_t"], fused["bias"], fused["w_qkv_t"],
      fused["w_proj_t"], fused["b_proj_t"], fused["gamma_t"], fused["beta_t"],
      fused["w1_t"], fused["b1_t"], fused["w2_t"], fused["b2_t"])

    return out_t.T.reshape(B, L, C)


# --------------------------------- main ----------------------------------------
if __name__ == "__main__":
    key = jax.random.PRNGKey(0)
    keys = jax.random.split(key, 10)

    x = jax.random.normal(keys[0], (BATCH, H * W, DIM), dtype=jnp.float32)

    params = {
        # qkv_bias=False in ShiftWMSA -> no qkv bias
        "w_qkv": 0.1 * jax.random.normal(keys[1], (DIM, 3 * DIM), dtype=jnp.float32),
        "rel_table": 0.02 * jax.random.normal(
            keys[2], ((2 * WINDOW_SIZE - 1) ** 2, NUM_HEADS), dtype=jnp.float32),
        "w_proj": 0.1 * jax.random.normal(keys[3], (DIM, DIM), dtype=jnp.float32),
        "b_proj": 0.1 * jax.random.normal(keys[4], (1, DIM), dtype=jnp.float32),
        "ln_gamma": jnp.ones((1, DIM), dtype=jnp.float32),   # PyTorch LayerNorm default
        "ln_beta": jnp.zeros((1, DIM), dtype=jnp.float32),
        "w1": 0.1 * jax.random.normal(keys[5], (DIM, HIDDEN), dtype=jnp.float32),
        "b1": 0.1 * jax.random.normal(keys[6], (1, HIDDEN), dtype=jnp.float32),
        "w2": 0.1 * jax.random.normal(keys[7], (HIDDEN, DIM), dtype=jnp.float32),
        "b2": 0.1 * jax.random.normal(keys[8], (1, DIM), dtype=jnp.float32),
    }

    attn_mask_np = build_attn_mask()               # (NW, N, N)
    rel_idx_np = build_relative_position_index()   # (N, N)
    fused = prepare_fused_params(params, attn_mask_np, rel_idx_np)

    out = shift_wmsa_forward(x, fused)
    out = jax.block_until_ready(out)
    assert out.shape == (BATCH, H * W, DIM)
    assert bool(jnp.all(jnp.isfinite(out)))
    print("KERNEL_OK")
</pallas_src>

<mosaic_0001>
module attributes {stable_mosaic.version = 11 : i64} {
  func.func @_fused_kernel(%arg0: i32, %arg1: memref<32x128xf32, #tpu.memory_space<vmem>>, %arg2: memref<128x128xf32, #tpu.memory_space<vmem>>, %arg3: memref<128x128xf32, #tpu.memory_space<vmem>>, %arg4: memref<512x128xf32, #tpu.memory_space<vmem>>, %arg5: memref<96x32xf32, #tpu.memory_space<vmem>>, %arg6: memref<32x32xf32, #tpu.memory_space<vmem>>, %arg7: memref<32x1xf32, #tpu.memory_space<vmem>>, %arg8: memref<32x1xf32, #tpu.memory_space<vmem>>, %arg9: memref<32x1xf32, #tpu.memory_space<vmem>>, %arg10: memref<128x32xf32, #tpu.memory_space<vmem>>, %arg11: memref<128x1xf32, #tpu.memory_space<vmem>>, %arg12: memref<32x128xf32, #tpu.memory_space<vmem>>, %arg13: memref<32x1xf32, #tpu.memory_space<vmem>>, %arg14: memref<32x128xf32, #tpu.memory_space<vmem>>) attributes {dimension_semantics = [#tpu.dimension_semantics<arbitrary>], iteration_bounds = array<i64: 1>, scalar_prefetch = 0 : i64, scratch_operands = 0 : i64, tpu.core_type = #tpu.core_type<tc>, window_params = [{pipeline_mode = #tpu.pipeline_mode<synchronous>, transform_indices = @transform_0, window_bounds = array<i64: 32, 128>}, {pipeline_mode = #tpu.pipeline_mode<synchronous>, transform_indices = @transform_1, window_bounds = array<i64: 128, 128>}, {pipeline_mode = #tpu.pipeline_mode<synchronous>, transform_indices = @transform_2, window_bounds = array<i64: 128, 128>}, {pipeline_mode = #tpu.pipeline_mode<synchronous>, transform_indices = @transform_3, window_bounds = array<i64: 512, 128>}, {pipeline_mode = #tpu.pipeline_mode<synchronous>, transform_indices = @transform_4, window_bounds = array<i64: 96, 32>}, {pipeline_mode = #tpu.pipeline_mode<synchronous>, transform_indices = @transform_5, window_bounds = array<i64: 32, 32>}, {pipeline_mode = #tpu.pipeline_mode<synchronous>, transform_indices = @transform_6, window_bounds = array<i64: 32, 1>}, {pipeline_mode = #tpu.pipeline_mode<synchronous>, transform_indices = @transform_7, window_bounds = array<i64: 32, 1>}, {pipeline_mode = #tpu.pipeline_mode<synchronous>, transform_indices = @transform_8, window_bounds = array<i64: 32, 1>}, {pipeline_mode = #tpu.pipeline_mode<synchronous>, transform_indices = @transform_9, window_bounds = array<i64: 128, 32>}, {pipeline_mode = #tpu.pipeline_mode<synchronous>, transform_indices = @transform_10, window_bounds = array<i64: 128, 1>}, {pipeline_mode = #tpu.pipeline_mode<synchronous>, transform_indices = @transform_11, window_bounds = array<i64: 32, 128>}, {pipeline_mode = #tpu.pipeline_mode<synchronous>, transform_indices = @transform_12, window_bounds = array<i64: 32, 1>}, {pipeline_mode = #tpu.pipeline_mode<synchronous>, transform_indices = @transform_13, window_bounds = array<i64: 32, 128>}]} {
    %c0 = arith.constant 0 : index
    %c0_0 = arith.constant 0 : index
    %0 = vector.load %arg1[%c0, %c0_0] : memref<32x128xf32, #tpu.memory_space<vmem>>, vector<32x128xf32>
    %c0_1 = arith.constant 0 : index
    %c0_2 = arith.constant 0 : index
    %1 = vector.load %arg2[%c0_1, %c0_2] : memref<128x128xf32, #tpu.memory_space<vmem>>, vector<128x128xf32>
    %cst = arith.constant dense<0.000000e+00> : vector<32x128xf32>
    %2 = tpu.matmul %0, %1, %cst {dimension_numbers = #tpu.dot_dimension_numbers<[1], [0], [0], [1], [0, 0, 1, 1], [], []>} : vector<32x128xf32>, vector<128x128xf32>, vector<32x128xf32> -> vector<32x128xf32>
    %c0_3 = arith.constant 0 : index
    %c0_4 = arith.constant 0 : index
    %3 = vector.load %arg5[%c0_3, %c0_4] : memref<96x32xf32, #tpu.memory_space<vmem>>, vector<96x32xf32>
    %cst_5 = arith.constant dense<0.000000e+00> : vector<96x128xf32>
    %4 = tpu.matmul %3, %2, %cst_5 {dimension_numbers = #tpu.dot_dimension_numbers<[1], [0], [0], [1], [0, 0, 1, 1], [], []>} : vector<96x32xf32>, vector<32x128xf32>, vector<96x128xf32> -> vector<96x128xf32>
    %5 = vector.extract_strided_slice %4 {offsets = [0, 0], sizes = [8, 128], strides = [1, 1]} : vector<96x128xf32> to vector<8x128xf32>
    %6 = vector.extract_strided_slice %4 {offsets = [32, 0], sizes = [8, 128], strides = [1, 1]} : vector<96x128xf32> to vector<8x128xf32>
    %7 = tpu.transpose %5, [1, 0] : vector<8x128xf32> -> vector<128x8xf32>
    %cst_6 = arith.constant dense<0.000000e+00> : vector<128x128xf32>
    %8 = tpu.matmul %7, %6, %cst_6 {dimension_numbers = #tpu.dot_dimension_numbers<[1], [0], [0], [1], [0, 0, 1, 1], [], []>} : vector<128x8xf32>, vector<8x128xf32>, vector<128x128xf32> -> vector<128x128xf32>
    %9 = vector.extract_strided_slice %4 {offsets = [8, 0], sizes = [8, 128], strides = [1, 1]} : vector<96x128xf32> to vector<8x128xf32>
    %10 = vector.extract_strided_slice %4 {offsets = [40, 0], sizes = [8, 128], strides = [1, 1]} : vector<96x128xf32> to vector<8x128xf32>
    %11 = tpu.transpose %9, [1, 0] : vector<8x128xf32> -> vector<128x8xf32>
    %cst_7 = arith.constant dense<0.000000e+00> : vector<128x128xf32>
    %12 = tpu.matmul %11, %10, %cst_7 {dimension_numbers = #tpu.dot_dimension_numbers<[1], [0], [0], [1], [0, 0, 1, 1], [], []>} : vector<128x8xf32>, vector<8x128xf32>, vector<128x128xf32> -> vector<128x128xf32>
    %13 = vector.extract_strided_slice %4 {offsets = [16, 0], sizes = [8, 128], strides = [1, 1]} : vector<96x128xf32> to vector<8x128xf32>
    %14 = vector.extract_strided_slice %4 {offsets = [48, 0], sizes = [8, 128], strides = [1, 1]} : vector<96x128xf32> to vector<8x128xf32>
    %15 = tpu.transpose %13, [1, 0] : vector<8x128xf32> -> vector<128x8xf32>
    %cst_8 = arith.constant dense<0.000000e+00> : vector<128x128xf32>
    %16 = tpu.matmul %15, %14, %cst_8 {dimension_numbers = #tpu.dot_dimension_numbers<[1], [0], [0], [1], [0, 0, 1, 1], [], []>} : vector<128x8xf32>, vector<8x128xf32>, vector<128x128xf32> -> vector<128x128xf32>
    %17 = vector.extract_strided_slice %4 {offsets = [24, 0], sizes = [8, 128], strides = [1, 1]} : vector<96x128xf32> to vector<8x128xf32>
    %18 = vector.extract_strided_slice %4 {offsets = [56, 0], sizes = [8, 128], strides = [1, 1]} : vector<96x128xf32> to vector<8x128xf32>
    %19 = tpu.transpose %17, [1, 0] : vector<8x128xf32> -> vector<128x8xf32>
    %cst_9 = arith.constant dense<0.000000e+00> : vector<128x128xf32>
    %20 = tpu.matmul %19, %18, %cst_9 {dimension_numbers = #tpu.dot_dimension_numbers<[1], [0], [0], [1], [0, 0, 1, 1], [], []>} : vector<128x8xf32>, vector<8x128xf32>, vector<128x128xf32> -> vector<128x128xf32>
    %21 = tpu.concatenate %8, %12, %16, %20 in 0 : vector<128x128xf32>, vector<128x128xf32>, vector<128x128xf32>, vector<128x128xf32> -> vector<512x128xf32>
    %c0_10 = arith.constant 0 : index
    %c0_11 = arith.constant 0 : index
    %22 = vector.load %arg4[%c0_10, %c0_11] : memref<512x128xf32, #tpu.memory_space<vmem>>, vector<512x128xf32>
    %23 = arith.addf %21, %22 : vector<512x128xf32>
    %cst_12 = arith.constant dense<0xFF800000> : vector<512xf32>
    %24 = vector.multi_reduction <maximumf>, %23, %cst_12 [1] : vector<512x128xf32> to vector<512xf32>
    %25 = vector.shape_cast %24 : vector<512xf32> to vector<512x1xf32>
    %26 = vector.broadcast %25 : vector<512x1xf32> to vector<512x128xf32>
    %27 = arith.subf %23, %26 : vector<512x128xf32>
    %28 = math.exp %27 : vector<512x128xf32>
    %cst_13 = arith.constant dense<0.000000e+00> : vector<512xf32>
    %29 = vector.multi_reduction <add>, %28, %cst_13 [1] : vector<512x128xf32> to vector<512xf32>
    %30 = vector.shape_cast %29 : vector<512xf32> to vector<512x1xf32>
    %31 = tpu.reciprocal %30 {approx = true} : vector<512x1xf32> -> vector<512x1xf32>
    %32 = vector.broadcast %31 : vector<512x1xf32> to vector<512x128xf32>
    %33 = arith.mulf %28, %32 : vector<512x128xf32>
    %34 = vector.shape_cast %33 : vector<512x128xf32> to vector<4x128x128xf32>
    %35 = vector.extract_strided_slice %4 {offsets = [64, 0], sizes = [32, 128], strides = [1, 1]} : vector<96x128xf32> to vector<32x128xf32>
    %36 = vector.shape_cast %35 : vector<32x128xf32> to vector<4x8x128xf32>
    "tpu.trace_start"() <{level = 10 : i32, message = "hdu,htu->hdt"}> : () -> ()
    %cst_14 = arith.constant dense<0.000000e+00> : vector<4x8x128xf32>
    %37 = tpu.matmul %36, %34, %cst_14 {dimension_numbers = #tpu.dot_dimension_numbers<[2], [2], [1], [1], [0, 0, 0, 1, 1, 1], [0], [0]>} : vector<4x8x128xf32>, vector<4x128x128xf32>, vector<4x8x128xf32> -> vector<4x8x128xf32>
    "tpu.trace_stop"() : () -> ()
    %38 = vector.shape_cast %37 : vector<4x8x128xf32> to vector<32x128xf32>
    %c0_15 = arith.constant 0 : index
    %c0_16 = arith.constant 0 : index
    %39 = vector.load %arg6[%c0_15, %c0_16] : memref<32x32xf32, #tpu.memory_space<vmem>>, vector<32x32xf32>
    %cst_17 = arith.constant dense<0.000000e+00> : vector<32x128xf32>
    %40 = tpu.matmul %39, %38, %cst_17 {dimension_numbers = #tpu.dot_dimension_numbers<[1], [0], [0], [1], [0, 0, 1, 1], [], []>} : vector<32x32xf32>, vector<32x128xf32>, vector<32x128xf32> -> vector<32x128xf32>
    %c0_18 = arith.constant 0 : index
    %c0_19 = arith.constant 0 : index
    %41 = vector.load %arg7[%c0_18, %c0_19] : memref<32x1xf32, #tpu.memory_space<vmem>>, vector<32x1xf32>
    %42 = vector.broadcast %41 : vector<32x1xf32> to vector<32x128xf32>
    %43 = arith.addf %40, %42 : vector<32x128xf32>
    %c0_20 = arith.constant 0 : index
    %c0_21 = arith.constant 0 : index
    %44 = vector.load %arg3[%c0_20, %c0_21] : memref<128x128xf32, #tpu.memory_space<vmem>>, vector<128x128xf32>
    %cst_22 = arith.constant dense<0.000000e+00> : vector<32x128xf32>
    %45 = tpu.matmul %43, %44, %cst_22 {dimension_numbers = #tpu.dot_dimension_numbers<[1], [0], [0], [1], [0, 0, 1, 1], [], []>} : vector<32x128xf32>, vector<128x128xf32>, vector<32x128xf32> -> vector<32x128xf32>
    %46 = arith.addf %0, %45 : vector<32x128xf32>
    %cst_23 = arith.constant dense<0.000000e+00> : vector<128xf32>
    %47 = vector.multi_reduction <add>, %46, %cst_23 [0] : vector<32x128xf32> to vector<128xf32>
    %48 = vector.shape_cast %47 : vector<128xf32> to vector<1x128xf32>
    %cst_24 = arith.constant 3.200000e+01 : f32
    %49 = vector.broadcast %cst_24 : f32 to vector<1x128xf32>
    %50 = arith.divf %48, %49 : vector<1x128xf32>
    %51 = vector.broadcast %50 : vector<1x128xf32> to vector<32x128xf32>
    %52 = arith.subf %46, %51 : vector<32x128xf32>
    %53 = arith.mulf %52, %52 : vector<32x128xf32>
    %cst_25 = arith.constant dense<0.000000e+00> : vector<128xf32>
    %54 = vector.multi_reduction <add>, %53, %cst_25 [0] : vector<32x128xf32> to vector<128xf32>
    %55 = vector.shape_cast %54 : vector<128xf32> to vector<1x128xf32>
    %cst_26 = arith.constant 3.200000e+01 : f32
    %56 = vector.broadcast %cst_26 : f32 to vector<1x128xf32>
    %57 = arith.divf %55, %56 : vector<1x128xf32>
    %cst_27 = arith.constant 9.99999974E-6 : f32
    %58 = vector.broadcast %cst_27 : f32 to vector<1x128xf32>
    %59 = arith.addf %57, %58 : vector<1x128xf32>
    %60 = math.rsqrt %59 : vector<1x128xf32>
    %61 = vector.broadcast %60 : vector<1x128xf32> to vector<32x128xf32>
    %62 = arith.mulf %52, %61 : vector<32x128xf32>
    %c0_28 = arith.constant 0 : index
    %c0_29 = arith.constant 0 : index
    %63 = vector.load %arg8[%c0_28, %c0_29] : memref<32x1xf32, #tpu.memory_space<vmem>>, vector<32x1xf32>
    %64 = vector.broadcast %63 : vector<32x1xf32> to vector<32x128xf32>
    %65 = arith.mulf %62, %64 : vector<32x128xf32>
    %c0_30 = arith.constant 0 : index
    %c0_31 = arith.constant 0 : index
    %66 = vector.load %arg9[%c0_30, %c0_31] : memref<32x1xf32, #tpu.memory_space<vmem>>, vector<32x1xf32>
    %67 = vector.broadcast %66 : vector<32x1xf32> to vector<32x128xf32>
    %68 = arith.addf %65, %67 : vector<32x128xf32>
    %c0_32 = arith.constant 0 : index
    %c0_33 = arith.constant 0 : index
    %69 = vector.load %arg10[%c0_32, %c0_33] : memref<128x32xf32, #tpu.memory_space<vmem>>, vector<128x32xf32>
    %cst_34 = arith.constant dense<0.000000e+00> : vector<128x128xf32>
    %70 = tpu.matmul %69, %68, %cst_34 {dimension_numbers = #tpu.dot_dimension_numbers<[1], [0], [0], [1], [0, 0, 1, 1], [], []>} : vector<128x32xf32>, vector<32x128xf32>, vector<128x128xf32> -> vector<128x128xf32>
    %c0_35 = arith.constant 0 : index
    %c0_36 = arith.constant 0 : index
    %71 = vector.load %arg11[%c0_35, %c0_36] : memref<128x1xf32, #tpu.memory_space<vmem>>, vector<128x1xf32>
    %72 = vector.broadcast %71 : vector<128x1xf32> to vector<128x128xf32>
    %73 = arith.addf %70, %72 : vector<128x128xf32>
    %cst_37 = arith.constant 5.000000e-01 : f32
    %74 = vector.broadcast %cst_37 : f32 to vector<128x128xf32>
    %75 = arith.mulf %74, %73 : vector<128x128xf32>
    %cst_38 = arith.constant 4.471500e-02 : f32
    %76 = vector.broadcast %cst_38 : f32 to vector<128x128xf32>
    %77 = arith.mulf %76, %73 : vector<128x128xf32>
    %78 = arith.mulf %77, %73 : vector<128x128xf32>
    %79 = arith.mulf %78, %73 : vector<128x128xf32>
    %80 = arith.addf %73, %79 : vector<128x128xf32>
    %cst_39 = arith.constant 0.797884583 : f32
    %81 = vector.broadcast %cst_39 : f32 to vector<128x128xf32>
    %82 = arith.mulf %81, %80 : vector<128x128xf32>
    %83 = math.tanh %82 : vector<128x128xf32>
    %cst_40 = arith.constant 1.000000e+00 : f32
    %84 = vector.broadcast %cst_40 : f32 to vector<128x128xf32>
    %85 = arith.addf %84, %83 : vector<128x128xf32>
    %86 = arith.mulf %75, %85 : vector<128x128xf32>
    %c0_41 = arith.constant 0 : index
    %c0_42 = arith.constant 0 : index
    %87 = vector.load %arg12[%c0_41, %c0_42] : memref<32x128xf32, #tpu.memory_space<vmem>>, vector<32x128xf32>
    %cst_43 = arith.constant dense<0.000000e+00> : vector<32x128xf32>
    %88 = tpu.matmul %87, %86, %cst_43 {dimension_numbers = #tpu.dot_dimension_numbers<[1], [0], [0], [1], [0, 0, 1, 1], [], []>} : vector<32x128xf32>, vector<128x128xf32>, vector<32x128xf32> -> vector<32x128xf32>
    %c0_44 = arith.constant 0 : index
    %c0_45 = arith.constant 0 : index
    %89 = vector.load %arg13[%c0_44, %c0_45] : memref<32x1xf32, #tpu.memory_space<vmem>>, vector<32x1xf32>
    %90 = vector.broadcast %89 : vector<32x1xf32> to vector<32x128xf32>
    %91 = arith.addf %88, %90 : vector<32x128xf32>
    %92 = arith.addf %46, %91 : vector<32x128xf32>
    %c0_46 = arith.constant 0 : index
    %c0_47 = arith.constant 0 : index
    %93 = vector.load %arg14[%c0_46, %c0_47] : memref<32x128xf32, #tpu.memory_space<vmem>>, vector<32x128xf32>
    tpu.vector_store %arg14[%c0_46, %c0_47], %92 {strides = array<i32>} : memref<32x128xf32, #tpu.memory_space<vmem>>, vector<32x128xf32>,
    return
  }
  func.func @transform_0(%arg0: i32) -> (i32, i32) {
    %c0_i32 = arith.constant 0 : i32
    %c0_i32_0 = arith.constant 0 : i32
    %c0_i32_1 = arith.constant 0 : i32
    return %c0_i32, %c0_i32_0 : i32, i32
  }
  func.func @transform_1(%arg0: i32) -> (i32, i32) {
    %c0_i32 = arith.constant 0 : i32
    %c0_i32_0 = arith.constant 0 : i32
    %c0_i32_1 = arith.constant 0 : i32
    return %c0_i32, %c0_i32_0 : i32, i32
  }
  func.func @transform_2(%arg0: i32) -> (i32, i32) {
    %c0_i32 = arith.constant 0 : i32
    %c0_i32_0 = arith.constant 0 : i32
    %c0_i32_1 = arith.constant 0 : i32
    return %c0_i32, %c0_i32_0 : i32, i32
  }
  func.func @transform_3(%arg0: i32) -> (i32, i32) {
    %c0_i32 = arith.constant 0 : i32
    %c0_i32_0 = arith.constant 0 : i32
    %c0_i32_1 = arith.constant 0 : i32
    return %c0_i32, %c0_i32_0 : i32, i32
  }
  func.func @transform_4(%arg0: i32) -> (i32, i32) {
    %c0_i32 = arith.constant 0 : i32
    %c0_i32_0 = arith.constant 0 : i32
    %c0_i32_1 = arith.constant 0 : i32
    return %c0_i32, %c0_i32_0 : i32, i32
  }
  func.func @transform_5(%arg0: i32) -> (i32, i32) {
    %c0_i32 = arith.constant 0 : i32
    %c0_i32_0 = arith.constant 0 : i32
    %c0_i32_1 = arith.constant 0 : i32
    return %c0_i32, %c0_i32_0 : i32, i32
  }
  func.func @transform_6(%arg0: i32) -> (i32, i32) {
    %c0_i32 = arith.constant 0 : i32
    %c0_i32_0 = arith.constant 0 : i32
    %c0_i32_1 = arith.constant 0 : i32
    return %c0_i32, %c0_i32_0 : i32, i32
  }
  func.func @transform_7(%arg0: i32) -> (i32, i32) {
    %c0_i32 = arith.constant 0 : i32
    %c0_i32_0 = arith.constant 0 : i32
    %c0_i32_1 = arith.constant 0 : i32
    return %c0_i32, %c0_i32_0 : i32, i32
  }
  func.func @transform_8(%arg0: i32) -> (i32, i32) {
    %c0_i32 = arith.constant 0 : i32
    %c0_i32_0 = arith.constant 0 : i32
    %c0_i32_1 = arith.constant 0 : i32
    return %c0_i32, %c0_i32_0 : i32, i32
  }
  func.func @transform_9(%arg0: i32) -> (i32, i32) {
    %c0_i32 = arith.constant 0 : i32
    %c0_i32_0 = arith.constant 0 : i32
    %c0_i32_1 = arith.constant 0 : i32
    return %c0_i32, %c0_i32_0 : i32, i32
  }
  func.func @transform_10(%arg0: i32) -> (i32, i32) {
    %c0_i32 = arith.constant 0 : i32
    %c0_i32_0 = arith.constant 0 : i32
    %c0_i32_1 = arith.constant 0 : i32
    return %c0_i32, %c0_i32_0 : i32, i32
  }
  func.func @transform_11(%arg0: i32) -> (i32, i32) {
    %c0_i32 = arith.constant 0 : i32
    %c0_i32_0 = arith.constant 0 : i32
    %c0_i32_1 = arith.constant 0 : i32
    return %c0_i32, %c0_i32_0 : i32, i32
  }
  func.func @transform_12(%arg0: i32) -> (i32, i32) {
    %c0_i32 = arith.constant 0 : i32
    %c0_i32_0 = arith.constant 0 : i32
    %c0_i32_1 = arith.constant 0 : i32
    return %c0_i32, %c0_i32_0 : i32, i32
  }
  func.func @transform_13(%arg0: i32) -> (i32, i32) {
    %c0_i32 = arith.constant 0 : i32
    %c0_i32_0 = arith.constant 0 : i32
    %c0_i32_1 = arith.constant 0 : i32
    return %c0_i32, %c0_i32_0 : i32, i32
  }
}

</mosaic_0001>

<bundles_post_ra>
// kernel: tpu_custom_call.1
= control target key start
LH: loop header
LB: loop body
LE: loop exit
PB: predicated region body
PF: predicated region fallthrough
CT: control target
= control target key end

     0   :  { %18 = vsyncpa [#allocation3], 0  ;;  %s5988_s0 = inlined_call_operand.hbm [shape: f32[32,128], index: 0, kind: input, shape index: {}]   ;;  %s5989_s1 = inlined_call_operand.hbm [shape: f32[128,128], index: 1, kind: input, shape index: {}]   ;;  %s5990_s2 = inlined_call_operand.hbm [shape: f32[128,128], index: 2, kind: input, shape index: {}]   ;;  %s5991_s3 = inlined_call_operand.vmem [shape: f32[512,128], index: 3, kind: input, shape index: {}]   ;;  %s5992_s4 = inlined_call_operand.vmem [shape: f32[96,32], index: 4, kind: input, shape index: {}]   ;;  %s5993_s5 = inlined_call_operand.hbm [shape: f32[32,32], index: 5, kind: input, shape index: {}]   ;;  %s5994_s6 = inlined_call_operand.vmem [shape: f32[32,1], index: 6, kind: input, shape index: {}]   ;;  %s5995_s7 = inlined_call_operand.vmem [shape: f32[32,1], index: 7, kind: input, shape index: {}]   ;;  %s5996_s8 = inlined_call_operand.vmem [shape: f32[32,1], index: 8, kind: input, shape index: {}]   ;;  %s5997_s9 = inlined_call_operand.vmem [shape: f32[128,32], index: 9, kind: input, shape index: {}]   ;;  %s5998_s10 = inlined_call_operand.vmem [shape: f32[128,1], index: 10, kind: input, shape index: {}]   ;;  %s5999_s11 = inlined_call_operand.vmem [shape: f32[32,128], index: 11, kind: input, shape index: {}]   ;;  %s6000_s12 = inlined_call_operand.vmem [shape: f32[32,1], index: 12, kind: input, shape index: {}]   ;;  %s6001_s13 = inlined_call_operand.hbm [shape: f32[32,128], index: 13, kind: output, shape index: {}]  }
   0x1   :  { %19 = vsyncpa [#allocation6], 0 }
   0x2   :  { %20 = vsyncpa [#allocation9], 0 }
   0x3   :  { %21 = vsyncpa [#allocation4], 0  ;;  %s4585_s25 = smov [#allocation5]   ;;  %s4586_s27 = smov [#allocation2]  }
   0x4   :  { %s39_s26 = sshll.u32 %s4585_s25, 4  ;;  %s27_s28 = sshll.u32 %s4586_s27, 4  ;;  %s40_s26 = int_to_ptr.vmem [resolvable:$true] %s39_s26  ;;  %s4666_s28 = int_to_ptr.vmem [resolvable:$true] %s27_s28 }
   0x5   :  { %s4467_s14 = scalar_lea.hbm %s5989_s1, 2048 }
   0x6   :  { %p4468_p0 = scmp.ne.s32.totalorder %s5989_s1, %s4467_s14  ;;  %p4471_p1 = scmp.lt.u32.totalorder %s4467_s14, %s5989_s1 }
   0x8   :  { %p4473_p2 = pnand %p4471_p1, %p4468_p0 }
   0xa   :  { %4476 = shalt.err (!%p4473_p2)
}
   0xb   :  { %s4477_s19 = scalar_lea.vmem %s40_s26, 2048  ;;  %p4482_p4 = scmp.lt.s32.totalorder %s40_s26, %s40_s26 }
   0xc   :  { %p4478_p3 = scmp.ne.s32.totalorder %s40_s26, %s4477_s19  ;;  %p4483_p5 = scmp.lt.s32.totalorder %s4477_s19, %s4477_s19 }
   0xe   :  { %p4484_p6 = por %p4483_p5, %p4482_p4 }
  0x10   :  { %p4485_p7 = pnand %p4484_p6, %p4478_p3 }
  0x12   :  { %4488 = shalt.err (!%p4485_p7)
}
  0x13   :  { %s4587_s20 = smov 128   ;;  %s4588_s21 = smov 8  }
  0x14   :  { %45 = dma.hbm_to_vmem [thread:$0]  %s5989_s1, 2048, %s40_s26, [#allocation6], %s4587_s20, %s4587_s20, %s4588_s21  }
  0x15   :  { %s4489_s27 = scalar_lea.hbm %s5988_s0, 512 }
  0x16   :  { %p4490_p8 = scmp.ne.s32.totalorder %s5988_s0, %s4489_s27  ;;  %p4493_p9 = scmp.lt.u32.totalorder %s4489_s27, %s5988_s0 }
  0x18   :  { %p4495_p10 = pnand %p4493_p9, %p4490_p8 }
  0x1a   :  { %4498 = shalt.err (!%p4495_p10)
}
  0x1b   :  { %s4499_s16 = scalar_lea.vmem %s4666_s28, 512  ;;  %p4504_p12 = scmp.lt.s32.totalorder %s4666_s28, %s4666_s28 }
  0x1c   :  { %p4500_p11 = scmp.ne.s32.totalorder %s4666_s28, %s4499_s16  ;;  %p4505_p13 = scmp.lt.s32.totalorder %s4499_s16, %s4499_s16 }
  0x1e   :  { %p4506_p0 = por %p4505_p13, %p4504_p12 }
  0x20   :  { %p4507_p1 = pnand %p4506_p0, %p4500_p11 }
  0x22   :  { %4510 = shalt.err (!%p4507_p1)
}
  0x23   :  { %33 = dma.hbm_to_vmem [thread:$0]  %s5988_s0, 512, %s4666_s28, [#allocation3], %s4587_s20, %s4587_s20, %s4588_s21  }
  0x24   :  { %s4589_s17 = smov [#allocation7]   ;;  %s4590_s19 = smov [#allocation8]  }
  0x25   :  { %s51_s18 = sshll.u32 %s4589_s17, 4  ;;  %s67_s22 = sshll.u32 %s4590_s19, 4  ;;  %s52_s18 = int_to_ptr.vmem [resolvable:$true] %s51_s18  ;;  %s4703_s22 = int_to_ptr.vmem [resolvable:$true] %s67_s22 }
  0x26   :  { %s4511_s25 = scalar_lea.hbm %s5990_s2, 2048 }
  0x27   :  { %p4512_p2 = scmp.ne.s32.totalorder %s5990_s2, %s4511_s25  ;;  %p4515_p3 = scmp.lt.u32.totalorder %s4511_s25, %s5990_s2 }
  0x29   :  { %p4517_p4 = pnand %p4515_p3, %p4512_p2 }
  0x2b   :  { %4520 = shalt.err (!%p4517_p4)
}
  0x2c   :  { %s4521_s0 = scalar_lea.vmem %s52_s18, 2048  ;;  %p4526_p6 = scmp.lt.s32.totalorder %s52_s18, %s52_s18 }
  0x2d   :  { %p4522_p5 = scmp.ne.s32.totalorder %s52_s18, %s4521_s0  ;;  %p4527_p7 = scmp.lt.s32.totalorder %s4521_s0, %s4521_s0 }
  0x2f   :  { %p4528_p8 = por %p4527_p7, %p4526_p6 }
  0x31   :  { %p4529_p9 = pnand %p4528_p8, %p4522_p5 }
  0x33   :  { %4532 = shalt.err (!%p4529_p9)
}
  0x34   :  { %57 = dma.hbm_to_vmem [thread:$0]  %s5990_s2, 2048, %s52_s18, [#allocation6], %s4587_s20, %s4587_s20, %s4588_s21  }
  0x35   :  { %s4533_s26 = scalar_lea.hbm %s5993_s5, 512 }
  0x36   :  { %p4534_p10 = scmp.ne.s32.totalorder %s5993_s5, %s4533_s26  ;;  %p4537_p11 = scmp.lt.u32.totalorder %s4533_s26, %s5993_s5 }
  0x38   :  { %p4539_p12 = pnand %p4537_p11, %p4534_p10 }
  0x3a   :  { %4542 = shalt.err (!%p4539_p12)
}
  0x3b   :  { %s4543_s25 = scalar_lea.vmem %s4703_s22, 512  ;;  %p4548_p0 = scmp.lt.s32.totalorder %s4703_s22, %s4703_s22 }
  0x3c   :  { %p4544_p13 = scmp.ne.s32.totalorder %s4703_s22, %s4543_s25  ;;  %p4549_p1 = scmp.lt.s32.totalorder %s4543_s25, %s4543_s25 }
  0x3e   :  { %p4550_p2 = por %p4549_p1, %p4548_p0 }
  0x40   :  { %p4551_p3 = pnand %p4550_p2, %p4544_p13 }
  0x42   :  { %4554 = shalt.err (!%p4551_p3)
}
  0x43   :  { %73 = dma.hbm_to_vmem [thread:$0]  %s5993_s5, 512, %s4703_s22, [#allocation9], %s4587_s20, %s4587_s20, %s4588_s21  }
  0x44   :  { %4577 = dma.done.wait [#allocation3], 512  }
  0x45   :  { %4578 = vsyncadd [#allocation3], 4294966784 }
  0x46   :  { %4579 = dma.done.wait [#allocation6], 4096  }
  0x47   :  { %4580 = vsyncadd [#allocation6], 4294963200 }
  0x48   :  { %4581 = dma.done.wait [#allocation9], 512  }
  0x49   :  { %4582 = vsyncadd [#allocation9], 4294966784  ;;  %v104_v0 = vld [vmem:[#allocation5] sm:$0xff]  ;;  %v105_v1 = vld [vmem:[#allocation5 + $0x8] sm:$0xff]  ;;  %vm217_vm0 = vcmask 261120   ;;  %vm411_vm1 = vcmask 64512  }
  0x4a   :  { %v106_v2 = vld [vmem:[#allocation5 + $0x10] sm:$0xff]  ;;  %v3940_v3 = vpack.c.bf16 %v105_v1, %v104_v0  ;;  %v107_v4 = vld [vmem:[#allocation5 + $0x18] sm:$0xff]  ;;  %v108_v6 = vld [vmem:[#allocation5 + $0x20] sm:$0xff]  ;;  %vm4592_vm2 = vmmov 0   ;;  %s4595_s25 = smov [#allocation10]  }
  0x4b   :  { %v3944_v5 = vpack.c.bf16 %v107_v4, %v106_v2  ;;  %v109_v7 = vld [vmem:[#allocation5 + $0x28] sm:$0xff]  ;;  %v100_v9 = vld [vmem:[#allocation2] sm:$0xff]  ;;  %v110_v10 = vld [vmem:[#allocation5 + $0x30] sm:$0xff]  ;;  %s3160_s2 = sshll.u32 %s4595_s25, 4  ;;  %s3161_s2 = int_to_ptr.vmem [resolvable:$true] %s3160_s2 }
  0x4c   :  { %3941 = vmatprep.subr.bf16.mxu0 %v3940_v3  ;;  %v3948_v8 = vpack.c.bf16 %v109_v7, %v108_v6  ;;  %v111_v11 = vld [vmem:[#allocation5 + $0x38] sm:$0xff]  ;;  %3542 = vmatprep.mubr.f32.mxu0 %v100_v9  ;;  %v112_v13 = vld [vmem:[#allocation5 + $0x40] sm:$0xff]  ;;  %v113_v14 = vld [vmem:[#allocation5 + $0x48] sm:$0xff]  ;;  %p4560_p5 = scmp.lt.s32.totalorder %s3161_s2, %s3161_s2 }
  0x4d   :  { %3943 = vmatpush3.bf16.msra.mxu0 %v3940_v3  ;;  %v3952_v12 = vpack.c.bf16 %v111_v11, %v110_v10  ;;  %v3956_v15 = vpack.c.bf16 %v113_v14, %v112_v13  ;;  %v114_v16 = vld [vmem:[#allocation5 + $0x50] sm:$0xff]  ;;  %v115_v17 = vld [vmem:[#allocation5 + $0x58] sm:$0xff]  ;;  %v116_v19 = vld [vmem:[#allocation5 + $0x60] sm:$0xff] }
  0x4e   :  { %3945 = vmatprep.subr.bf16.mxu0 %v3944_v5  ;;  %v3960_v18 = vpack.c.bf16 %v115_v17, %v114_v16  ;;  %v117_v20 = vld [vmem:[#allocation5 + $0x68] sm:$0xff]  ;;  %v118_v22 = vld [vmem:[#allocation5 + $0x70] sm:$0xff]  ;;  %v119_v23 = vld [vmem:[#allocation5 + $0x78] sm:$0xff] }
  0x4f   :  { %v3964_v21 = vpack.c.bf16 %v117_v20, %v116_v19  ;;  %v3968_v24 = vpack.c.bf16 %v119_v23, %v118_v22  ;;  %v101_v25 = vld [vmem:[#allocation2 + $0x8] sm:$0xff]  ;;  %v102_v26 = vld [vmem:[#allocation2 + $0x10] sm:$0xff]  ;;  %v103_v27 = vld [vmem:[#allocation2 + $0x18] sm:$0xff] }
  0x50   :  { %v205_v28 = vld [vmem:[%s5992_s4] sm:$0xff]  ;;  %v207_v29 = vld [vmem:[%s5992_s4 + $0x10] sm:$0xff]  ;;  %v206_v36 = vld [vmem:[%s5992_s4 + $0x8] sm:$0xff] }
  0x51   :  { %3947 = vmatpush3.bf16.msra.mxu0 %v3944_v5  ;;  %3559 = vmatprep.mubr.msk.f32.mxu1 %vm217_vm0, %v207_v29  ;;  %v208_v37 = vld [vmem:[%s5992_s4 + $0x18] sm:$0xff]  ;;  %v209_v38 = vld [vmem:[%s5992_s4 + $0x20] sm:$0xff]  ;;  %v210_v39 = vld [vmem:[%s5992_s4 + $0x28] sm:$0xff] }
  0x52   :  { %3949 = vmatprep.subr.bf16.mxu0 %v3948_v8  ;;  %v211_v40 = vld [vmem:[%s5992_s4 + $0x30] sm:$0xff]  ;;  %v212_v41 = vld [vmem:[%s5992_s4 + $0x38] sm:$0xff]  ;;  %v213_v42 = vld [vmem:[%s5992_s4 + $0x40] sm:$0xff] }
  0x53   :  { %v214_v43 = vld [vmem:[%s5992_s4 + $0x48] sm:$0xff]  ;;  %v215_v44 = vld [vmem:[%s5992_s4 + $0x50] sm:$0xff]  ;;  %v216_v45 = vld [vmem:[%s5992_s4 + $0x58] sm:$0xff] }
  0x55   :  { %3951 = vmatpush3.bf16.msra.mxu0 %v3948_v8 }
  0x56   :  { %3953 = vmatprep.subr.bf16.mxu0 %v3952_v12 }
  0x59   :  { %3955 = vmatpush3.bf16.msra.mxu0 %v3952_v12 }
  0x5a   :  { %3957 = vmatprep.subr.bf16.mxu0 %v3956_v15 }
  0x5d   :  { %3959 = vmatpush3.bf16.msra.mxu0 %v3956_v15 }
  0x5e   :  { %3961 = vmatprep.subr.bf16.mxu0 %v3960_v18 }
  0x61   :  { %3963 = vmatpush3.bf16.msra.mxu0 %v3960_v18 }
  0x62   :  { %3965 = vmatprep.subr.bf16.mxu0 %v3964_v21 }
  0x65   :  { %3967 = vmatpush3.bf16.msra.mxu0 %v3964_v21 }
  0x66   :  { %3969 = vmatprep.subr.bf16.mxu0 %v3968_v24 }
  0x69   :  { %3971 = vmatpush3.bf16.msra.mxu0 %v3968_v24 }
  0x6c   :  { %3543 = vmatmul.mubr.f32.vlgmr.msra.gmra.mrb[0].mxu0 %v101_v25 }
  0x6d   :  { %3545 = vmatprep.mubr.f32.mxu0 %v102_v26 }
  0x70   :  { %3546 = vmatmul.mubr.f32.gmra.mrb[2].mxu0 %v103_v27 }
  0x71   :  { %3556 = vmatprep.mubr.msk.f32.mxu0 %vm217_vm0, %v205_v28 }
 0x13f   :  { %v3544_v30 = vpop.f32.mrb[0].mxu0 }
 0x140   :  { %v186_v31 = vpop.f32.mrb[1].mxu0 }
 0x141   :  { %v3972_v32 = vpack.c.bf16 %v3544_v30, %v186_v31 }
 0x143   :  { %v3547_v33 = vpop.f32.mrb[2].mxu0  ;;  %3973 = vmatprep.subr.bf16.mxu0 %v3972_v32  ;;  %4156 = vmatprep.subr.bf16.mxu1 %v3972_v32 }
 0x144   :  { %v196_v34 = vpop.f32.mrb[3].mxu0  ;;  %3975 = vmatpush3.bf16.msra.mxu0 %v3972_v32  ;;  %4158 = vmatpush3.bf16.msra.mxu1 %v3972_v32 }
 0x145   :  { %v3976_v35 = vpack.c.bf16 %v3547_v33, %v196_v34 }
 0x147   :  { %3977 = vmatprep.subr.bf16.mxu0 %v3976_v35  ;;  %4157 = vmatprep.subr.bf16.mxu1 %v3976_v35 }
 0x148   :  { %3979 = vmatpush3.bf16.msra.mxu0 %v3976_v35  ;;  %4159 = vmatpush3.bf16.msra.mxu1 %v3976_v35 }
 0x14b   :  { %3557 = vmatmul.mubr.msk.f32.vlgmr.msra.gmra.mrb[4].mxu0 %vm217_vm0, %v206_v36  ;;  %3560 = vmatmul.mubr.msk.f32.vlgmr.msra.gmra.mrb[0].mxu1 %vm217_vm0, %v208_v37 }
 0x14c   :  { %3562 = vmatprep.mubr.msk.f32.mxu1 %vm217_vm0, %v209_v38 }
 0x14f   :  { %3563 = vmatmul.mubr.msk.f32.gmra.mrb[2].mxu1 %vm217_vm0, %v210_v39 }
 0x150   :  { %3565 = vmatprep.mubr.msk.f32.mxu1 %vm217_vm0, %v211_v40 }
 0x153   :  { %3566 = vmatmul.mubr.msk.f32.gmra.mrb[4].mxu1 %vm217_vm0, %v212_v41 }
 0x154   :  { %3568 = vmatprep.mubr.msk.f32.mxu1 %vm217_vm0, %v213_v42 }
 0x157   :  { %3569 = vmatmul.mubr.msk.f32.gmra.mrb[6].mxu1 %vm217_vm0, %v214_v43 }
 0x158   :  { %3571 = vmatprep.mubr.msk.f32.mxu1 %vm217_vm0, %v215_v44 }
 0x15b   :  { %3572 = vmatmul.mubr.msk.f32.gmra.mrb[8].mxu1 %vm217_vm0, %v216_v45 }
 0x21e   :  { %v3558_v46 = vpop.f32.mrb[4].mxu0  ;;  %v3561_v47 = vpop.f32.mrb[0].mxu1 }
 0x21f   :  { %v320_v48 = vpop.f32.mrb[5].mxu0  ;;  %v330_v49 = vpop.f32.mrb[1].mxu1 }
 0x220   :  { %379 = vxpose.xlu0.b32.start.end [1/1] (short) %v320_v48, 128  ;;  %830 = vxpose.xlu1.b32.start.end [1/1] (short) %v330_v49, 128 }
 0x222   :  { %v3564_v50 = vpop.f32.mrb[2].mxu1 }
 0x223   :  { %v340_v51 = vpop.f32.mrb[3].mxu1  ;;  %3600 = vmatprep.subr.mxu0 %v3564_v50 }
 0x224   :  { %3574 = vmatprep.subr.mxu1 %v340_v51  ;;  %3601 = vmatpush3.msra.mxu0 %v3564_v50 }
 0x225   :  { %3575 = vmatpush3.msra.mxu1 %v340_v51 }
 0x226   :  { %v4788_v52 = vpop.f32.mrb[4].mxu1 }
 0x227   :  { %v350_v53 = vpop.f32.mrb[5].mxu1  ;;  %3652 = vmatprep.subr.mxu0 %v4788_v52 }
 0x228   :  { %3626 = vmatprep.subr.mxu1 %v350_v53 }
 0x22a   :  { %v4799_v6 = vpop.f32.mrb[6].mxu1 }
 0x22b   :  { %6037 = vst [vmem:[#allocation15_spill] sm:$0xff] %v4799_v6  ;;  %v4801_v7 = vpop.f32.mrb[7].mxu1 }
 0x22c   :  { %6038 = vst [vmem:[#allocation16_spill] sm:$0xff] %v4801_v7 }
 0x22e   :  { %v4803_v8 = vpop.f32.mrb[8].mxu1 }
 0x22f   :  { %6039 = vst [vmem:[#allocation17_spill] sm:$0xff] %v4803_v8  ;;  %v4806_v11 = vpop.f32.mrb[9].mxu1 }
 0x230   :  { %6040 = vst [vmem:[#allocation18_spill] sm:$0xff] %v4806_v11 }
 0x25d   :  { %605 = vxpose.xlu0.b32.start.end [1/1] (short) %v3558_v46, 128  ;;  %1055 = vxpose.xlu1.b32.start.end [1/1] (short) %v3561_v47, 128 }
 0x2a0   :  { %v395_v54 = vpop.trf.xlu0  ;;  %v846_v55 = vpop.trf.xlu1 }
 0x2a1   :  { %3576 = vmatprep.mubr.msk.f32.mxu1 %vm411_vm1, %v395_v54 }
 0x2a4   :  { %v396_v56 = vpop.trf.xlu0  ;;  %v847_v57 = vpop.trf.xlu1 }
 0x2a5   :  { %3577 = vmatmul.mubr.msk.f32.vlgmr.msra.gmra.mrb[10].mxu1 %vm411_vm1, %v396_v56 }
 0x2a6   :  { %3627 = vmatpush3.msra.mxu1 %v350_v53 }
 0x2a8   :  { %v397_v58 = vpop.trf.xlu0  ;;  %v848_v59 = vpop.trf.xlu1 }
 0x2a9   :  { %3579 = vmatprep.mubr.msk.f32.mxu1 %vm411_vm1, %v397_v58  ;;  %v1280_v58 = vld [vmem:[%s5991_s3] sm:$0xff] }
 0x2ac   :  { %v398_v60 = vpop.trf.xlu0  ;;  %v849_v61 = vpop.trf.xlu1 }
 0x2ad   :  { %3580 = vmatmul.mubr.msk.f32.gmra.mrb[12].mxu1 %vm411_vm1, %v398_v60 }
 0x2b0   :  { %v399_v62 = vpop.trf.xlu0  ;;  %v850_v63 = vpop.trf.xlu1 }
 0x2b1   :  { %3582 = vmatprep.mubr.msk.f32.mxu1 %vm411_vm1, %v399_v62 }
 0x2b4   :  { %v400_v0 = vpop.trf.xlu0  ;;  %v851_v1 = vpop.trf.xlu1 }
 0x2b5   :  { %3583 = vmatmul.mubr.msk.f32.gmra.mrb[14].mxu1 %vm411_vm1, %v400_v0 }
 0x2b8   :  { %v401_v2 = vpop.trf.xlu0  ;;  %v852_v3 = vpop.trf.xlu1 }
 0x2b9   :  { %3585 = vmatprep.mubr.msk.f32.mxu1 %vm411_vm1, %v401_v2 }
 0x2bc   :  { %v402_v4 = vpop.trf.xlu0  ;;  %v853_v5 = vpop.trf.xlu1 }
 0x2bd   :  { %3586 = vmatmul.mubr.msk.f32.gmra.mrb[16].mxu1 %vm411_vm1, %v402_v4 }
 0x2c0   :  { %v403_v9 = vpop.trf.xlu0  ;;  %v854_v10 = vpop.trf.xlu1 }
 0x2c1   :  { %3588 = vmatprep.mubr.msk.f32.mxu1 %vm411_vm1, %v403_v9 }
 0x2c4   :  { %v404_v12 = vpop.trf.xlu0  ;;  %v855_v13 = vpop.trf.xlu1 }
 0x2c5   :  { %3589 = vmatmul.mubr.msk.f32.gmra.mrb[18].mxu1 %vm411_vm1, %v404_v12 }
 0x2c8   :  { %v405_v14 = vpop.trf.xlu0  ;;  %v856_v15 = vpop.trf.xlu1 }
 0x2c9   :  { %3591 = vmatprep.mubr.msk.f32.mxu1 %vm411_vm1, %v405_v14 }
 0x2cc   :  { %v406_v16 = vpop.trf.xlu0  ;;  %v857_v17 = vpop.trf.xlu1 }
 0x2cd   :  { %3592 = vmatmul.mubr.msk.f32.gmra.mrb[20].mxu1 %vm411_vm1, %v406_v16 }
 0x2d0   :  { %v407_v18 = vpop.trf.xlu0  ;;  %v858_v19 = vpop.trf.xlu1 }
 0x2d1   :  { %3594 = vmatprep.mubr.msk.f32.mxu1 %vm411_vm1, %v407_v18  ;;  %v1297_v18 = vld [vmem:[%s5991_s3 + $0x88] sm:$0xff] }
 0x2d4   :  { %v408_v20 = vpop.trf.xlu0  ;;  %v859_v21 = vpop.trf.xlu1 }
 0x2d5   :  { %3595 = vmatmul.mubr.msk.f32.gmra.mrb[22].mxu1 %vm411_vm1, %v408_v20 }
 0x2d8   :  { %v409_v22 = vpop.trf.xlu0  ;;  %v860_v23 = vpop.trf.xlu1 }
 0x2d9   :  { %3597 = vmatprep.mubr.msk.f32.mxu1 %vm411_vm1, %v409_v22 }
 0x2dc   :  { %v410_v24 = vpop.trf.xlu0  ;;  %v861_v25 = vpop.trf.xlu1 }
 0x2dd   :  { %3598 = vmatmul.mubr.msk.f32.gmra.mrb[24].mxu1 %vm411_vm1, %v410_v24  ;;  %v1281_v24 = vld [vmem:[%s5991_s3 + $0x8] sm:$0xff] }
 0x2de   :  { %3628 = vmatprep.mubr.msk.f32.mxu1 %vm411_vm1, %v846_v55 }
 0x2e0   :  { %v621_v26 = vpop.trf.xlu0  ;;  %v1071_v27 = vpop.trf.xlu1 }
 0x2e1   :  { %3602 = vmatprep.mubr.msk.f32.mxu0 %vm411_vm1, %v621_v26  ;;  %3629 = vmatmul.mubr.msk.f32.vlgmr.msra.gmra.mrb[26].mxu1 %vm411_vm1, %v847_v57 }
 0x2e2   :  { %3631 = vmatprep.mubr.msk.f32.mxu1 %vm411_vm1, %v848_v59 }
 0x2e4   :  { %v622_v28 = vpop.trf.xlu0  ;;  %v1072_v29 = vpop.trf.xlu1 }
 0x2e5   :  { %3603 = vmatmul.mubr.msk.f32.vlgmr.msra.gmra.mrb[6].mxu0 %vm411_vm1, %v622_v28  ;;  %3632 = vmatmul.mubr.msk.f32.gmra.mrb[28].mxu1 %vm411_vm1, %v849_v61  ;;  %v1296_v28 = vld [vmem:[%s5991_s3 + $0x80] sm:$0xff] }
 0x2e6   :  { %3634 = vmatprep.mubr.msk.f32.mxu1 %vm411_vm1, %v850_v63  ;;  %3653 = vmatpush3.msra.mxu0 %v4788_v52 }
 0x2e8   :  { %v623_v30 = vpop.trf.xlu0  ;;  %v1073_v32 = vpop.trf.xlu1 }
 0x2e9   :  { %3605 = vmatprep.mubr.msk.f32.mxu0 %vm411_vm1, %v623_v30  ;;  %3635 = vmatmul.mubr.msk.f32.gmra.mrb[30].mxu1 %vm411_vm1, %v851_v1 }
 0x2ea   :  { %3637 = vmatprep.mubr.msk.f32.mxu1 %vm411_vm1, %v852_v3 }
 0x2ec   :  { %v624_v31 = vpop.trf.xlu0  ;;  %v1074_v34 = vpop.trf.xlu1 }
 0x2ed   :  { %3606 = vmatmul.mubr.msk.f32.gmra.mrb[8].mxu0 %vm411_vm1, %v624_v31  ;;  %3638 = vmatmul.mubr.msk.f32.gmra.mrb[32].mxu1 %vm411_vm1, %v853_v5  ;;  %v1299_v31 = vld [vmem:[%s5991_s3 + $0x98] sm:$0xff] }
 0x2ee   :  { %3640 = vmatprep.mubr.msk.f32.mxu1 %vm411_vm1, %v854_v10 }
 0x2f0   :  { %v625_v33 = vpop.trf.xlu0  ;;  %v1075_v37 = vpop.trf.xlu1 }
 0x2f1   :  { %3608 = vmatprep.mubr.msk.f32.mxu0 %vm411_vm1, %v625_v33  ;;  %3641 = vmatmul.mubr.msk.f32.gmra.mrb[34].mxu1 %vm411_vm1, %v855_v13 }
 0x2f2   :  { %3643 = vmatprep.mubr.msk.f32.mxu1 %vm411_vm1, %v856_v15 }
 0x2f4   :  { %v626_v35 = vpop.trf.xlu0  ;;  %v1076_v39 = vpop.trf.xlu1 }
 0x2f5   :  { %3609 = vmatmul.mubr.msk.f32.gmra.mrb[10].mxu0 %vm411_vm1, %v626_v35  ;;  %3644 = vmatmul.mubr.msk.f32.gmra.mrb[36].mxu1 %vm411_vm1, %v857_v17 }
 0x2f6   :  { %3646 = vmatprep.mubr.msk.f32.mxu1 %vm411_vm1, %v858_v19 }
 0x2f8   :  { %v627_v36 = vpop.trf.xlu0  ;;  %v1077_v42 = vpop.trf.xlu1 }
 0x2f9   :  { %3611 = vmatprep.mubr.msk.f32.mxu0 %vm411_vm1, %v627_v36  ;;  %3647 = vmatmul.mubr.msk.f32.gmra.mrb[38].mxu1 %vm411_vm1, %v859_v21 }
 0x2fa   :  { %3649 = vmatprep.mubr.msk.f32.mxu1 %vm411_vm1, %v860_v23 }
 0x2fc   :  { %v628_v38 = vpop.trf.xlu0  ;;  %v1078_v44 = vpop.trf.xlu1 }
 0x2fd   :  { %3612 = vmatmul.mubr.msk.f32.gmra.mrb[12].mxu0 %vm411_vm1, %v628_v38  ;;  %3650 = vmatmul.mubr.msk.f32.gmra.mrb[40].mxu1 %vm411_vm1, %v861_v25 }
 0x300   :  { %v629_v40 = vpop.trf.xlu0  ;;  %v1079_v47 = vpop.trf.xlu1 }
 0x301   :  { %3614 = vmatprep.mubr.msk.f32.mxu0 %vm411_vm1, %v629_v40 }
 0x304   :  { %v630_v41 = vpop.trf.xlu0  ;;  %v1080_v49 = vpop.trf.xlu1 }
 0x305   :  { %3615 = vmatmul.mubr.msk.f32.gmra.mrb[14].mxu0 %vm411_vm1, %v630_v41  ;;  %v1283_v41 = vld [vmem:[%s5991_s3 + $0x18] sm:$0xff] }
 0x308   :  { %v631_v43 = vpop.trf.xlu0  ;;  %v1081_v52 = vpop.trf.xlu1 }
 0x309   :  { %3617 = vmatprep.mubr.msk.f32.mxu0 %vm411_vm1, %v631_v43  ;;  %v1300_v43 = vld [vmem:[%s5991_s3 + $0xa0] sm:$0xff] }
 0x30c   :  { %v632_v45 = vpop.trf.xlu0  ;;  %v1082_v53 = vpop.trf.xlu1 }
 0x30d   :  { %3618 = vmatmul.mubr.msk.f32.gmra.mrb[16].mxu0 %vm411_vm1, %v632_v45  ;;  %v1301_v45 = vld [vmem:[%s5991_s3 + $0xa8] sm:$0xff] }
 0x310   :  { %v633_v46 = vpop.trf.xlu0  ;;  %v1083_v54 = vpop.trf.xlu1 }
 0x311   :  { %3620 = vmatprep.mubr.msk.f32.mxu0 %vm411_vm1, %v633_v46 }
 0x314   :  { %v634_v48 = vpop.trf.xlu0  ;;  %v1084_v55 = vpop.trf.xlu1 }
 0x315   :  { %3621 = vmatmul.mubr.msk.f32.gmra.mrb[18].mxu0 %vm411_vm1, %v634_v48 }
 0x318   :  { %v635_v50 = vpop.trf.xlu0  ;;  %v1085_v56 = vpop.trf.xlu1 }
 0x319   :  { %3623 = vmatprep.mubr.msk.f32.mxu0 %vm411_vm1, %v635_v50 }
 0x31c   :  { %v636_v51 = vpop.trf.xlu0  ;;  %v1086_v57 = vpop.trf.xlu1 }
 0x31d   :  { %3624 = vmatmul.mubr.msk.f32.gmra.mrb[20].mxu0 %vm411_vm1, %v636_v51  ;;  %v1284_v51 = vld [vmem:[%s5991_s3 + $0x20] sm:$0xff] }
 0x31e   :  { %3654 = vmatprep.mubr.msk.f32.mxu0 %vm411_vm1, %v1071_v27 }
 0x321   :  { %3655 = vmatmul.mubr.msk.f32.vlgmr.msra.gmra.mrb[22].mxu0 %vm411_vm1, %v1072_v29  ;;  %v1298_v29 = vld [vmem:[%s5991_s3 + $0x90] sm:$0xff] }
 0x322   :  { %3657 = vmatprep.mubr.msk.f32.mxu0 %vm411_vm1, %v1073_v32 }
 0x325   :  { %3658 = vmatmul.mubr.msk.f32.gmra.mrb[24].mxu0 %vm411_vm1, %v1074_v34 }
 0x326   :  { %3660 = vmatprep.mubr.msk.f32.mxu0 %vm411_vm1, %v1075_v37  ;;  %v1282_v37 = vld [vmem:[%s5991_s3 + $0x10] sm:$0xff] }
 0x329   :  { %3661 = vmatmul.mubr.msk.f32.gmra.mrb[26].mxu0 %vm411_vm1, %v1076_v39 }
 0x32a   :  { %3663 = vmatprep.mubr.msk.f32.mxu0 %vm411_vm1, %v1077_v42 }
 0x32d   :  { %3664 = vmatmul.mubr.msk.f32.gmra.mrb[28].mxu0 %vm411_vm1, %v1078_v44 }
 0x32e   :  { %3666 = vmatprep.mubr.msk.f32.mxu0 %vm411_vm1, %v1079_v47 }
 0x331   :  { %3667 = vmatmul.mubr.msk.f32.gmra.mrb[30].mxu0 %vm411_vm1, %v1080_v49 }
 0x332   :  { %3669 = vmatprep.mubr.msk.f32.mxu0 %vm411_vm1, %v1081_v52 }
 0x335   :  { %3670 = vmatmul.mubr.msk.f32.gmra.mrb[32].mxu0 %vm411_vm1, %v1082_v53 }
 0x336   :  { %3672 = vmatprep.mubr.msk.f32.mxu0 %vm411_vm1, %v1083_v54 }
 0x339   :  { %3673 = vmatmul.mubr.msk.f32.gmra.mrb[34].mxu0 %vm411_vm1, %v1084_v55  ;;  %v1285_v55 = vld [vmem:[%s5991_s3 + $0x28] sm:$0xff] }
 0x33a   :  { %3675 = vmatprep.mubr.msk.f32.mxu0 %vm411_vm1, %v1085_v56 }
 0x33d   :  { %3676 = vmatmul.mubr.msk.f32.gmra.mrb[36].mxu0 %vm411_vm1, %v1086_v57  ;;  %v1302_v57 = vld [vmem:[%s5991_s3 + $0xb0] sm:$0xff] }
 0x378   :  { %v3578_v59 = vpop.f32.mrb[10].mxu1 }
 0x379   :  { %v526_v60 = vpop.f32.mrb[11].mxu1  ;;  %v4911_v26 = vadd.f32 %v3578_v59, %v1281_v24  ;;  %v1303_v59 = vld [vmem:[%s5991_s3 + $0xb8] sm:$0xff] }
 0x37a   :  { %v4867_v61 = vadd.f32 %v1280_v58, %v526_v60 }
 0x37c   :  { %1408 = vmax.xlane.f32.xlu0 %v4867_v61 }
 0x380   :  { %v3581_v62 = vpop.f32.mrb[12].mxu1 }
 0x381   :  { %v536_v63 = vpop.f32.mrb[13].mxu1  ;;  %v4959_v47 = vadd.f32 %v3581_v62, %v1283_v41 }
 0x382   :  { %v4947_v42 = vadd.f32 %v1282_v37, %v536_v63 }
 0x388   :  { %v4870_v0 = vpop.f32.mrb[14].mxu1 }
 0x389   :  { %v546_v1 = vpop.f32.mrb[15].mxu1  ;;  %v4992_v62 = vadd.f32 %v4870_v0, %v1285_v55  ;;  %v1287_v0 = vld [vmem:[%s5991_s3 + $0x38] sm:$0xff] }
 0x38a   :  { %v4979_v56 = vadd.f32 %v1284_v51, %v546_v1 }
 0x390   :  { %v4872_v2 = vpop.f32.mrb[16].mxu1 }
 0x391   :  { %v4874_v3 = vpop.f32.mrb[17].mxu1 }
 0x398   :  { %v4876_v4 = vpop.f32.mrb[18].mxu1 }
 0x399   :  { %v4878_v5 = vpop.f32.mrb[19].mxu1 }
 0x3a0   :  { %v4880_v9 = vpop.f32.mrb[20].mxu1 }
 0x3a1   :  { %v4882_v10 = vpop.f32.mrb[21].mxu1 }
 0x3a8   :  { %v4884_v12 = vpop.f32.mrb[22].mxu1 }
 0x3a9   :  { %v4886_v13 = vpop.f32.mrb[23].mxu1 }
 0x3b0   :  { %v4888_v14 = vpop.f32.mrb[24].mxu1 }
 0x3b1   :  { %v4890_v15 = vpop.f32.mrb[25].mxu1 }
 0x3b4   :  { %v4892_v16 = vpop.f32.mrb[26].mxu1 }
 0x3b5   :  { %v4894_v17 = vpop.f32.mrb[27].mxu1 }
 0x3b8   :  { %v3604_v19 = vpop.f32.mrb[6].mxu0  ;;  %v4899_v20 = vpop.f32.mrb[28].mxu1 }
 0x3b9   :  { %v4901_v21 = vadd.f32 %v3604_v19, %v1297_v18  ;;  %v751_v22 = vpop.f32.mrb[7].mxu0  ;;  %v4903_v23 = vpop.f32.mrb[29].mxu1  ;;  %v1286_v19 = vld [vmem:[%s5991_s3 + $0x30] sm:$0xff] }
 0x3ba   :  { %v4927_v33 = vadd.f32 %v1296_v28, %v751_v22  ;;  %v5009_v24 = vadd.f32 %v1286_v19, %v4874_v3  ;;  %v1304_v28 = vld [vmem:[%s5991_s3 + $0xc0] sm:$0xff] }
 0x3bb   :  { %1442 = vmax.xlane.f32.xlu1 %v4901_v21  ;;  %v1288_v3 = vld [vmem:[%s5991_s3 + $0x40] sm:$0xff] }
 0x3bc   :  { %v4909_v25 = vpop.f32.mrb[30].mxu1 }
 0x3bd   :  { %v4913_v27 = vpop.f32.mrb[31].mxu1 }
 0x3bf   :  { %1410 = vmax.xlane.f32.xlu1 %v4911_v26 }
 0x3c0   :  { %v3607_v30 = vpop.f32.mrb[8].mxu0  ;;  %v4925_v32 = vpop.f32.mrb[32].mxu1 }
 0x3c1   :  { %v761_v34 = vpop.f32.mrb[9].mxu0  ;;  %v4929_v35 = vpop.f32.mrb[33].mxu1  ;;  %v4936_v38 = vadd.f32 %v3607_v30, %v1299_v31  ;;  %v1305_v30 = vld [vmem:[%s5991_s3 + $0xc8] sm:$0xff]  ;;  %v5020_v31 = vadd.f32 %v4872_v2, %v1287_v0  ;;  %v5035_v2 = vadd.f32 %v1288_v3, %v4878_v5  ;;  %v1290_v5 = vld [vmem:[%s5991_s3 + $0x50] sm:$0xff] }
 0x3c2   :  { %v4931_v36 = vadd.f32 %v1298_v29, %v761_v34  ;;  %v1309_v0 = vld [vmem:[%s5991_s3 + $0xe8] sm:$0xff] }
 0x3c3   :  { %1440 = vmax.xlane.f32.xlu1 %v4927_v33  ;;  %v1293_v3 = vld [vmem:[%s5991_s3 + $0x68] sm:$0xff] }
 0x3c4   :  { %1444 = vmax.xlane.f32.xlu0 %v4931_v36  ;;  %v4940_v39 = vpop.f32.mrb[34].mxu1 }
 0x3c5   :  { %v4942_v40 = vpop.f32.mrb[35].mxu1 }
 0x3c7   :  { %1446 = vmax.xlane.f32.xlu1 %v4936_v38 }
 0x3c8   :  { %1412 = vmax.xlane.f32.xlu0 %v4947_v42  ;;  %v3610_v44 = vpop.f32.mrb[10].mxu0  ;;  %v4957_v46 = vpop.f32.mrb[36].mxu1 }
 0x3c9   :  { %v771_v48 = vpop.f32.mrb[11].mxu0  ;;  %v4961_v49 = vpop.f32.mrb[37].mxu1  ;;  %v4968_v52 = vadd.f32 %v3610_v44, %v1301_v45  ;;  %v1306_v44 = vld [vmem:[%s5991_s3 + $0xd0] sm:$0xff] }
 0x3ca   :  { %v4963_v50 = vadd.f32 %v1300_v43, %v771_v48  ;;  %v1289_v43 = vld [vmem:[%s5991_s3 + $0x48] sm:$0xff]  ;;  %v1307_v48 = vld [vmem:[%s5991_s3 + $0xd8] sm:$0xff] }
 0x3cb   :  { %1414 = vmax.xlane.f32.xlu1 %v4959_v47  ;;  %v5046_v51 = vadd.f32 %v4876_v4, %v1289_v43  ;;  %v5061_v4 = vadd.f32 %v1290_v5, %v4882_v10  ;;  %v1292_v10 = vld [vmem:[%s5991_s3 + $0x60] sm:$0xff]  ;;  %v1310_v43 = vld [vmem:[%s5991_s3 + $0xf0] sm:$0xff] }
 0x3cc   :  { %1448 = vmax.xlane.f32.xlu0 %v4963_v50  ;;  %v4972_v53 = vpop.f32.mrb[38].mxu1 }
 0x3cd   :  { %v4974_v54 = vpop.f32.mrb[39].mxu1 }
 0x3cf   :  { %1450 = vmax.xlane.f32.xlu1 %v4968_v52 }
 0x3d0   :  { %1416 = vmax.xlane.f32.xlu0 %v4979_v56  ;;  %v3613_v58 = vpop.f32.mrb[12].mxu0  ;;  %v4989_v60 = vpop.f32.mrb[40].mxu1 }
 0x3d1   :  { %v781_v63 = vpop.f32.mrb[13].mxu0  ;;  %v4994_v1 = vpop.f32.mrb[41].mxu1  ;;  %v5001_v22 = vadd.f32 %v3613_v58, %v1303_v59  ;;  %v1291_v59 = vld [vmem:[%s5991_s3 + $0x58] sm:$0xff] }
 0x3d2   :  { %v4996_v18 = vadd.f32 %v1302_v57, %v781_v63  ;;  %v1308_v63 = vld [vmem:[%s5991_s3 + $0xe0] sm:$0xff] }
 0x3d3   :  { %1418 = vmax.xlane.f32.xlu1 %v4992_v62 }
 0x3d4   :  { %1452 = vmax.xlane.f32.xlu0 %v4996_v18 }
 0x3d7   :  { %1454 = vmax.xlane.f32.xlu1 %v5001_v22 }
 0x3d8   :  { %1420 = vmax.xlane.f32.xlu0 %v5009_v24  ;;  %v3616_v29 = vpop.f32.mrb[14].mxu0 }
 0x3d9   :  { %v791_v34 = vpop.f32.mrb[15].mxu0  ;;  %v5027_v41 = vadd.f32 %v3616_v29, %v1305_v30 }
 0x3da   :  { %v5022_v37 = vadd.f32 %v1304_v28, %v791_v34  ;;  %v5072_v28 = vadd.f32 %v4880_v9, %v1291_v59  ;;  %v5087_v9 = vadd.f32 %v1292_v10, %v4886_v13  ;;  %v1294_v13 = vld [vmem:[%s5991_s3 + $0x70] sm:$0xff]  ;;  %v1329_v10 = vld [vmem:[%s5991_s3 + $0x188] sm:$0xff] }
 0x3db   :  { %1422 = vmax.xlane.f32.xlu1 %v5020_v31 }
 0x3dc   :  { %1456 = vmax.xlane.f32.xlu0 %v5022_v37 }
 0x3df   :  { %1458 = vmax.xlane.f32.xlu1 %v5027_v41 }
 0x3e0   :  { %1424 = vmax.xlane.f32.xlu0 %v5035_v2  ;;  %v3619_v45 = vpop.f32.mrb[16].mxu0 }
 0x3e1   :  { %v801_v55 = vpop.f32.mrb[17].mxu0  ;;  %v5053_v58 = vadd.f32 %v3619_v45, %v1307_v48  ;;  %v1311_v45 = vld [vmem:[%s5991_s3 + $0xf8] sm:$0xff]  ;;  %v5098_v48 = vadd.f32 %v4884_v12, %v1293_v3  ;;  %v1328_v12 = vld [vmem:[%s5991_s3 + $0x180] sm:$0xff] }
 0x3e2   :  { %v5048_v57 = vadd.f32 %v1306_v44, %v801_v55 }
 0x3e3   :  { %1426 = vmax.xlane.f32.xlu1 %v5046_v51 }
 0x3e4   :  { %1460 = vmax.xlane.f32.xlu0 %v5048_v57 }
 0x3e7   :  { %1462 = vmax.xlane.f32.xlu1 %v5053_v58 }
 0x3e8   :  { %1428 = vmax.xlane.f32.xlu0 %v5061_v4  ;;  %v3622_v19 = vpop.f32.mrb[18].mxu0 }
 0x3e9   :  { %v811_v29 = vpop.f32.mrb[19].mxu0  ;;  %v5079_v34 = vadd.f32 %v3622_v19, %v1309_v0  ;;  %v1295_v0 = vld [vmem:[%s5991_s3 + $0x78] sm:$0xff] }
 0x3ea   :  { %v5074_v30 = vadd.f32 %v1308_v63, %v811_v29  ;;  %v5116_v29 = vadd.f32 %v1294_v13, %v4890_v15  ;;  %v1312_v15 = vld [vmem:[%s5991_s3 + $0x100] sm:$0xff] }
 0x3eb   :  { %1430 = vmax.xlane.f32.xlu1 %v5072_v28 }
 0x3ec   :  { %1464 = vmax.xlane.f32.xlu0 %v5074_v30 }
 0x3ef   :  { %1466 = vmax.xlane.f32.xlu1 %v5079_v34 }
 0x3f0   :  { %1432 = vmax.xlane.f32.xlu0 %v5087_v9  ;;  %v3625_v44 = vpop.f32.mrb[20].mxu0 }
 0x3f1   :  { %v821_v55 = vpop.f32.mrb[21].mxu0  ;;  %v5105_v59 = vadd.f32 %v3625_v44, %v1311_v45  ;;  %v5126_v44 = vadd.f32 %v4888_v14, %v1295_v0  ;;  %v1313_v14 = vld [vmem:[%s5991_s3 + $0x108] sm:$0xff]  ;;  %v5142_v0 = vadd.f32 %v1312_v15, %v4894_v17  ;;  %v1314_v17 = vld [vmem:[%s5991_s3 + $0x110] sm:$0xff] }
 0x3f2   :  { %v5100_v5 = vadd.f32 %v1310_v43, %v821_v55  ;;  %v5152_v11 = vadd.f32 %v4892_v16, %v1313_v14  ;;  %v1315_v16 = vld [vmem:[%s5991_s3 + $0x118] sm:$0xff]  ;;  %v5168_v14 = vadd.f32 %v1314_v17, %v4903_v23  ;;  %v1316_v23 = vld [vmem:[%s5991_s3 + $0x120] sm:$0xff] }
 0x3f3   :  { %1434 = vmax.xlane.f32.xlu1 %v5098_v48  ;;  %6041 = vst [vmem:[#allocation19_spill] sm:$0xff] %v5142_v0 }
 0x3f4   :  { %1468 = vmax.xlane.f32.xlu0 %v5100_v5  ;;  %v3656_v63 = vpop.f32.mrb[22].mxu0  ;;  %6043 = vst [vmem:[#allocation21_spill] sm:$0xff] %v5152_v11  ;;  %6045 = vst [vmem:[#allocation23_spill] sm:$0xff] %v5168_v14 }
 0x3f5   :  { %v1201_v19 = vpop.f32.mrb[23].mxu0  ;;  %v5131_v55 = vadd.f32 %v3656_v63, %v1329_v10  ;;  %v1331_v63 = vld [vmem:[%s5991_s3 + $0x198] sm:$0xff] }
 0x3f6   :  { %v5123_v3 = vadd.f32 %v1328_v12, %v1201_v19  ;;  %v1330_v19 = vld [vmem:[%s5991_s3 + $0x190] sm:$0xff] }
 0x3f7   :  { %1470 = vmax.xlane.f32.xlu1 %v5105_v59 }
 0x3f8   :  { %1436 = vmax.xlane.f32.xlu0 %v5116_v29  ;;  %v3659_v43 = vpop.f32.mrb[24].mxu0 }
 0x3f9   :  { %v1211_v45 = vpop.f32.mrb[25].mxu0  ;;  %v5157_v15 = vadd.f32 %v3659_v43, %v1331_v63  ;;  %v1333_v43 = vld [vmem:[%s5991_s3 + $0x1a8] sm:$0xff] }
 0x3fa   :  { %v5149_v10 = vadd.f32 %v1330_v19, %v1211_v45  ;;  %v1332_v45 = vld [vmem:[%s5991_s3 + $0x1a0] sm:$0xff] }
 0x3fb   :  { %1438 = vmax.xlane.f32.xlu1 %v5126_v44  ;;  %6044 = vst [vmem:[#allocation22_spill] sm:$0xff] %v5157_v15 }
 0x3fc   :  { %1504 = vmax.xlane.f32.xlu0 %v5123_v3  ;;  %v3662_v13 = vpop.f32.mrb[26].mxu0  ;;  %6042 = vst [vmem:[#allocation20_spill] sm:$0xff] %v5149_v10 }
 0x3fd   :  { %v1221_v12 = vpop.f32.mrb[27].mxu0  ;;  %v5183_v17 = vadd.f32 %v3662_v13, %v1333_v43  ;;  %v1335_v13 = vld [vmem:[%s5991_s3 + $0x1b8] sm:$0xff] }
 0x3fe   :  { %v5175_v63 = vadd.f32 %v1332_v45, %v1221_v12  ;;  %v1334_v12 = vld [vmem:[%s5991_s3 + $0x1b0] sm:$0xff] }
 0x3ff   :  { %1506 = vmax.xlane.f32.xlu1 %v5131_v55 }
 0x400   :  { %1472 = vmax.xlane.f32.xlu0 %v5142_v0  ;;  %v3665_v8 = vpop.f32.mrb[28].mxu0  ;;  %6046 = vst [vmem:[#allocation24_spill] sm:$0xff] %v5175_v63 }
 0x401   :  { %v1231_v7 = vpop.f32.mrb[29].mxu0 }
 0x402   :  { %v5201_v43 = vadd.f32 %v1334_v12, %v1231_v7  ;;  %v1336_v7 = vld [vmem:[%s5991_s3 + $0x1c0] sm:$0xff] }
 0x403   :  { %1474 = vmax.xlane.f32.xlu1 %v5152_v11  ;;  %v5178_v11 = vadd.f32 %v4899_v20, %v1315_v16  ;;  %v1317_v20 = vld [vmem:[%s5991_s3 + $0x128] sm:$0xff]  ;;  %v5194_v16 = vadd.f32 %v1316_v23, %v4913_v27  ;;  %v1318_v27 = vld [vmem:[%s5991_s3 + $0x130] sm:$0xff]  ;;  %v5209_v23 = vadd.f32 %v3665_v8, %v1335_v13 }
 0x404   :  { %1508 = vmax.xlane.f32.xlu0 %v5149_v10  ;;  %v3668_v6 = vpop.f32.mrb[30].mxu0  ;;  %6048 = vst [vmem:[#allocation26_spill] sm:$0xff] %v5201_v43  ;;  %v5220_v12 = vadd.f32 %v1318_v27, %v4929_v35  ;;  %v1337_v8 = vld [vmem:[%s5991_s3 + $0x1c8] sm:$0xff]  ;;  %v1338_v35 = vld [vmem:[%s5991_s3 + $0x1d0] sm:$0xff] }
 0x405   :  { %v1241_v19 = vpop.f32.mrb[31].mxu0  ;;  %6047 = vst [vmem:[#allocation25_spill] sm:$0xff] %v5178_v11 }
 0x407   :  { %1510 = vmax.xlane.f32.xlu1 %v5157_v15 }
 0x408   :  { %1476 = vmax.xlane.f32.xlu0 %v5168_v14  ;;  %v3671_v10 = vpop.f32.mrb[32].mxu0 }
 0x409   :  { %v1251_v0 = vpop.f32.mrb[33].mxu0 }
 0x40a   :  { %v5253_v27 = vadd.f32 %v1338_v35, %v1251_v0  ;;  %v1323_v0 = vld [vmem:[%s5991_s3 + $0x158] sm:$0xff] }
 0x40b   :  { %1478 = vmax.xlane.f32.xlu1 %v5178_v11  ;;  %v5204_v11 = vadd.f32 %v4909_v25, %v1317_v20  ;;  %v1319_v25 = vld [vmem:[%s5991_s3 + $0x138] sm:$0xff]  ;;  %v5227_v20 = vadd.f32 %v1336_v7, %v1241_v19  ;;  %v1321_v19 = vld [vmem:[%s5991_s3 + $0x148] sm:$0xff]  ;;  %v5282_v35 = vadd.f32 %v4957_v46, %v1323_v0  ;;  %v1326_v0 = vld [vmem:[%s5991_s3 + $0x170] sm:$0xff] }
 0x40c   :  { %1512 = vmax.xlane.f32.xlu0 %v5175_v63  ;;  %v3674_v14 = vpop.f32.mrb[34].mxu0  ;;  %v5230_v13 = vadd.f32 %v4925_v32, %v1319_v25  ;;  %v5256_v7 = vadd.f32 %v4940_v39, %v1321_v19  ;;  %v1322_v25 = vld [vmem:[%s5991_s3 + $0x150] sm:$0xff]  ;;  %v1324_v19 = vld [vmem:[%s5991_s3 + $0x160] sm:$0xff] }
 0x40d   :  { %v1261_v45 = vpop.f32.mrb[35].mxu0  ;;  %6049 = vst [vmem:[#allocation27_spill] sm:$0xff] %v5204_v11  ;;  %v5272_v39 = vadd.f32 %v1322_v25, %v4961_v49  ;;  %v1342_v49 = vld [vmem:[%s5991_s3 + $0x1f0] sm:$0xff]  ;;  %v5298_v46 = vadd.f32 %v1324_v19, %v4974_v54  ;;  %v1327_v54 = vld [vmem:[%s5991_s3 + $0x178] sm:$0xff] }
 0x40f   :  { %1514 = vmax.xlane.f32.xlu1 %v5183_v17  ;;  %6050 = vst [vmem:[#allocation28_spill] sm:$0xff] %v5298_v46 }
 0x410   :  { %1480 = vmax.xlane.f32.xlu0 %v5194_v16  ;;  %v3677_v63 = vpop.f32.mrb[36].mxu0 }
 0x411   :  { %v1271_v15 = vpop.f32.mrb[37].mxu0 }
 0x412   :  { %v5305_v25 = vadd.f32 %v1342_v49, %v1271_v15  ;;  %v5321_v15 = vadd.f32 %v1326_v0, %v4994_v1 }
 0x413   :  { %1482 = vmax.xlane.f32.xlu1 %v5204_v11  ;;  %v5235_v11 = vadd.f32 %v3668_v6, %v1337_v8  ;;  %v1339_v6 = vld [vmem:[%s5991_s3 + $0x1d8] sm:$0xff] }
 0x414   :  { %1516 = vmax.xlane.f32.xlu0 %v5201_v43  ;;  %v1320_v43 = vld [vmem:[%s5991_s3 + $0x140] sm:$0xff]  ;;  %v5261_v8 = vadd.f32 %v3671_v10, %v1339_v6  ;;  %v1341_v10 = vld [vmem:[%s5991_s3 + $0x1e8] sm:$0xff]  ;;  %6051 = vst [vmem:[#allocation29_spill] sm:$0xff] %v5305_v25  ;;  %6054 = vst [vmem:[#allocation32_spill] sm:$0xff] %v5321_v15 }
 0x415   :  { %v5246_v32 = vadd.f32 %v1320_v43, %v4942_v40  ;;  %v1340_v40 = vld [vmem:[%s5991_s3 + $0x1e0] sm:$0xff]  ;;  %v5287_v6 = vadd.f32 %v3674_v14, %v1341_v10  ;;  %v1343_v14 = vld [vmem:[%s5991_s3 + $0x1f8] sm:$0xff] }
 0x416   :  { %v5279_v43 = vadd.f32 %v1340_v40, %v1261_v45  ;;  %v1325_v45 = vld [vmem:[%s5991_s3 + $0x168] sm:$0xff]  ;;  %v5313_v10 = vadd.f32 %v3677_v63, %v1343_v14  ;;  %v1409_v14 = vpop.xlane.xlu0 %1408 }
 0x417   :  { %1518 = vmax.xlane.f32.xlu1 %v5209_v23  ;;  %v5308_v40 = vadd.f32 %v4972_v53, %v1325_v45  ;;  %v5326_v53 = vadd.f32 %v4989_v60, %v1327_v54  ;;  %v1536_v0 = vsub.f32 %v4867_v61, %v1409_v14 }
 0x418   :  { %1484 = vmax.xlane.f32.xlu0 %v5220_v12  ;;  %6053 = vst [vmem:[#allocation31_spill] sm:$0xff] %v5313_v10 }
 0x419   :  { %6052 = vst [vmem:[#allocation30_spill] sm:$0xff] %v5308_v40  ;;  %6055 = vst [vmem:[#allocation33_spill] sm:$0xff] %v5326_v53 }
 0x41b   :  { %1486 = vmax.xlane.f32.xlu1 %v5230_v13 }
 0x41c   :  { %1520 = vmax.xlane.f32.xlu0 %v5227_v20 }
 0x41f   :  { %1522 = vmax.xlane.f32.xlu1 %v5235_v11 }
 0x420   :  { %1488 = vmax.xlane.f32.xlu0 %v5246_v32 }
 0x423   :  { %1490 = vmax.xlane.f32.xlu1 %v5256_v7 }
 0x424   :  { %1524 = vmax.xlane.f32.xlu0 %v5253_v27 }
 0x427   :  { %1526 = vmax.xlane.f32.xlu1 %v5261_v8 }
 0x428   :  { %1492 = vmax.xlane.f32.xlu0 %v5272_v39 }
 0x42b   :  { %1494 = vmax.xlane.f32.xlu1 %v5282_v35 }
 0x42c   :  { %1528 = vmax.xlane.f32.xlu0 %v5279_v43 }
 0x42f   :  { %1530 = vmax.xlane.f32.xlu1 %v5287_v6 }
 0x430   :  { %1496 = vmax.xlane.f32.xlu0 %v5298_v46 }
 0x433   :  { %1498 = vmax.xlane.f32.xlu1 %v5308_v40  ;;  %v1600_v40 = vmul.f32 1.442695, %v1536_v0 }
 0x434   :  { %1532 = vmax.xlane.f32.xlu0 %v5305_v25 }
 0x437   :  { %1534 = vmax.xlane.f32.xlu1 %v5313_v10 }
 0x438   :  { %1500 = vmax.xlane.f32.xlu0 %v5321_v15 }
 0x43b   :  { %1502 = vmax.xlane.f32.xlu1 %v5326_v53 }
 0x448   :  { %v1443_v63 = vpop.xlane.xlu1 %1442 }
 0x449   :  { %v1553_v19 = vsub.f32 %v4901_v21, %v1443_v63 }
 0x44b   :  { %v1634_v49 = vmul.f32 1.442695, %v1553_v19 }
 0x44c   :  { %v1411_v45 = vpop.xlane.xlu1 %1410 }
 0x44d   :  { %4173 = vpow2.f32 %v1634_v49  ;;  %v1537_v25 = vsub.f32 %v4911_v26, %v1411_v45 }
 0x44f   :  { %v1602_v1 = vmul.f32 1.442695, %v1537_v25 }
 0x450   :  { %v1441_v10 = vpop.xlane.xlu1 %1440 }
 0x451   :  { %4175 = vpow2.f32 %v1602_v1  ;;  %v1552_v15 = vsub.f32 %v4927_v33, %v1441_v10  ;;  %v1445_v60 = vpop.xlane.xlu0 %1444 }
 0x452   :  { %v1554_v53 = vsub.f32 %v4931_v36, %v1445_v60 }
 0x453   :  { %v1632_v54 = vmul.f32 1.442695, %v1552_v15 }
 0x454   :  { %v1447_v46 = vpop.xlane.xlu1 %1446  ;;  %v1636_v25 = vmul.f32 1.442695, %v1554_v53 }
 0x455   :  { %4177 = vpow2.f32 %v1632_v54  ;;  %v1555_v21 = vsub.f32 %v4936_v38, %v1447_v46  ;;  %v1413_v63 = vpop.xlane.xlu0 %1412 }
 0x456   :  { %4179 = vpow2.f32 %v1600_v40  ;;  %v1538_v61 = vsub.f32 %v4947_v42, %v1413_v63 }
 0x457   :  { %v5335_v19 = vpop.eup %4173  ;;  %v1638_v26 = vmul.f32 1.442695, %v1555_v21 }
 0x458   :  { %v1415_v49 = vpop.xlane.xlu1 %1414  ;;  %1762 = vadd.xlane.f32.xlu1 %v5335_v19  ;;  %v1604_v38 = vmul.f32 1.442695, %v1538_v61 }
 0x459   :  { %4181 = vpow2.f32 %v1638_v26  ;;  %v1539_v33 = vsub.f32 %v4959_v47, %v1415_v49  ;;  %v1449_v10 = vpop.xlane.xlu0 %1448 }
 0x45a   :  { %4183 = vpow2.f32 %v1636_v25  ;;  %v1556_v46 = vsub.f32 %v4963_v50, %v1449_v10 }
 0x45b   :  { %v5340_v36 = vpop.eup %4175  ;;  %v1606_v15 = vmul.f32 1.442695, %v1539_v33 }
 0x45c   :  { %v1451_v45 = vpop.xlane.xlu1 %1450  ;;  %1730 = vadd.xlane.f32.xlu1 %v5340_v36  ;;  %v1640_v47 = vmul.f32 1.442695, %v1556_v46 }
 0x45d   :  { %4185 = vpow2.f32 %v1606_v15  ;;  %v1557_v42 = vsub.f32 %v4968_v52, %v1451_v45  ;;  %v1417_v40 = vpop.xlane.xlu0 %1416 }
 0x45e   :  { %4187 = vpow2.f32 %v1604_v38  ;;  %v1540_v1 = vsub.f32 %v4979_v56, %v1417_v40 }
 0x45f   :  { %v5345_v53 = vpop.eup %4177  ;;  %v1642_v14 = vmul.f32 1.442695, %v1557_v42 }
 0x460   :  { %v1419_v0 = vpop.xlane.xlu1 %1418  ;;  %1760 = vadd.xlane.f32.xlu0 %v5345_v53  ;;  %v5350_v54 = vpop.eup %4179  ;;  %v1608_v63 = vmul.f32 1.442695, %v1540_v1 }
 0x461   :  { %4189 = vpow2.f32 %v1642_v14  ;;  %v1541_v50 = vsub.f32 %v4992_v62, %v1419_v0  ;;  %v1453_v60 = vpop.xlane.xlu0 %1452 }
 0x462   :  { %4191 = vpow2.f32 %v1640_v47  ;;  %v1558_v26 = vsub.f32 %v4996_v18, %v1453_v60 }
 0x463   :  { %v5352_v21 = vpop.eup %4181  ;;  %v1610_v52 = vmul.f32 1.442695, %v1541_v50 }
 0x464   :  { %v1455_v25 = vpop.xlane.xlu1 %1454  ;;  %1766 = vadd.xlane.f32.xlu1 %v5352_v21  ;;  %1728 = vadd.xlane.f32.xlu0 %v5350_v54  ;;  %v5358_v62 = vpop.eup %4183  ;;  %v1644_v10 = vmul.f32 1.442695, %v1558_v26 }
 0x465   :  { %4193 = vpow2.f32 %v1610_v52  ;;  %v1559_v56 = vsub.f32 %v5001_v22, %v1455_v25  ;;  %v1421_v61 = vpop.xlane.xlu0 %1420 }
 0x466   :  { %4195 = vpow2.f32 %v1608_v63  ;;  %v1542_v15 = vsub.f32 %v5009_v24, %v1421_v61 }
 0x467   :  { %v5360_v49 = vpop.eup %4185  ;;  %v1646_v33 = vmul.f32 1.442695, %v1559_v56 }
 0x468   :  { %v1423_v38 = vpop.xlane.xlu1 %1422  ;;  %1734 = vadd.xlane.f32.xlu1 %v5360_v49  ;;  %1764 = vadd.xlane.f32.xlu0 %v5358_v62  ;;  %v5366_v22 = vpop.eup %4187  ;;  %v1612_v40 = vmul.f32 1.442695, %v1542_v15 }
 0x469   :  { %4197 = vpow2.f32 %v1646_v33  ;;  %v1543_v18 = vsub.f32 %v5020_v31, %v1423_v38  ;;  %v1457_v46 = vpop.xlane.xlu0 %1456 }
 0x46a   :  { %4199 = vpow2.f32 %v1644_v10  ;;  %v1560_v14 = vsub.f32 %v5022_v37, %v1457_v46 }
 0x46b   :  { %v5368_v45 = vpop.eup %4189  ;;  %v1614_v42 = vmul.f32 1.442695, %v1543_v18 }
 0x46c   :  { %v1459_v47 = vpop.xlane.xlu1 %1458  ;;  %1770 = vadd.xlane.f32.xlu1 %v5368_v45  ;;  %1732 = vadd.xlane.f32.xlu0 %v5366_v22  ;;  %v5374_v31 = vpop.eup %4191  ;;  %v1648_v60 = vmul.f32 1.442695, %v1560_v14 }
 0x46d   :  { %4201 = vpow2.f32 %v1614_v42  ;;  %v1561_v24 = vsub.f32 %v5027_v41, %v1459_v47  ;;  %v1425_v1 = vpop.xlane.xlu0 %1424 }
 0x46e   :  { %4203 = vpow2.f32 %v1612_v40  ;;  %v1544_v52 = vsub.f32 %v5035_v2, %v1425_v1 }
 0x46f   :  { %v5376_v0 = vpop.eup %4193  ;;  %v1650_v50 = vmul.f32 1.442695, %v1561_v24 }
 0x470   :  { %v1427_v63 = vpop.xlane.xlu1 %1426  ;;  %1738 = vadd.xlane.f32.xlu1 %v5376_v0  ;;  %1768 = vadd.xlane.f32.xlu0 %v5374_v31  ;;  %v5382_v41 = vpop.eup %4195  ;;  %v1616_v61 = vmul.f32 1.442695, %v1544_v52 }
 0x471   :  { %4205 = vpow2.f32 %v1650_v50  ;;  %v1545_v37 = vsub.f32 %v5046_v51, %v1427_v63  ;;  %v1461_v26 = vpop.xlane.xlu0 %1460 }
 0x472   :  { %4207 = vpow2.f32 %v1648_v60  ;;  %v1562_v33 = vsub.f32 %v5048_v57, %v1461_v26 }
 0x473   :  { %v5384_v25 = vpop.eup %4197  ;;  %v1618_v56 = vmul.f32 1.442695, %v1545_v37 }
 0x474   :  { %v1463_v10 = vpop.xlane.xlu1 %1462  ;;  %1774 = vadd.xlane.f32.xlu1 %v5384_v25  ;;  %1736 = vadd.xlane.f32.xlu0 %v5382_v41  ;;  %v5390_v51 = vpop.eup %4199  ;;  %v1652_v46 = vmul.f32 1.442695, %v1562_v33 }
 0x475   :  { %4209 = vpow2.f32 %v1618_v56  ;;  %v1563_v2 = vsub.f32 %v5053_v58, %v1463_v10  ;;  %v1429_v15 = vpop.xlane.xlu0 %1428 }
 0x476   :  { %4211 = vpow2.f32 %v1616_v61  ;;  %v1546_v42 = vsub.f32 %v5061_v4, %v1429_v15 }
 0x477   :  { %v5392_v38 = vpop.eup %4201  ;;  %v1654_v18 = vmul.f32 1.442695, %v1563_v2 }
 0x478   :  { %v1431_v40 = vpop.xlane.xlu1 %1430  ;;  %1742 = vadd.xlane.f32.xlu1 %v5392_v38  ;;  %1772 = vadd.xlane.f32.xlu0 %v5390_v51  ;;  %v5398_v58 = vpop.eup %4203  ;;  %v1620_v1 = vmul.f32 1.442695, %v1546_v42 }
 0x479   :  { %4213 = vpow2.f32 %v1654_v18  ;;  %v1547_v57 = vsub.f32 %v5072_v28, %v1431_v40  ;;  %v1465_v14 = vpop.xlane.xlu0 %1464  ;;  %v6017_v28 = vmov 0.0|0.0  }
 0x47a   :  { %4215 = vpow2.f32 %v1652_v46  ;;  %v1564_v50 = vsub.f32 %v5074_v30, %v1465_v14  ;;  %4004 = vmatprep.subr.bf16.mxu0 %v6017_v28  ;;  %3980 = vmatprep.subr.bf16.mxu1 %v6017_v28 }
 0x47b   :  { %v5400_v47 = vpop.eup %4205  ;;  %v1622_v24 = vmul.f32 1.442695, %v1547_v57 }
 0x47c   :  { %v1467_v60 = vpop.xlane.xlu1 %1466  ;;  %1778 = vadd.xlane.f32.xlu1 %v5400_v47  ;;  %1740 = vadd.xlane.f32.xlu0 %v5398_v58  ;;  %v5408_v63 = vpop.eup %4207  ;;  %v1656_v30 = vmul.f32 1.442695, %v1564_v50 }
 0x47d   :  { %4217 = vpow2.f32 %v1622_v24  ;;  %v1565_v4 = vsub.f32 %v5079_v34, %v1467_v60  ;;  %v1433_v52 = vpop.xlane.xlu0 %1432 }
 0x47e   :  { %4219 = vpow2.f32 %v1620_v1  ;;  %v1548_v56 = vsub.f32 %v5087_v9, %v1433_v52 }
 0x47f   :  { %v5410_v37 = vpop.eup %4209  ;;  %v1658_v26 = vmul.f32 1.442695, %v1565_v4 }
 0x480   :  { %v1435_v61 = vpop.xlane.xlu1 %1434  ;;  %1746 = vadd.xlane.f32.xlu1 %v5410_v37  ;;  %1776 = vadd.xlane.f32.xlu0 %v5408_v63  ;;  %v5416_v10 = vpop.eup %4211  ;;  %v1624_v18 = vmul.f32 1.442695, %v1548_v56 }
 0x481   :  { %4221 = vpow2.f32 %v1658_v26  ;;  %v1549_v34 = vsub.f32 %v5098_v48, %v1435_v61  ;;  %v1469_v33 = vpop.xlane.xlu0 %1468 }
 0x482   :  { %4223 = vpow2.f32 %v1656_v30  ;;  %v1566_v46 = vsub.f32 %v5100_v5, %v1469_v33 }
 0x483   :  { %v5418_v2 = vpop.eup %4213  ;;  %v1626_v15 = vmul.f32 1.442695, %v1549_v34 }
 0x484   :  { %v1471_v42 = vpop.xlane.xlu1 %1470  ;;  %1782 = vadd.xlane.f32.xlu1 %v5418_v2  ;;  %1744 = vadd.xlane.f32.xlu0 %v5416_v10  ;;  %v5424_v48 = vpop.eup %4215  ;;  %v1660_v24 = vmul.f32 1.442695, %v1566_v46 }
 0x485   :  { %4225 = vpow2.f32 %v1626_v15  ;;  %v1567_v9 = vsub.f32 %v5105_v59, %v1471_v42  ;;  %v1437_v40 = vpop.xlane.xlu0 %1436 }
 0x486   :  { %4227 = vpow2.f32 %v1624_v18  ;;  %v1550_v1 = vsub.f32 %v5116_v29, %v1437_v40  ;;  %v6056_v18 = vld [vmem:[#allocation19_spill] sm:$0xff] }
 0x487   :  { %v5426_v57 = vpop.eup %4217  ;;  %v1662_v14 = vmul.f32 1.442695, %v1567_v9 }
 0x488   :  { %v1439_v50 = vpop.xlane.xlu1 %1438  ;;  %1750 = vadd.xlane.f32.xlu1 %v5426_v57  ;;  %1780 = vadd.xlane.f32.xlu0 %v5424_v48  ;;  %v5432_v59 = vpop.eup %4219  ;;  %v1628_v26 = vmul.f32 1.442695, %v1550_v1 }
 0x489   :  { %4229 = vpow2.f32 %v1662_v14  ;;  %v1551_v5 = vsub.f32 %v5126_v44, %v1439_v50  ;;  %v1505_v60 = vpop.xlane.xlu0 %1504  ;;  %v6058_v50 = vld [vmem:[#allocation20_spill] sm:$0xff] }
 0x48a   :  { %4231 = vpow2.f32 %v1660_v24  ;;  %v1584_v30 = vsub.f32 %v5123_v3, %v1505_v60  ;;  %v6057_v3 = vld [vmem:[#allocation21_spill] sm:$0xff] }
 0x48b   :  { %v5434_v4 = vpop.eup %4221  ;;  %v1630_v52 = vmul.f32 1.442695, %v1551_v5 }
 0x48c   :  { %v1507_v56 = vpop.xlane.xlu1 %1506  ;;  %1786 = vadd.xlane.f32.xlu1 %v5434_v4  ;;  %1748 = vadd.xlane.f32.xlu0 %v5432_v59  ;;  %v5440_v44 = vpop.eup %4223  ;;  %v1696_v15 = vmul.f32 1.442695, %v1584_v30 }
 0x48d   :  { %4233 = vpow2.f32 %v1630_v52  ;;  %v1585_v29 = vsub.f32 %v5131_v55, %v1507_v56  ;;  %v1473_v61 = vpop.xlane.xlu0 %1472  ;;  %v6059_v52 = vld [vmem:[#allocation22_spill] sm:$0xff] }
 0x48e   :  { %4235 = vpow2.f32 %v1628_v26  ;;  %v1568_v46 = vsub.f32 %v6056_v18, %v1473_v61 }
 0x48f   :  { %v5442_v34 = vpop.eup %4225  ;;  %v1698_v33 = vmul.f32 1.442695, %v1585_v29 }
 0x490   :  { %v1475_v42 = vpop.xlane.xlu1 %1474  ;;  %1754 = vadd.xlane.f32.xlu1 %v5442_v34  ;;  %1784 = vadd.xlane.f32.xlu0 %v5440_v44  ;;  %v5448_v55 = vpop.eup %4227  ;;  %v1664_v1 = vmul.f32 1.442695, %v1568_v46 }
 0x491   :  { %4237 = vpow2.f32 %v1698_v33  ;;  %v1569_v9 = vsub.f32 %v6057_v3, %v1475_v42  ;;  %v1509_v40 = vpop.xlane.xlu0 %1508  ;;  %v6061_v42 = vld [vmem:[#allocation25_spill] sm:$0xff] }
 0x492   :  { %4239 = vpow2.f32 %v1696_v15  ;;  %v1586_v5 = vsub.f32 %v6058_v50, %v1509_v40  ;;  %v6060_v15 = vld [vmem:[#allocation23_spill] sm:$0xff] }
 0x493   :  { %v5450_v14 = vpop.eup %4229  ;;  %v1666_v24 = vmul.f32 1.442695, %v1569_v9 }
 0x494   :  { %v1511_v60 = vpop.xlane.xlu1 %1510  ;;  %1790 = vadd.xlane.f32.xlu1 %v5450_v14  ;;  %1752 = vadd.xlane.f32.xlu0 %v5448_v55  ;;  %v5456_v56 = vpop.eup %4231  ;;  %v1700_v33 = vmul.f32 1.442695, %v1586_v5 }
 0x495   :  { %4241 = vpow2.f32 %v1666_v24  ;;  %v1587_v26 = vsub.f32 %v6059_v52, %v1511_v60  ;;  %v1477_v30 = vpop.xlane.xlu0 %1476 }
 0x496   :  { %4243 = vpow2.f32 %v1664_v1  ;;  %v1570_v18 = vsub.f32 %v6060_v15, %v1477_v30  ;;  %v6062_v1 = vld [vmem:[#allocation24_spill] sm:$0xff] }
 0x497   :  { %v5458_v29 = vpop.eup %4233  ;;  %v1702_v61 = vmul.f32 1.442695, %v1587_v26 }
 0x498   :  { %v1479_v46 = vpop.xlane.xlu1 %1478  ;;  %1758 = vadd.xlane.f32.xlu1 %v5458_v29  ;;  %1788 = vadd.xlane.f32.xlu0 %v5456_v56  ;;  %v5464_v40 = vpop.eup %4235  ;;  %v1668_v60 = vmul.f32 1.442695, %v1570_v18 }
 0x499   :  { %4245 = vpow2.f32 %v1702_v61  ;;  %v1571_v3 = vsub.f32 %v6061_v42, %v1479_v46  ;;  %v1513_v9 = vpop.xlane.xlu0 %1512 }
 0x49a   :  { %4247 = vpow2.f32 %v1700_v33  ;;  %v1588_v5 = vsub.f32 %v6062_v1, %v1513_v9 }
 0x49b   :  { %v5466_v24 = vpop.eup %4237  ;;  %v1670_v50 = vmul.f32 1.442695, %v1571_v3  ;;  %v6063_v3 = vld [vmem:[#allocation27_spill] sm:$0xff] }
 0x49c   :  { %v1515_v52 = vpop.xlane.xlu1 %1514  ;;  %1826 = vadd.xlane.f32.xlu1 %v5466_v24  ;;  %1756 = vadd.xlane.f32.xlu0 %v5464_v40  ;;  %v5472_v61 = vpop.eup %4239  ;;  %v1704_v42 = vmul.f32 1.442695, %v1588_v5 }
 0x49d   :  { %4249 = vpow2.f32 %v1670_v50  ;;  %v1589_v26 = vsub.f32 %v5183_v17, %v1515_v52  ;;  %v1481_v30 = vpop.xlane.xlu0 %1480 }
 0x49e   :  { %4251 = vpow2.f32 %v1668_v60  ;;  %v1572_v33 = vsub.f32 %v5194_v16, %v1481_v30  ;;  %v6064_v60 = vld [vmem:[#allocation26_spill] sm:$0xff] }
 0x49f   :  { %v5474_v15 = vpop.eup %4241  ;;  %v1706_v46 = vmul.f32 1.442695, %v1589_v26 }
 0x4a0   :  { %v1483_v18 = vpop.xlane.xlu1 %1482  ;;  %1794 = vadd.xlane.f32.xlu1 %v5474_v15  ;;  %1824 = vadd.xlane.f32.xlu0 %v5472_v61  ;;  %v5480_v17 = vpop.eup %4243  ;;  %v1672_v26 = vmul.f32 1.442695, %v1572_v33 }
 0x4a1   :  { %4253 = vpow2.f32 %v1706_v46  ;;  %v1573_v9 = vsub.f32 %v6063_v3, %v1483_v18  ;;  %v1517_v50 = vpop.xlane.xlu0 %1516 }
 0x4a2   :  { %4255 = vpow2.f32 %v1704_v42  ;;  %v1590_v5 = vsub.f32 %v6064_v60, %v1517_v50 }
 0x4a3   :  { %v5482_v1 = vpop.eup %4245  ;;  %v1674_v52 = vmul.f32 1.442695, %v1573_v9 }
 0x4a4   :  { %v1519_v28 = vpop.xlane.xlu1 %1518  ;;  %1830 = vadd.xlane.f32.xlu1 %v5482_v1  ;;  %1792 = vadd.xlane.f32.xlu0 %v5480_v17  ;;  %v5488_v46 = vpop.eup %4247  ;;  %v1708_v9 = vmul.f32 1.442695, %v1590_v5 }
 0x4a5   :  { %4257 = vpow2.f32 %v1674_v52  ;;  %v1591_v16 = vsub.f32 %v5209_v23, %v1519_v28  ;;  %v1485_v30 = vpop.xlane.xlu0 %1484 }
 0x4a6   :  { %4259 = vpow2.f32 %v1672_v26  ;;  %v1574_v42 = vsub.f32 %v5220_v12, %v1485_v30 }
 0x4a7   :  { %v5490_v18 = vpop.eup %4249  ;;  %v1710_v3 = vmul.f32 1.442695, %v1591_v16 }
 0x4a8   :  { %v1487_v33 = vpop.xlane.xlu1 %1486  ;;  %1798 = vadd.xlane.f32.xlu1 %v5490_v18  ;;  %1828 = vadd.xlane.f32.xlu0 %v5488_v46  ;;  %v5496_v23 = vpop.eup %4251  ;;  %v1676_v16 = vmul.f32 1.442695, %v1574_v42 }
 0x4a9   :  { %4261 = vpow2.f32 %v1710_v3  ;;  %v1575_v50 = vsub.f32 %v5230_v13, %v1487_v33  ;;  %v1521_v52 = vpop.xlane.xlu0 %1520 }
 0x4aa   :  { %4263 = vpow2.f32 %v1708_v9  ;;  %v1592_v26 = vsub.f32 %v5227_v20, %v1521_v52 }
 0x4ab   :  { %v5498_v28 = vpop.eup %4253  ;;  %v1678_v60 = vmul.f32 1.442695, %v1575_v50 }
 0x4ac   :  { %v1523_v5 = vpop.xlane.xlu1 %1522  ;;  %1834 = vadd.xlane.f32.xlu1 %v5498_v28  ;;  %1796 = vadd.xlane.f32.xlu0 %v5496_v23  ;;  %v5504_v13 = vpop.eup %4255  ;;  %v1712_v50 = vmul.f32 1.442695, %v1592_v26 }
 0x4ad   :  { %4265 = vpow2.f32 %v1678_v60  ;;  %v1593_v12 = vsub.f32 %v5235_v11, %v1523_v5  ;;  %v1489_v30 = vpop.xlane.xlu0 %1488 }
 0x4ae   :  { %4267 = vpow2.f32 %v1676_v16  ;;  %v1576_v9 = vsub.f32 %v5246_v32, %v1489_v30 }
 0x4af   :  { %v5506_v3 = vpop.eup %4257  ;;  %v1714_v33 = vmul.f32 1.442695, %v1593_v12 }
 0x4b0   :  { %v1491_v42 = vpop.xlane.xlu1 %1490  ;;  %1802 = vadd.xlane.f32.xlu1 %v5506_v3  ;;  %1832 = vadd.xlane.f32.xlu0 %v5504_v13  ;;  %v5512_v11 = vpop.eup %4259  ;;  %v1680_v12 = vmul.f32 1.442695, %v1576_v9 }
 0x4b1   :  { %4269 = vpow2.f32 %v1714_v33  ;;  %v1577_v20 = vsub.f32 %v5256_v7, %v1491_v42  ;;  %v1525_v52 = vpop.xlane.xlu0 %1524 }
 0x4b2   :  { %4271 = vpow2.f32 %v1712_v50  ;;  %v1594_v16 = vsub.f32 %v5253_v27, %v1525_v52 }
 0x4b3   :  { %v5514_v60 = vpop.eup %4261  ;;  %v1682_v5 = vmul.f32 1.442695, %v1577_v20 }
 0x4b4   :  { %v1527_v26 = vpop.xlane.xlu1 %1526  ;;  %1838 = vadd.xlane.f32.xlu1 %v5514_v60  ;;  %1800 = vadd.xlane.f32.xlu0 %v5512_v11  ;;  %v5520_v7 = vpop.eup %4263  ;;  %v1716_v20 = vmul.f32 1.442695, %v1594_v16 }
 0x4b5   :  { %4273 = vpow2.f32 %v1682_v5  ;;  %v1595_v32 = vsub.f32 %v5261_v8, %v1527_v26  ;;  %v1493_v30 = vpop.xlane.xlu0 %1492 }
 0x4b6   :  { %4275 = vpow2.f32 %v1680_v12  ;;  %v1578_v50 = vsub.f32 %v5272_v39, %v1493_v30 }
 0x4b7   :  { %v5522_v33 = vpop.eup %4265  ;;  %v1718_v42 = vmul.f32 1.442695, %v1595_v32 }
 0x4b8   :  { %6065 = vst [vmem:[#allocation19_spill] sm:$0xff] %v5522_v33  ;;  %v1495_v9 = vpop.xlane.xlu1 %1494  ;;  %1806 = vadd.xlane.f32.xlu1 %v5522_v33  ;;  %1836 = vadd.xlane.f32.xlu0 %v5520_v7  ;;  %v5528_v8 = vpop.eup %4267  ;;  %v1684_v32 = vmul.f32 1.442695, %v1578_v50 }
 0x4b9   :  { %4277 = vpow2.f32 %v1718_v42  ;;  %v1579_v27 = vsub.f32 %v5282_v35, %v1495_v9  ;;  %v1529_v52 = vpop.xlane.xlu0 %1528  ;;  %6066 = vst [vmem:[#allocation21_spill] sm:$0xff] %v5528_v8  ;;  %v6020_v35 = vmov 0.0  }
 0x4ba   :  { %4279 = vpow2.f32 %v1716_v20  ;;  %v1596_v12 = vsub.f32 %v5279_v43, %v1529_v52  ;;  %3745 = vmatprep.mubr.msk.f32.mxu0 %vm4592_vm2, %v6020_v35  ;;  %3710 = vmatprep.mubr.msk.f32.mxu1 %vm4592_vm2, %v6020_v35  ;;  %v6071_v52 = vld [vmem:[#allocation30_spill] sm:$0xff] }
 0x4bb   :  { %v5530_v5 = vpop.eup %4269  ;;  %v1686_v26 = vmul.f32 1.442695, %v1579_v27 }
 0x4bc   :  { %6067 = vst [vmem:[#allocation20_spill] sm:$0xff] %v5530_v5  ;;  %v1531_v16 = vpop.xlane.xlu1 %1530  ;;  %1842 = vadd.xlane.f32.xlu1 %v5530_v5  ;;  %1804 = vadd.xlane.f32.xlu0 %v5528_v8  ;;  %v5540_v42 = vpop.eup %4271  ;;  %v1720_v50 = vmul.f32 1.442695, %v1596_v12 }
 0x4bd   :  { %4281 = vpow2.f32 %v1686_v26  ;;  %v1597_v39 = vsub.f32 %v5287_v6, %v1531_v16  ;;  %v1497_v30 = vpop.xlane.xlu0 %1496  ;;  %6068 = vst [vmem:[#allocation22_spill] sm:$0xff] %v5540_v42  ;;  %v6070_v6 = vld [vmem:[#allocation28_spill] sm:$0xff] }
 0x4be   :  { %4283 = vpow2.f32 %v1684_v32  ;;  %v1580_v27 = vsub.f32 %v6070_v6, %v1497_v30  ;;  %v6074_v30 = vld [vmem:[#allocation32_spill] sm:$0xff] }
 0x4bf   :  { %v5542_v43 = vpop.eup %4273  ;;  %v1722_v20 = vmul.f32 1.442695, %v1597_v39 }
 0x4c0   :  { %6069 = vst [vmem:[#allocation23_spill] sm:$0xff] %v5542_v43  ;;  %v1499_v9 = vpop.xlane.xlu1 %1498  ;;  %1810 = vadd.xlane.f32.xlu1 %v5542_v43  ;;  %1840 = vadd.xlane.f32.xlu0 %v5540_v42  ;;  %v5548_v5 = vpop.eup %4275  ;;  %v1688_v12 = vmul.f32 1.442695, %v1580_v27  ;;  %v6078_v27 = vld [vmem:[#allocation33_spill] sm:$0xff] }
 0x4c1   :  { %4285 = vpow2.f32 %v1722_v20  ;;  %v1581_v26 = vsub.f32 %v6071_v52, %v1499_v9  ;;  %v1533_v16 = vpop.xlane.xlu0 %1532  ;;  %6072 = vst [vmem:[#allocation25_spill] sm:$0xff] %v5548_v5  ;;  %v6076_v52 = vld [vmem:[#allocation29_spill] sm:$0xff] }
 0x4c2   :  { %4287 = vpow2.f32 %v1720_v50  ;;  %v1598_v43 = vsub.f32 %v6076_v52, %v1533_v16 }
 0x4c3   :  { %v5550_v35 = vpop.eup %4277  ;;  %v1690_v33 = vmul.f32 1.442695, %v1581_v26  ;;  %v6077_v26 = vld [vmem:[#allocation31_spill] sm:$0xff] }
 0x4c4   :  { %6073 = vst [vmem:[#allocation24_spill] sm:$0xff] %v5550_v35  ;;  %1846 = vadd.xlane.f32.xlu1 %v5550_v35  ;;  %v1535_v32 = vpop.xlane.xlu1 %1534  ;;  %1808 = vadd.xlane.f32.xlu0 %v5548_v5  ;;  %v5554_v20 = vpop.eup %4279 }
 0x4c5   :  { %4289 = vpow2.f32 %v1690_v33  ;;  %v1501_v39 = vpop.xlane.xlu0 %1500  ;;  %v1599_v35 = vsub.f32 %v6077_v26, %v1535_v32 }
 0x4c6   :  { %v1582_v6 = vsub.f32 %v6074_v30, %v1501_v39  ;;  %4291 = vpow2.f32 %v1688_v12  ;;  %v1724_v30 = vmul.f32 1.442695, %v1598_v43 }
 0x4c7   :  { %v5557_v9 = vpop.eup %4281  ;;  %v1726_v16 = vmul.f32 1.442695, %v1599_v35 }
 0x4c8   :  { %6075 = vst [vmem:[#allocation27_spill] sm:$0xff] %v5557_v9  ;;  %v1692_v42 = vmul.f32 1.442695, %v1582_v6  ;;  %1814 = vadd.xlane.f32.xlu1 %v5557_v9  ;;  %v1503_v50 = vpop.xlane.xlu1 %1502  ;;  %1844 = vadd.xlane.f32.xlu0 %v5554_v20  ;;  %v5564_v5 = vpop.eup %4283 }
 0x4c9   :  { %v1583_v33 = vsub.f32 %v6078_v27, %v1503_v50 }
 0x4ca   :  { %4293 = vpow2.f32 %v1692_v42 }
 0x4cb   :  { %v5566_v8 = vpop.eup %4285  ;;  %v1694_v39 = vmul.f32 1.442695, %v1583_v33 }
 0x4cc   :  { %6079 = vst [vmem:[#allocation26_spill] sm:$0xff] %v5566_v8  ;;  %1850 = vadd.xlane.f32.xlu1 %v5566_v8  ;;  %1812 = vadd.xlane.f32.xlu0 %v5564_v5  ;;  %v5570_v6 = vpop.eup %4287 }
 0x4cd   :  { %4295 = vpow2.f32 %v1694_v39  ;;  %6080 = vst [vmem:[#allocation28_spill] sm:$0xff] %v5570_v6 }
 0x4ce   :  { %4297 = vpow2.f32 %v1724_v30 }
 0x4cf   :  { %v5572_v12 = vpop.eup %4289  ;;  %4299 = vpow2.f32 %v1726_v16 }
 0x4d0   :  { %6081 = vst [vmem:[#allocation30_spill] sm:$0xff] %v5572_v12  ;;  %1818 = vadd.xlane.f32.xlu1 %v5572_v12  ;;  %1848 = vadd.xlane.f32.xlu0 %v5570_v6  ;;  %v5576_v32 = vpop.eup %4291  ;;  %v6087_v6 = vmov 0.0|0.0  }
 0x4d1   :  { %6082 = vst [vmem:[#allocation32_spill] sm:$0xff] %v5576_v32 }
 0x4d4   :  { %1816 = vadd.xlane.f32.xlu0 %v5576_v32  ;;  %v5579_v42 = vpop.eup %4293 }
 0x4d5   :  { %6083 = vst [vmem:[#allocation29_spill] sm:$0xff] %v5579_v42 }
 0x4d7   :  { %v5581_v43 = vpop.eup %4295 }
 0x4d8   :  { %6084 = vst [vmem:[#allocation31_spill] sm:$0xff] %v5581_v43  ;;  %1822 = vadd.xlane.f32.xlu1 %v5581_v43  ;;  %1820 = vadd.xlane.f32.xlu0 %v5579_v42  ;;  %v5585_v35 = vpop.eup %4297 }
 0x4d9   :  { %6085 = vst [vmem:[#allocation33_spill] sm:$0xff] %v5585_v35  ;;  %v5587_v52 = vpop.eup %4299 }
 0x4da   :  { %6086 = vst [vmem:[#allocation34_spill] sm:$0xff] %v5587_v52 }
 0x4dc   :  { %1854 = vadd.xlane.f32.xlu1 %v5587_v52  ;;  %1852 = vadd.xlane.f32.xlu0 %v5585_v35 }
 0x4e5   :  { %v1763_v50 = vpop.xlane.xlu1 %1762 }
 0x4e6   :  { %4301 = vrcp.f32 %v1763_v50 }
 0x4e9   :  { %v1731_v26 = vpop.xlane.xlu1 %1730 }
 0x4ed   :  { %v1761_v27 = vpop.xlane.xlu0 %1760 }
 0x4ee   :  { %4303 = vrcp.f32 %v1761_v27 }
 0x4ef   :  { %4305 = vrcp.f32 %v1731_v26 }
 0x4f0   :  { %v4302_v43 = vpop.eup %4301 }
 0x4f1   :  { %v1767_v33 = vpop.xlane.xlu1 %1766  ;;  %v1729_v39 = vpop.xlane.xlu0 %1728  ;;  %v1937_v50 = vmul.f32 %v4302_v43, %v5335_v19 }
 0x4f2   :  { %4307 = vrcp.f32 %v1729_v39 }
 0x4f3   :  { %4309 = vrcp.f32 %v1767_v33 }
 0x4f5   :  { %v1735_v30 = vpop.xlane.xlu1 %1734  ;;  %v1765_v16 = vpop.xlane.xlu0 %1764 }
 0x4f6   :  { %4311 = vrcp.f32 %v1765_v16 }
 0x4f7   :  { %4313 = vrcp.f32 %v1735_v30 }
 0x4f8   :  { %v4304_v42 = vpop.eup %4303 }
 0x4f9   :  { %v1771_v12 = vpop.xlane.xlu1 %1770  ;;  %v1733_v52 = vpop.xlane.xlu0 %1732  ;;  %v1936_v35 = vmul.f32 %v4304_v42, %v5345_v53 }
 0x4fa   :  { %v4306_v32 = vpop.eup %4305  ;;  %4315 = vrcp.f32 %v1733_v52 }
 0x4fb   :  { %v4005_v27 = vpack.c.bf16 %v1937_v50, %v1936_v35  ;;  %4317 = vrcp.f32 %v1771_v12  ;;  %v1921_v16 = vmul.f32 %v4306_v32, %v5340_v36 }
 0x4fc   :  { %v4308_v26 = vpop.eup %4307 }
 0x4fd   :  { %v1739_v8 = vpop.xlane.xlu1 %1738  ;;  %4006 = vmatpush3.bf16.xpose.msra.mxu0 %v4005_v27  ;;  %v1769_v33 = vpop.xlane.xlu0 %1768  ;;  %v1920_v39 = vmul.f32 %v4308_v26, %v5350_v54 }
 0x4fe   :  { %4007 = vmatprep.subr.bf16.mxu0 %v6087_v6  ;;  %v4310_v30 = vpop.eup %4309  ;;  %4319 = vrcp.f32 %v1769_v33 }
 0x4ff   :  { %v3981_v9 = vpack.c.bf16 %v1921_v16, %v1920_v39  ;;  %4321 = vrcp.f32 %v1739_v8  ;;  %v1939_v12 = vmul.f32 %v4310_v30, %v5352_v21 }
 0x500   :  { %v4312_v53 = vpop.eup %4311 }
 0x501   :  { %v1775_v19 = vpop.xlane.xlu1 %1774  ;;  %v1737_v42 = vpop.xlane.xlu0 %1736  ;;  %3982 = vmatpush3.bf16.xpose.msra.mxu1 %v3981_v9  ;;  %v1938_v43 = vmul.f32 %v4312_v53, %v5358_v62 }
 0x502   :  { %v4314_v35 = vpop.eup %4313  ;;  %4323 = vrcp.f32 %v1737_v42  ;;  %3983 = vmatprep.subr.bf16.mxu1 %v6087_v6 }
 0x503   :  { %v4008_v54 = vpack.c.bf16 %v1939_v12, %v1938_v43  ;;  %4325 = vrcp.f32 %v1775_v19  ;;  %v1923_v8 = vmul.f32 %v4314_v35, %v5360_v49 }
 0x504   :  { %v4316_v36 = vpop.eup %4315 }
 0x505   :  { %v1743_v32 = vpop.xlane.xlu1 %1742  ;;  %v1773_v52 = vpop.xlane.xlu0 %1772  ;;  %4009 = vmatpush3.bf16.xpose.msra.mxu0 %v4008_v54  ;;  %v1922_v50 = vmul.f32 %v4316_v36, %v5366_v22 }
 0x506   :  { %v4318_v27 = vpop.eup %4317  ;;  %4327 = vrcp.f32 %v1773_v52  ;;  %4010 = vmatprep.subr.bf16.mxu0 %v6087_v6 }
 0x507   :  { %v3984_v62 = vpack.c.bf16 %v1923_v8, %v1922_v50  ;;  %4329 = vrcp.f32 %v1743_v32  ;;  %v1941_v39 = vmul.f32 %v4318_v27, %v5368_v45 }
 0x508   :  { %v4320_v21 = vpop.eup %4319 }
 0x509   :  { %v1779_v9 = vpop.xlane.xlu1 %1778  ;;  %v1741_v26 = vpop.xlane.xlu0 %1740  ;;  %3985 = vmatpush3.bf16.xpose.msra.mxu1 %v3984_v62  ;;  %v1940_v33 = vmul.f32 %v4320_v21, %v5374_v31 }
 0x50a   :  { %v4322_v16 = vpop.eup %4321  ;;  %4331 = vrcp.f32 %v1741_v26  ;;  %3986 = vmatprep.subr.bf16.mxu1 %v6087_v6 }
 0x50b   :  { %v4011_v22 = vpack.c.bf16 %v1941_v39, %v1940_v33  ;;  %4333 = vrcp.f32 %v1779_v9  ;;  %v1925_v42 = vmul.f32 %v4322_v16, %v5376_v0 }
 0x50c   :  { %v4324_v49 = vpop.eup %4323 }
 0x50d   :  { %v1747_v30 = vpop.xlane.xlu1 %1746  ;;  %v1777_v53 = vpop.xlane.xlu0 %1776  ;;  %4012 = vmatpush3.bf16.xpose.msra.mxu0 %v4011_v22  ;;  %v1924_v19 = vmul.f32 %v4324_v49, %v5382_v41 }
 0x50e   :  { %v4326_v43 = vpop.eup %4325  ;;  %4335 = vrcp.f32 %v1777_v53  ;;  %4013 = vmatprep.subr.bf16.mxu0 %v6087_v6 }
 0x50f   :  { %v3987_v31 = vpack.c.bf16 %v1925_v42, %v1924_v19  ;;  %4337 = vrcp.f32 %v1747_v30  ;;  %v1943_v36 = vmul.f32 %v4326_v43, %v5384_v25 }
 0x510   :  { %v4328_v45 = vpop.eup %4327 }
 0x511   :  { %v1783_v12 = vpop.xlane.xlu1 %1782  ;;  %v1745_v35 = vpop.xlane.xlu0 %1744  ;;  %3988 = vmatpush3.bf16.xpose.msra.mxu1 %v3987_v31  ;;  %v1942_v54 = vmul.f32 %v4328_v45, %v5390_v51 }
 0x512   :  { %v4330_v32 = vpop.eup %4329  ;;  %4339 = vrcp.f32 %v1745_v35  ;;  %3989 = vmatprep.subr.bf16.mxu1 %v6087_v6 }
 0x513   :  { %v4014_v41 = vpack.c.bf16 %v1943_v36, %v1942_v54  ;;  %4341 = vrcp.f32 %v1783_v12  ;;  %v1927_v27 = vmul.f32 %v4330_v32, %v5392_v38 }
 0x514   :  { %v4332_v0 = vpop.eup %4331 }
 0x515   :  { %v1751_v52 = vpop.xlane.xlu1 %1750  ;;  %v1781_v50 = vpop.xlane.xlu0 %1780  ;;  %4015 = vmatpush3.bf16.xpose.msra.mxu0 %v4014_v41  ;;  %v1926_v8 = vmul.f32 %v4332_v0, %v5398_v58 }
 0x516   :  { %v4334_v62 = vpop.eup %4333  ;;  %4343 = vrcp.f32 %v1781_v50  ;;  %4016 = vmatprep.subr.bf16.mxu0 %v6087_v6 }
 0x517   :  { %v3990_v51 = vpack.c.bf16 %v1927_v27, %v1926_v8  ;;  %4345 = vrcp.f32 %v1751_v52  ;;  %v1945_v33 = vmul.f32 %v4334_v62, %v5400_v47 }
 0x518   :  { %v4336_v25 = vpop.eup %4335 }
 0x519   :  { %v1787_v21 = vpop.xlane.xlu1 %1786  ;;  %v1749_v9 = vpop.xlane.xlu0 %1748  ;;  %3991 = vmatpush3.bf16.xpose.msra.mxu1 %v3990_v51  ;;  %v1944_v26 = vmul.f32 %v4336_v25, %v5408_v63 }
 0x51a   :  { %v4338_v39 = vpop.eup %4337  ;;  %4347 = vrcp.f32 %v1749_v9  ;;  %3992 = vmatprep.subr.bf16.mxu1 %v6087_v6 }
 0x51b   :  { %v4017_v58 = vpack.c.bf16 %v1945_v33, %v1944_v26  ;;  %4349 = vrcp.f32 %v1787_v21  ;;  %v1929_v30 = vmul.f32 %v4338_v39, %v5410_v37 }
 0x51c   :  { %v4340_v38 = vpop.eup %4339 }
 0x51d   :  { %v1755_v16 = vpop.xlane.xlu1 %1754  ;;  %v1785_v22 = vpop.xlane.xlu0 %1784  ;;  %4018 = vmatpush3.bf16.xpose.msra.mxu0 %v4017_v58  ;;  %v1928_v49 = vmul.f32 %v4340_v38, %v5416_v10 }
 0x51e   :  { %v4342_v53 = vpop.eup %4341  ;;  %4351 = vrcp.f32 %v1785_v22  ;;  %4019 = vmatprep.subr.bf16.mxu0 %v6087_v6 }
 0x51f   :  { %v3993_v63 = vpack.c.bf16 %v1929_v30, %v1928_v49  ;;  %4353 = vrcp.f32 %v1755_v16  ;;  %v1947_v31 = vmul.f32 %v4342_v53, %v5418_v2 }
 0x520   :  { %v4344_v47 = vpop.eup %4343 }
 0x521   :  { %v1791_v19 = vpop.xlane.xlu1 %1790  ;;  %v1753_v42 = vpop.xlane.xlu0 %1752  ;;  %3994 = vmatpush3.bf16.xpose.msra.mxu1 %v3993_v63  ;;  %v1946_v43 = vmul.f32 %v4344_v47, %v5424_v48 }
 0x522   :  { %v4346_v45 = vpop.eup %4345  ;;  %4355 = vrcp.f32 %v1753_v42  ;;  %3995 = vmatprep.subr.bf16.mxu1 %v6087_v6 }
 0x523   :  { %v4020_v10 = vpack.c.bf16 %v1947_v31, %v1946_v43  ;;  %4357 = vrcp.f32 %v1791_v19  ;;  %v1931_v36 = vmul.f32 %v4346_v45, %v5426_v57  ;;  %v6088_v43 = vld [vmem:[#allocation15_spill] sm:$0xff] }
 0x524   :  { %v4348_v37 = vpop.eup %4347 }
 0x525   :  { %v1759_v12 = vpop.xlane.xlu1 %1758  ;;  %v1789_v35 = vpop.xlane.xlu0 %1788  ;;  %4021 = vmatpush3.bf16.xpose.msra.mxu0 %v4020_v10  ;;  %v1930_v54 = vmul.f32 %v4348_v37, %v5432_v59 }
 0x526   :  { %v4350_v32 = vpop.eup %4349  ;;  %4359 = vrcp.f32 %v1789_v35  ;;  %4022 = vmatprep.subr.bf16.mxu0 %v6087_v6 }
 0x527   :  { %v3996_v48 = vpack.c.bf16 %v1931_v36, %v1930_v54  ;;  %4361 = vrcp.f32 %v1759_v12  ;;  %v1949_v50 = vmul.f32 %v4350_v32, %v5434_v4  ;;  %v6089_v12 = vmov 0.0   ;;  %v6090_v54 = vld [vmem:[#allocation16_spill] sm:$0xff] }
 0x528   :  { %v4352_v2 = vpop.eup %4351 }
 0x529   :  { %v1827_v41 = vpop.xlane.xlu1 %1826  ;;  %v1757_v0 = vpop.xlane.xlu0 %1756  ;;  %3997 = vmatpush3.bf16.xpose.msra.mxu1 %v3996_v48  ;;  %v1948_v52 = vmul.f32 %v4352_v2, %v5440_v44 }
 0x52a   :  { %v4354_v8 = vpop.eup %4353  ;;  %4363 = vrcp.f32 %v1757_v0  ;;  %3998 = vmatprep.subr.bf16.mxu1 %v6087_v6 }
 0x52b   :  { %v4023_v59 = vpack.c.bf16 %v1949_v50, %v1948_v52  ;;  %4365 = vrcp.f32 %v1827_v41  ;;  %v1933_v25 = vmul.f32 %v4354_v8, %v5442_v34 }
 0x52c   :  { %v4356_v57 = vpop.eup %4355 }
 0x52d   :  { %v1795_v27 = vpop.xlane.xlu1 %1794  ;;  %v1825_v62 = vpop.xlane.xlu0 %1824  ;;  %4024 = vmatpush3.bf16.xpose.msra.mxu0 %v4023_v59  ;;  %v1932_v51 = vmul.f32 %v4356_v57, %v5448_v55 }
 0x52e   :  { %v4358_v21 = vpop.eup %4357  ;;  %4367 = vrcp.f32 %v1825_v62  ;;  %4025 = vmatprep.subr.bf16.mxu0 %v6087_v6 }
 0x52f   :  { %v3999_v44 = vpack.c.bf16 %v1933_v25, %v1932_v51  ;;  %4369 = vrcp.f32 %v1795_v27  ;;  %v1951_v39 = vmul.f32 %v4358_v21, %v5450_v14 }
 0x530   :  { %v4360_v4 = vpop.eup %4359 }
 0x531   :  { %v1831_v9 = vpop.xlane.xlu1 %1830  ;;  %v1793_v26 = vpop.xlane.xlu0 %1792  ;;  %4000 = vmatpush3.bf16.xpose.msra.mxu1 %v3999_v44  ;;  %v1950_v33 = vmul.f32 %v4360_v4, %v5456_v56 }
 0x532   :  { %v4362_v58 = vpop.eup %4361  ;;  %4371 = vrcp.f32 %v1793_v26  ;;  %4001 = vmatprep.subr.bf16.mxu1 %v6087_v6 }
 0x533   :  { %v4026_v55 = vpack.c.bf16 %v1951_v39, %v1950_v33  ;;  %4373 = vrcp.f32 %v1831_v9  ;;  %v1935_v49 = vmul.f32 %v4362_v58, %v5458_v29 }
 0x534   :  { %v4364_v34 = vpop.eup %4363 }
 0x535   :  { %v1799_v38 = vpop.xlane.xlu1 %1798  ;;  %v1829_v16 = vpop.xlane.xlu0 %1828  ;;  %4027 = vmatpush3.bf16.xpose.msra.mxu0 %v4026_v55  ;;  %v1934_v22 = vmul.f32 %v4364_v34, %v5464_v40 }
 0x536   :  { %v4366_v30 = vpop.eup %4365  ;;  %4375 = vrcp.f32 %v1829_v16  ;;  %4052 = vmatprep.subr.bf16.mxu0 %v6087_v6 }
 0x537   :  { %v4002_v56 = vpack.c.bf16 %v1935_v49, %v1934_v22  ;;  %4377 = vrcp.f32 %v1799_v38  ;;  %v1969_v19 = vmul.f32 %v4366_v30, %v5466_v24  ;;  %v6091_v22 = vld [vmem:[#allocation21_spill] sm:$0xff]  ;;  %v6092_v30 = vld [vmem:[#allocation19_spill] sm:$0xff] }
 0x538   :  { %v4368_v14 = vpop.eup %4367 }
 0x539   :  { %v1835_v53 = vpop.xlane.xlu1 %1834  ;;  %v1797_v63 = vpop.xlane.xlu0 %1796  ;;  %4003 = vmatpush3.bf16.xpose.msra.mxu1 %v4002_v56  ;;  %v1968_v47 = vmul.f32 %v4368_v14, %v5472_v61 }
 0x53a   :  { %v4370_v42 = vpop.eup %4369  ;;  %4379 = vrcp.f32 %v1797_v63  ;;  %4028 = vmatprep.subr.bf16.mxu1 %v6087_v6 }
 0x53b   :  { %v4053_v40 = vpack.c.bf16 %v1969_v19, %v1968_v47  ;;  %4381 = vrcp.f32 %v1835_v53  ;;  %v1953_v37 = vmul.f32 %v4370_v42, %v5474_v15  ;;  %v6093_v47 = vld [vmem:[#allocation22_spill] sm:$0xff]  ;;  %v6094_v42 = vld [vmem:[#allocation20_spill] sm:$0xff] }
 0x53c   :  { %v4372_v29 = vpop.eup %4371  ;;  %3746 = vmatmul.mubr.f32.vlgmr.msra.gmra.mrb[38].mxu0 %v6088_v43 }
 0x53d   :  { %v1803_v31 = vpop.xlane.xlu1 %1802  ;;  %v1833_v45 = vpop.xlane.xlu0 %1832  ;;  %4054 = vmatpush3.bf16.xpose.msra.mxu0 %v4053_v40  ;;  %v1952_v10 = vmul.f32 %v4372_v29, %v5480_v17  ;;  %3815 = vmatprep.mubr.msk.f32.mxu0 %vm4592_vm2, %v6089_v12 }
 0x53e   :  { %v4374_v24 = vpop.eup %4373  ;;  %4383 = vrcp.f32 %v1833_v45  ;;  %4055 = vmatprep.subr.bf16.mxu0 %v6087_v6 }
 0x53f   :  { %v4029_v61 = vpack.c.bf16 %v1953_v37, %v1952_v10  ;;  %4385 = vrcp.f32 %v1803_v31  ;;  %v1971_v17 = vmul.f32 %v4374_v24, %v5482_v1  ;;  %v6095_v37 = vld [vmem:[#allocation25_spill] sm:$0xff]  ;;  %v6096_v24 = vld [vmem:[#allocation23_spill] sm:$0xff] }
 0x540   :  { %v4376_v35 = vpop.eup %4375  ;;  %3711 = vmatmul.mubr.f32.vlgmr.msra.gmra.mrb[42].mxu1 %v6090_v54 }
 0x541   :  { %v1839_v36 = vpop.xlane.xlu1 %1838  ;;  %v1801_v32 = vpop.xlane.xlu0 %1800  ;;  %4030 = vmatpush3.bf16.xpose.msra.mxu1 %v4029_v61  ;;  %v1970_v48 = vmul.f32 %v4376_v35, %v5488_v46  ;;  %3780 = vmatprep.mubr.msk.f32.mxu1 %vm4592_vm2, %v6089_v12 }
 0x542   :  { %v4378_v15 = vpop.eup %4377  ;;  %4387 = vrcp.f32 %v1801_v32  ;;  %4031 = vmatprep.subr.bf16.mxu1 %v6087_v6 }
 0x543   :  { %v4056_v2 = vpack.c.bf16 %v1971_v17, %v1970_v48  ;;  %4389 = vrcp.f32 %v1839_v36  ;;  %v1955_v8 = vmul.f32 %v4378_v15, %v5490_v18  ;;  %v6097_v17 = vld [vmem:[#allocation24_spill] sm:$0xff] }
 0x544   :  { %v4380_v41 = vpop.eup %4379 }
 0x545   :  { %v1807_v0 = vpop.xlane.xlu1 %1806  ;;  %v1837_v52 = vpop.xlane.xlu0 %1836  ;;  %4057 = vmatpush3.bf16.xpose.msra.mxu0 %v4056_v2  ;;  %v1954_v50 = vmul.f32 %v4380_v41, %v5496_v23 }
 0x546   :  { %v4382_v46 = vpop.eup %4381  ;;  %4391 = vrcp.f32 %v1837_v52  ;;  %4058 = vmatprep.subr.bf16.mxu0 %v6087_v6 }
 0x547   :  { %v4032_v1 = vpack.c.bf16 %v1955_v8, %v1954_v50  ;;  %4393 = vrcp.f32 %v1807_v0  ;;  %v1973_v51 = vmul.f32 %v4382_v46, %v5498_v28  ;;  %v6098_v46 = vld [vmem:[#allocation27_spill] sm:$0xff] }
 0x548   :  { %v4384_v59 = vpop.eup %4383 }
 0x549   :  { %v1843_v57 = vpop.xlane.xlu1 %1842  ;;  %v1805_v27 = vpop.xlane.xlu0 %1804  ;;  %4033 = vmatpush3.bf16.xpose.msra.mxu1 %v4032_v1  ;;  %v1972_v62 = vmul.f32 %v4384_v59, %v5504_v13 }
 0x54a   :  { %v4386_v25 = vpop.eup %4385  ;;  %4395 = vrcp.f32 %v1805_v27  ;;  %4034 = vmatprep.subr.bf16.mxu1 %v6087_v6 }
 0x54b   :  { %v4059_v23 = vpack.c.bf16 %v1973_v51, %v1972_v62  ;;  %4397 = vrcp.f32 %v1843_v57  ;;  %v1957_v9 = vmul.f32 %v4386_v25, %v5506_v3  ;;  %v6099_v25 = vld [vmem:[#allocation28_spill] sm:$0xff] }
 0x54c   :  { %v4388_v18 = vpop.eup %4387 }
 0x54d   :  { %v1811_v21 = vpop.xlane.xlu1 %1810  ;;  %v1841_v44 = vpop.xlane.xlu0 %1840  ;;  %4060 = vmatpush3.bf16.xpose.msra.mxu0 %v4059_v23  ;;  %v1956_v4 = vmul.f32 %v4388_v18, %v5512_v11  ;;  %v6100_v18 = vld [vmem:[#allocation26_spill] sm:$0xff] }
 0x54e   :  { %v4390_v26 = vpop.eup %4389  ;;  %4399 = vrcp.f32 %v1841_v44  ;;  %4061 = vmatprep.subr.bf16.mxu0 %v6087_v6 }
 0x54f   :  { %v4035_v13 = vpack.c.bf16 %v1957_v9, %v1956_v4  ;;  %4401 = vrcp.f32 %v1811_v21  ;;  %v1975_v55 = vmul.f32 %v4390_v26, %v5514_v60  ;;  %v6101_v4 = vld [vmem:[#allocation32_spill] sm:$0xff]  ;;  %v6102_v26 = vld [vmem:[#allocation30_spill] sm:$0xff] }
 0x550   :  { %v4392_v28 = vpop.eup %4391 }
 0x551   :  { %v1847_v33 = vpop.xlane.xlu1 %1846  ;;  %v1809_v39 = vpop.xlane.xlu0 %1808  ;;  %4036 = vmatpush3.bf16.xpose.msra.mxu1 %v4035_v13  ;;  %v1974_v58 = vmul.f32 %v4392_v28, %v5520_v7 }
 0x552   :  { %v4394_v34 = vpop.eup %4393  ;;  %4403 = vrcp.f32 %v1809_v39  ;;  %4037 = vmatprep.subr.bf16.mxu1 %v6087_v6 }
 0x553   :  { %v4062_v11 = vpack.c.bf16 %v1975_v55, %v1974_v58  ;;  %4405 = vrcp.f32 %v1847_v33  ;;  %v1959_v56 = vmul.f32 %v4394_v34, %v6092_v30  ;;  %v6103_v55 = vld [vmem:[#allocation29_spill] sm:$0xff] }
 0x554   :  { %v4396_v3 = vpop.eup %4395 }
 0x555   :  { %v1815_v38 = vpop.xlane.xlu1 %1814  ;;  %v1845_v16 = vpop.xlane.xlu0 %1844  ;;  %4063 = vmatpush3.bf16.xpose.msra.mxu0 %v4062_v11  ;;  %v1958_v49 = vmul.f32 %v4396_v3, %v6091_v22  ;;  %v6104_v11 = vld [vmem:[#allocation31_spill] sm:$0xff] }
 0x556   :  { %v4398_v14 = vpop.eup %4397  ;;  %4407 = vrcp.f32 %v1845_v16  ;;  %4064 = vmatprep.subr.bf16.mxu0 %v6087_v6  ;;  %v6105_v16 = vld [vmem:[#allocation34_spill] sm:$0xff] }
 0x557   :  { %v4038_v7 = vpack.c.bf16 %v1959_v56, %v1958_v49  ;;  %4409 = vrcp.f32 %v1815_v38  ;;  %v1977_v40 = vmul.f32 %v4398_v14, %v6094_v42  ;;  %v6106_v49 = vld [vmem:[#allocation33_spill] sm:$0xff]  ;;  %v2532_v42 = vld [vmem:[%s5995_s7 + $0x18] sm:$0xff] }
 0x558   :  { %v4400_v60 = vpop.eup %4399 }
 0x559   :  { %v1851_v53 = vpop.xlane.xlu1 %1850  ;;  %v1813_v63 = vpop.xlane.xlu0 %1812  ;;  %4039 = vmatpush3.bf16.xpose.msra.mxu1 %v4038_v7  ;;  %v1976_v19 = vmul.f32 %v4400_v60, %v6093_v47  ;;  %v6107_v7 = vld [vmem:[#allocation18_spill] sm:$0xff]  ;;  %v6108_v60 = vld [vmem:[#allocation17_spill] sm:$0xff]  ;;  %v2268_v47 = vld [vmem:[%s5994_s6] sm:$0xff] }
 0x55a   :  { %v4402_v29 = vpop.eup %4401  ;;  %4411 = vrcp.f32 %v1813_v63  ;;  %4040 = vmatprep.subr.bf16.mxu1 %v6087_v6  ;;  %v4594_v63 = vmov 0  }
 0x55b   :  { %v4065_v43 = vpack.c.bf16 %v1977_v40, %v1976_v19  ;;  %4413 = vrcp.f32 %v1851_v53  ;;  %v1961_v61 = vmul.f32 %v4402_v29, %v6096_v24  ;;  %v2264_v53 = vld [vmem:[#allocation8] sm:$0xff]  ;;  %4172 = vset.pattern.permute.xlu1 %v4594_v63  ;;  %4171 = vset.pattern.permute.xlu0 %v4594_v63  ;;  %v2270_v19 = vld [vmem:[%s5994_s6 + $0x10] sm:$0xff]  ;;  %v2271_v40 = vld [vmem:[%s5994_s6 + $0x18] sm:$0xff] }
 0x55c   :  { %v4404_v31 = vpop.eup %4403  ;;  %2274 = vperm.xlu0 %4171, %v2268_v47   ;;  %v2560_v29 = vld [vmem:[%s5996_s8 + $0x18] sm:$0xff]  ;;  %v2558_v24 = vld [vmem:[%s5996_s8 + $0x8] sm:$0xff]  ;;  %v2266_v63 = vld [vmem:[#allocation8 + $0x10] sm:$0xff] }
 0x55d   :  { %v1819_v45 = vpop.xlane.xlu1 %1818  ;;  %v1849_v10 = vpop.xlane.xlu0 %1848  ;;  %4066 = vmatpush3.bf16.xpose.msra.mxu0 %v4065_v43  ;;  %v1960_v12 = vmul.f32 %v4404_v31, %v6095_v37  ;;  %v2529_v43 = vld [vmem:[%s5995_s7] sm:$0xff]  ;;  %v2602_v31 = vld [vmem:[%s5998_s10 + $0x8] sm:$0xff]  ;;  %v2267_v47 = vld [vmem:[#allocation8 + $0x18] sm:$0xff] }
 0x55e   :  { %v4406_v35 = vpop.eup %4405  ;;  %4415 = vrcp.f32 %v1849_v10  ;;  %4067 = vmatprep.subr.bf16.mxu0 %v6087_v6  ;;  %v2604_v10 = vld [vmem:[%s5998_s10 + $0x18] sm:$0xff]  ;;  %v2557_v37 = vld [vmem:[%s5996_s8] sm:$0xff] }
 0x55f   :  { %4417 = vrcp.f32 %v1819_v45  ;;  %v4041_v54 = vpack.c.bf16 %v1961_v61, %v1960_v12  ;;  %v1979_v15 = vmul.f32 %v4406_v35, %v6097_v17  ;;  %v2530_v45 = vld [vmem:[%s5995_s7 + $0x8] sm:$0xff]  ;;  %v2608_v61 = vld [vmem:[%s5998_s10 + $0x38] sm:$0xff]  ;;  %v2531_v35 = vld [vmem:[%s5995_s7 + $0x10] sm:$0xff] }
 0x560   :  { %v4408_v36 = vpop.eup %4407  ;;  %2550 = vperm.xlu0 %4171, %v2532_v42   ;;  %v2606_v12 = vld [vmem:[%s5998_s10 + $0x28] sm:$0xff]  ;;  %v2404_v42 = vld [vmem:[#allocation7 + $0x78] sm:$0xff] }
 0x561   :  { %v1817_v32 = vpop.xlane.xlu0 %1816  ;;  %4042 = vmatpush3.bf16.xpose.msra.mxu1 %v4041_v54  ;;  %v1978_v48 = vmul.f32 %v4408_v36, %v5554_v20  ;;  %v4410_v2 = vpop.eup %4409  ;;  %v2610_v54 = vld [vmem:[%s5998_s10 + $0x48] sm:$0xff]  ;;  %v2559_v36 = vld [vmem:[%s5996_s8 + $0x10] sm:$0xff] }
 0x562   :  { %4419 = vrcp.f32 %v1817_v32  ;;  %4043 = vmatprep.subr.bf16.mxu1 %v6087_v6  ;;  %v1963_v1 = vmul.f32 %v4410_v2, %v6098_v46  ;;  %v2612_v32 = vld [vmem:[%s5998_s10 + $0x58] sm:$0xff]  ;;  %v2614_v17 = vld [vmem:[%s5998_s10 + $0x68] sm:$0xff]  ;;  %v2607_v46 = vld [vmem:[%s5998_s10 + $0x30] sm:$0xff] }
 0x563   :  { %v4068_v41 = vpack.c.bf16 %v1979_v15, %v1978_v48  ;;  %v2601_v48 = vld [vmem:[%s5998_s10] sm:$0xff]  ;;  %v2603_v15 = vld [vmem:[%s5998_s10 + $0x10] sm:$0xff]  ;;  %v2616_v2 = vld [vmem:[%s5998_s10 + $0x78] sm:$0xff] }
 0x564   :  { %v4412_v0 = vpop.eup %4411  ;;  %2578 = vperm.xlu0 %4171, %v2560_v29  }
 0x565   :  { %v1823_v52 = vpop.xlane.xlu1 %1822  ;;  %v1821_v50 = vpop.xlane.xlu0 %1820  ;;  %4069 = vmatpush3.bf16.xpose.msra.mxu0 %v4068_v41  ;;  %v1962_v8 = vmul.f32 %v4412_v0, %v5564_v5  ;;  %v2605_v41 = vld [vmem:[%s5998_s10 + $0x20] sm:$0xff]  ;;  %v3039_v0 = vld [vmem:[%s6000_s12 + $0x8] sm:$0xff] }
 0x566   :  { %4421 = vrcp.f32 %v1823_v52  ;;  %v4414_v59 = vpop.eup %4413  ;;  %4070 = vmatprep.subr.bf16.mxu0 %v6087_v6  ;;  %v2389_v52 = vld [vmem:[#allocation7] sm:$0xff] }
 0x567   :  { %4423 = vrcp.f32 %v1821_v50  ;;  %v4044_v20 = vpack.c.bf16 %v1963_v1, %v1962_v8  ;;  %v1981_v21 = vmul.f32 %v4414_v59, %v6100_v18  ;;  %v2390_v50 = vld [vmem:[#allocation7 + $0x8] sm:$0xff]  ;;  %v3041_v1 = vld [vmem:[%s6000_s12 + $0x18] sm:$0xff] }
 0x568   :  { %v4416_v57 = vpop.eup %4415  ;;  %2624 = vperm.xlu0 %4171, %v2602_v31   ;;  %v4084_v8 = vpack.c.bf16 %v2390_v50, %v2389_v52  ;;  %v2394_v18 = vld [vmem:[#allocation7 + $0x28] sm:$0xff] }
 0x569   :  { %v1855_v27 = vpop.xlane.xlu1 %1854  ;;  %v1853_v62 = vpop.xlane.xlu0 %1852  ;;  %4045 = vmatpush3.bf16.xpose.msra.mxu1 %v4044_v20  ;;  %v1980_v23 = vmul.f32 %v4416_v57, %v6099_v25  ;;  %v2391_v20 = vld [vmem:[#allocation7 + $0x10] sm:$0xff]  ;;  %v2392_v57 = vld [vmem:[#allocation7 + $0x18] sm:$0xff] }
 0x56a   :  { %v4418_v51 = vpop.eup %4417  ;;  %4425 = vrcp.f32 %v1855_v27  ;;  %4046 = vmatprep.subr.bf16.mxu1 %v6087_v6 }
 0x56b   :  { %4427 = vrcp.f32 %v1853_v62  ;;  %v4071_v44 = vpack.c.bf16 %v1981_v21, %v1980_v23  ;;  %v1965_v13 = vmul.f32 %v4418_v51, %v6102_v26  ;;  %v4088_v62 = vpack.c.bf16 %v2392_v57, %v2391_v20  ;;  %v2609_v51 = vld [vmem:[%s5998_s10 + $0x40] sm:$0xff]  ;;  %v2396_v26 = vld [vmem:[#allocation7 + $0x38] sm:$0xff] }
 0x56c   :  { %v4420_v5 = vpop.eup %4419  ;;  %2634 = vperm.xlu0 %4171, %v2604_v10   ;;  %v2393_v23 = vld [vmem:[#allocation7 + $0x20] sm:$0xff] }
 0x56d   :  { %v1964_v9 = vmul.f32 %v4420_v5, %v6101_v4  ;;  %4072 = vmatpush3.bf16.xpose.msra.mxu0 %v4071_v44  ;;  %v4092_v44 = vpack.c.bf16 %v2394_v18, %v2393_v23  ;;  %v2611_v4 = vld [vmem:[%s5998_s10 + $0x50] sm:$0xff] }
 0x56e   :  { %4073 = vmatprep.subr.bf16.mxu0 %v6087_v6 }
 0x56f   :  { %v4047_v28 = vpack.c.bf16 %v1965_v13, %v1964_v9  ;;  %v2395_v9 = vld [vmem:[#allocation7 + $0x30] sm:$0xff] }
 0x570   :  { %v4422_v33 = vpop.eup %4421  ;;  %2644 = vperm.xlu0 %4171, %v2606_v12   ;;  %v4096_v13 = vpack.c.bf16 %v2396_v26, %v2395_v9 }
 0x571   :  { %v4424_v39 = vpop.eup %4423  ;;  %4048 = vmatpush3.bf16.xpose.msra.mxu1 %v4047_v28  ;;  %v1967_v3 = vmul.f32 %v4422_v33, %v6104_v11  ;;  %v2613_v28 = vld [vmem:[%s5998_s10 + $0x60] sm:$0xff]  ;;  %v2400_v11 = vld [vmem:[#allocation7 + $0x58] sm:$0xff] }
 0x572   :  { %4049 = vmatprep.subr.bf16.mxu1 %v6087_v6  ;;  %v1966_v34 = vmul.f32 %v4424_v39, %v6103_v55  ;;  %v2269_v6 = vld [vmem:[%s5994_s6 + $0x8] sm:$0xff]  ;;  %v2397_v33 = vld [vmem:[#allocation7 + $0x40] sm:$0xff]  ;;  %v2615_v55 = vld [vmem:[%s5998_s10 + $0x70] sm:$0xff] }
 0x573   :  { %2279 = vperm.xlu1 %4172, %v2269_v6   ;;  %v2398_v39 = vld [vmem:[#allocation7 + $0x48] sm:$0xff] }
 0x574   :  { %v4426_v58 = vpop.eup %4425  ;;  %v4050_v56 = vpack.c.bf16 %v1967_v3, %v1966_v34  ;;  %2654 = vperm.xlu0 %4171, %v2608_v61   ;;  %v2399_v34 = vld [vmem:[#allocation7 + $0x50] sm:$0xff]  ;;  %v2265_v6 = vld [vmem:[#allocation8 + $0x8] sm:$0xff] }
 0x575   :  { %v4428_v38 = vpop.eup %4427  ;;  %v1983_v22 = vmul.f32 %v4426_v58, %v6105_v16  ;;  %v4100_v58 = vpack.c.bf16 %v2398_v39, %v2397_v33  ;;  %v4104_v3 = vpack.c.bf16 %v2400_v11, %v2399_v34  ;;  %v2401_v16 = vld [vmem:[#allocation7 + $0x60] sm:$0xff] }
 0x576   :  { %v1982_v30 = vmul.f32 %v4428_v38, %v6106_v49  ;;  %v3038_v38 = vld [vmem:[%s6000_s12] sm:$0xff] }
 0x577   :  { %2284 = vperm.xlu1 %4172, %v2270_v19   ;;  %v2403_v19 = vld [vmem:[#allocation7 + $0x70] sm:$0xff] }
 0x578   :  { %v4074_v14 = vpack.c.bf16 %v1983_v22, %v1982_v30  ;;  %2664 = vperm.xlu0 %4171, %v2610_v54   ;;  %v2402_v22 = vld [vmem:[#allocation7 + $0x68] sm:$0xff]  ;;  %v3040_v30 = vld [vmem:[%s6000_s12 + $0x10] sm:$0xff] }
 0x579   :  { %4051 = vmatpush3.bf16.xpose.msra.mxu1 %v4050_v56  ;;  %v4108_v49 = vpack.c.bf16 %v2402_v22, %v2401_v16 }
 0x57a   :  { %4075 = vmatpush3.bf16.xpose.msra.mxu0 %v4074_v14 }
 0x57b   :  { %2289 = vperm.xlu1 %4172, %v2271_v40   ;;  %4085 = vmatprep.subr.bf16.mxu0 %v4084_v8  ;;  %v4112_v40 = vpack.c.bf16 %v2404_v42, %v2403_v19 }
 0x57c   :  { %2674 = vperm.xlu0 %4171, %v2612_v32   ;;  %v2585_v32 = vld [vmem:[%s5997_s9] sm:$0xff] }
 0x57f   :  { %2535 = vperm.xlu1 %4172, %v2529_v43  }
 0x580   :  { %3781 = vmatmul.mubr.f32.vlgmr.msra.gmra.mrb[44].mxu1 %v6107_v7  ;;  %2684 = vperm.xlu0 %4171, %v2614_v17  }
 0x581   :  { %3816 = vmatmul.mubr.f32.vlgmr.msra.gmra.mrb[40].mxu0 %v6108_v60  ;;  %3826 = vmatprep.mubr.msk.f32.mxu1 %vm217_vm0, %v2264_v53 }
 0x582   :  { %4087 = vmatpush3.bf16.msra.mxu0 %v4084_v8 }
 0x583   :  { %2540 = vperm.xlu1 %4172, %v2530_v45   ;;  %4089 = vmatprep.subr.bf16.mxu0 %v4088_v62 }
 0x584   :  { %2694 = vperm.xlu0 %4171, %v2616_v2  }
 0x586   :  { %4091 = vmatpush3.bf16.msra.mxu0 %v4088_v62 }
 0x587   :  { %2563 = vperm.xlu1 %4172, %v2557_v37   ;;  %4093 = vmatprep.subr.bf16.mxu0 %v4092_v44 }
 0x588   :  { %3049 = vperm.xlu0 %4171, %v3039_v0  }
 0x58a   :  { %4095 = vmatpush3.bf16.msra.mxu0 %v4092_v44 }
 0x58b   :  { %2568 = vperm.xlu1 %4172, %v2558_v24   ;;  %4097 = vmatprep.subr.bf16.mxu0 %v4096_v13 }
 0x58c   :  { %3059 = vperm.xlu0 %4171, %v3041_v1  }
 0x58e   :  { %4099 = vmatpush3.bf16.msra.mxu0 %v4096_v13 }
 0x58f   :  { %2545 = vperm.xlu1 %4172, %v2531_v35   ;;  %4101 = vmatprep.subr.bf16.mxu0 %v4100_v58 }
 0x592   :  { %4103 = vmatpush3.bf16.msra.mxu0 %v4100_v58 }
 0x593   :  { %2573 = vperm.xlu1 %4172, %v2559_v36   ;;  %4105 = vmatprep.subr.bf16.mxu0 %v4104_v3 }
 0x596   :  { %4107 = vmatpush3.bf16.msra.mxu0 %v4104_v3 }
 0x597   :  { %2619 = vperm.xlu1 %4172, %v2601_v48   ;;  %4109 = vmatprep.subr.bf16.mxu0 %v4108_v49 }
 0x59a   :  { %4111 = vmatpush3.bf16.msra.mxu0 %v4108_v49 }
 0x59b   :  { %2629 = vperm.xlu1 %4172, %v2603_v15   ;;  %4113 = vmatprep.subr.bf16.mxu0 %v4112_v40  ;;  %v4463_v15 = vld [vmem:[#allocation2 + $0x8] sm:$0xff] }
 0x59e   :  { %4115 = vmatpush3.bf16.msra.mxu0 %v4112_v40 }
 0x59f   :  { %2639 = vperm.xlu1 %4172, %v2605_v41   ;;  %v4464_v41 = vld [vmem:[#allocation2] sm:$0xff] }
 0x5a3   :  { %2649 = vperm.xlu1 %4172, %v2607_v46   ;;  %v4465_v46 = vld [vmem:[#allocation2 + $0x10] sm:$0xff] }
 0x5a7   :  { %2659 = vperm.xlu1 %4172, %v2609_v51  }
 0x5ab   :  { %2669 = vperm.xlu1 %4172, %v2611_v4  }
 0x5af   :  { %2679 = vperm.xlu1 %4172, %v2613_v28  }
 0x5b3   :  { %2689 = vperm.xlu1 %4172, %v2615_v55  }
 0x5b7   :  { %3044 = vperm.xlu1 %4172, %v3038_v38  }
 0x5bb   :  { %3054 = vperm.xlu1 %4172, %v3040_v30  }
 0x5db   :  { %v2275_v45 = vpop.permute.xlu0 %2274 }
 0x5f2   :  { %v2280_v29 = vpop.permute.xlu1 %2279 }
 0x5f6   :  { %v2285_v43 = vpop.permute.xlu1 %2284 }
 0x5fa   :  { %v2290_v35 = vpop.permute.xlu1 %2289 }
 0x5fe   :  { %v2536_v11 = vpop.permute.xlu1 %2535 }
 0x602   :  { %v2541_v22 = vpop.permute.xlu1 %2540 }
 0x60f   :  { %v2120_v59 = vpop.f32.mrb[38].mxu0 }
 0x610   :  { %v3747_v27 = vpop.f32.mrb[39].mxu0 }
 0x613   :  { %v2050_v25 = vpop.f32.mrb[42].mxu1 }
 0x614   :  { %v4076_v21 = vpack.c.bf16 %v2120_v59, %v2050_v25  ;;  %v3712_v5 = vpop.f32.mrb[43].mxu1  ;;  %v4466_v59 = vld [vmem:[#allocation2 + $0x18] sm:$0xff] }
 0x616   :  { %4077 = vmatprep.subr.bf16.mxu1 %v4076_v21 }
 0x617   :  { %4079 = vmatpush3.bf16.msra.mxu1 %v4076_v21 }
 0x653   :  { %v2190_v56 = vpop.f32.mrb[44].mxu1 }
 0x654   :  { %v2260_v14 = vpop.f32.mrb[40].mxu0  ;;  %v3782_v60 = vpop.f32.mrb[45].mxu1 }
 0x655   :  { %v4080_v7 = vpack.c.bf16 %v2260_v14, %v2190_v56  ;;  %v3817_v53 = vpop.f32.mrb[41].mxu0  ;;  %v2564_v14 = vpop.permute.xlu1 %2563 }
 0x657   :  { %4081 = vmatprep.subr.bf16.mxu1 %v4080_v7 }
 0x658   :  { %4083 = vmatpush3.bf16.msra.mxu1 %v4080_v7 }
 0x659   :  { %v2569_v53 = vpop.permute.xlu1 %2568 }
 0x65b   :  { %3827 = vmatmul.mubr.msk.f32.vlgmr.msra.gmra.mrb[46].mxu1 %vm217_vm0, %v2265_v6 }
 0x65c   :  { %3829 = vmatprep.mubr.msk.f32.mxu1 %vm217_vm0, %v2266_v63  ;;  %v2551_v63 = vpop.permute.xlu0 %2550 }
 0x65d   :  { %v2546_v6 = vpop.permute.xlu1 %2545 }
 0x65f   :  { %3830 = vmatmul.mubr.msk.f32.gmra.mrb[48].mxu1 %vm217_vm0, %v2267_v47 }
 0x660   :  { %3878 = vmatprep.mubr.msk.f32.mxu1 %vm217_vm0, %v2585_v32 }
 0x72e   :  { %v3828_v31 = vpop.f32.mrb[46].mxu1 }
 0x72f   :  { %v2370_v10 = vpop.f32.mrb[47].mxu1  ;;  %v2376_v12 = vadd.f32 %v3828_v31, %v2280_v29 }
 0x730   :  { %v2371_v37 = vadd.f32 %v2370_v10, %v2275_v45 }
 0x732   :  { %v3831_v24 = vpop.f32.mrb[48].mxu1  ;;  %3864 = vmatprep.mubr.f32.mxu0 %v2371_v37  ;;  %v2574_v37 = vpop.permute.xlu1 %2573 }
 0x733   :  { %v2380_v61 = vpop.f32.mrb[49].mxu1  ;;  %3865 = vmatmul.mubr.f32.vlgmr.msra.gmra.mrb[42].mxu0 %v2376_v12  ;;  %v2386_v36 = vadd.f32 %v3831_v24, %v2290_v35  ;;  %v2579_v12 = vpop.permute.xlu0 %2578 }
 0x734   :  { %v2381_v54 = vadd.f32 %v2380_v61, %v2285_v43 }
 0x736   :  { %3867 = vmatprep.mubr.f32.mxu0 %v2381_v54 }
 0x737   :  { %3868 = vmatmul.mubr.f32.gmra.mrb[44].mxu0 %v2386_v36 }
 0x806   :  { %v3866_v48 = vpop.f32.mrb[42].mxu0 }
 0x807   :  { %v2471_v17 = vpop.f32.mrb[43].mxu0  ;;  %v5797_v2 = vadd.f32 %v4463_v15, %v3866_v48  ;;  %v2586_v48 = vld [vmem:[%s5997_s9 + $0x8] sm:$0xff]  ;;  %v2588_v15 = vld [vmem:[%s5997_s9 + $0x18] sm:$0xff] }
 0x808   :  { %v5799_v0 = vadd.f32 %v4464_v41, %v2471_v17  ;;  %v2587_v17 = vld [vmem:[%s5997_s9 + $0x10] sm:$0xff]  ;;  %v2589_v41 = vld [vmem:[%s5997_s9 + $0x20] sm:$0xff] }
 0x80a   :  { %v3869_v52 = vpop.f32.mrb[44].mxu0  ;;  %v2494_v8 = vadd.f32 %v5797_v2, %v5799_v0 }
 0x80b   :  { %v2481_v50 = vpop.f32.mrb[45].mxu0  ;;  %v5805_v20 = vadd.f32 %v4466_v59, %v3869_v52  ;;  %v2590_v52 = vld [vmem:[%s5997_s9 + $0x28] sm:$0xff] }
 0x80c   :  { %v5803_v1 = vadd.f32 %v4465_v46, %v2481_v50  ;;  %v2591_v50 = vld [vmem:[%s5997_s9 + $0x30] sm:$0xff]  ;;  %v2593_v46 = vld [vmem:[%s5997_s9 + $0x40] sm:$0xff]  ;;  %v2594_v59 = vld [vmem:[%s5997_s9 + $0x48] sm:$0xff] }
 0x80e   :  { %v2495_v57 = vadd.f32 %v2494_v8, %v5803_v1  ;;  %v2592_v8 = vld [vmem:[%s5997_s9 + $0x38] sm:$0xff] }
 0x810   :  { %v2496_v27 = vadd.f32 %v2495_v57, %v5805_v20  ;;  %v2595_v57 = vld [vmem:[%s5997_s9 + $0x50] sm:$0xff] }
 0x812   :  { %v2497_v62 = vrot.slane %v2496_v27, 4 }
 0x814   :  { %v2498_v51 = vadd.f32 %v2497_v62, %v2496_v27  ;;  %v2596_v27 = vld [vmem:[%s5997_s9 + $0x58] sm:$0xff]  ;;  %v2597_v62 = vld [vmem:[%s5997_s9 + $0x60] sm:$0xff] }
 0x816   :  { %v2499_v25 = vrot.slane %v2498_v51, 2 }
 0x818   :  { %v2500_v23 = vadd.f32 %v2499_v25, %v2498_v51  ;;  %v2598_v51 = vld [vmem:[%s5997_s9 + $0x68] sm:$0xff]  ;;  %v2599_v25 = vld [vmem:[%s5997_s9 + $0x70] sm:$0xff] }
 0x81a   :  { %v2501_v18 = vrot.slane %v2500_v23, 1 }
 0x81c   :  { %v2502_v21 = vadd.f32 %v2501_v18, %v2500_v23  ;;  %v2600_v23 = vld [vmem:[%s5997_s9 + $0x78] sm:$0xff]  ;;  %v3034_v18 = vld [vmem:[%s5999_s11] sm:$0xff] }
 0x81e   :  { %v2504_v5 = vmul.f32 0.03125, %v2502_v21  ;;  %v2625_v21 = vpop.permute.xlu0 %2624 }
 0x820   :  { %v2505_v44 = vsub.f32 %v5799_v0, %v2504_v5  ;;  %v2506_v4 = vsub.f32 %v5797_v2, %v2504_v5  ;;  %v2507_v9 = vsub.f32 %v5803_v1, %v2504_v5  ;;  %v2508_v26 = vsub.f32 %v5805_v20, %v2504_v5  ;;  %v2620_v5 = vpop.permute.xlu1 %2619 }
 0x822   :  { %v2509_v13 = vmul.f32 %v2505_v44, %v2505_v44  ;;  %v2510_v28 = vmul.f32 %v2506_v4, %v2506_v4  ;;  %v2511_v33 = vmul.f32 %v2507_v9, %v2507_v9  ;;  %v2512_v58 = vmul.f32 %v2508_v26, %v2508_v26 }
 0x824   :  { %v2513_v39 = vadd.f32 %v2510_v28, %v2509_v13 }
 0x826   :  { %v2514_v55 = vadd.f32 %v2513_v39, %v2511_v33 }
 0x828   :  { %v2515_v34 = vadd.f32 %v2514_v55, %v2512_v58 }
 0x82a   :  { %v2516_v3 = vrot.slane %v2515_v34, 4 }
 0x82c   :  { %v2517_v38 = vadd.f32 %v2516_v3, %v2515_v34 }
 0x82e   :  { %v2518_v16 = vrot.slane %v2517_v38, 2 }
 0x830   :  { %v2519_v49 = vadd.f32 %v2518_v16, %v2517_v38 }
 0x832   :  { %v2520_v30 = vrot.slane %v2519_v49, 1 }
 0x834   :  { %v2521_v56 = vadd.f32 %v2520_v30, %v2519_v49 }
 0x836   :  { %v2522_v7 = vmul.f32 0.03125, %v2521_v56 }
 0x838   :  { %v2523_v60 = vadd.f32 1e-05, %v2522_v7 }
 0x83a   :  { %4429 = vrsqrt.f32 %v2523_v60 }
 0x844   :  { %v4430_v47 = vpop.eup %4429 }
 0x845   :  { %v2527_v19 = vmul.f32 %v4430_v47, %v2507_v9  ;;  %v2525_v42 = vmul.f32 %v4430_v47, %v2505_v44  ;;  %v2526_v40 = vmul.f32 %v4430_v47, %v2506_v4  ;;  %v2528_v29 = vmul.f32 %v4430_v47, %v2508_v26  ;;  %v2635_v44 = vpop.permute.xlu0 %2634  ;;  %v2630_v4 = vpop.permute.xlu1 %2629 }
 0x847   :  { %v2553_v43 = vmul.f32 %v2536_v11, %v2525_v42  ;;  %v2554_v31 = vmul.f32 %v2541_v22, %v2526_v40  ;;  %v2555_v45 = vmul.f32 %v2546_v6, %v2527_v19  ;;  %v2556_v10 = vmul.f32 %v2551_v63, %v2528_v29 }
 0x849   :  { %v2581_v24 = vadd.f32 %v2564_v14, %v2553_v43  ;;  %v2582_v61 = vadd.f32 %v2569_v53, %v2554_v31  ;;  %v2583_v35 = vadd.f32 %v2574_v37, %v2555_v45  ;;  %v2584_v54 = vadd.f32 %v2579_v12, %v2556_v10  ;;  %v2645_v9 = vpop.permute.xlu0 %2644  ;;  %v2640_v26 = vpop.permute.xlu1 %2639 }
 0x84b   :  { %v4116_v36 = vpack.c.bf16 %v2582_v61, %v2581_v24  ;;  %v4120_v32 = vpack.c.bf16 %v2584_v54, %v2583_v35 }
 0x84d   :  { %4117 = vmatprep.subr.bf16.mxu1 %v4116_v36  ;;  %v2655_v55 = vpop.permute.xlu0 %2654  ;;  %v2650_v3 = vpop.permute.xlu1 %2649 }
 0x84e   :  { %4119 = vmatpush3.bf16.msra.mxu1 %v4116_v36 }
 0x84f   :  { %4121 = vmatprep.subr.bf16.mxu1 %v4120_v32 }
 0x851   :  { %v2665_v42 = vpop.permute.xlu0 %2664  ;;  %v2660_v31 = vpop.permute.xlu1 %2659 }
 0x852   :  { %4123 = vmatpush3.bf16.msra.mxu1 %v4120_v32 }
 0x855   :  { %3879 = vmatmul.mubr.msk.f32.vlgmr.msra.gmra.mrb[50].mxu1 %vm217_vm0, %v2586_v48 }
 0x856   :  { %3881 = vmatprep.mubr.msk.f32.mxu1 %vm217_vm0, %v2587_v17 }
 0x859   :  { %3882 = vmatmul.mubr.msk.f32.gmra.mrb[52].mxu1 %vm217_vm0, %v2588_v15 }
 0x85a   :  { %3884 = vmatprep.mubr.msk.f32.mxu1 %vm217_vm0, %v2589_v41 }
 0x85d   :  { %3885 = vmatmul.mubr.msk.f32.gmra.mrb[54].mxu1 %vm217_vm0, %v2590_v52 }
 0x85e   :  { %3887 = vmatprep.mubr.msk.f32.mxu1 %vm217_vm0, %v2591_v50 }
 0x861   :  { %3888 = vmatmul.mubr.msk.f32.gmra.mrb[56].mxu1 %vm217_vm0, %v2592_v8 }
 0x862   :  { %3890 = vmatprep.mubr.msk.f32.mxu1 %vm217_vm0, %v2593_v46 }
 0x865   :  { %3891 = vmatmul.mubr.msk.f32.gmra.mrb[58].mxu1 %vm217_vm0, %v2594_v59  ;;  %v2675_v59 = vpop.permute.xlu0 %2674 }
 0x866   :  { %3893 = vmatprep.mubr.msk.f32.mxu1 %vm217_vm0, %v2595_v57 }
 0x869   :  { %3894 = vmatmul.mubr.msk.f32.gmra.mrb[60].mxu1 %vm217_vm0, %v2596_v27 }
 0x86a   :  { %3896 = vmatprep.mubr.msk.f32.mxu1 %vm217_vm0, %v2597_v62 }
 0x86d   :  { %3897 = vmatmul.mubr.msk.f32.gmra.mrb[62].mxu1 %vm217_vm0, %v2598_v51 }
 0x86e   :  { %3899 = vmatprep.mubr.msk.f32.mxu1 %vm217_vm0, %v2599_v25 }
 0x871   :  { %3900 = vmatmul.mubr.msk.f32.gmra.mrb[64].mxu1 %vm217_vm0, %v2600_v23  ;;  %v2670_v23 = vpop.permute.xlu1 %2669 }
 0x872   :  { %3934 = vmatprep.mubr.f32.mxu1 %v3034_v18 }
 0x928   :  { %v3880_v13 = vpop.f32.mrb[50].mxu1 }
 0x929   :  { %v2817_v28 = vadd.f32 %v3880_v13, %v2625_v21  ;;  %v2811_v33 = vpop.f32.mrb[51].mxu1 }
 0x92a   :  { %v2812_v39 = vadd.f32 %v2811_v33, %v2620_v5 }
 0x92b   :  { %v2907_v58 = vmul.f32 0.044715, %v2817_v28  ;;  %v2891_v8 = vmul.f32 0.5, %v2817_v28 }
 0x92c   :  { %v2906_v34 = vmul.f32 0.044715, %v2812_v39  ;;  %v3883_v11 = vpop.f32.mrb[52].mxu1  ;;  %v2890_v51 = vmul.f32 0.5, %v2812_v39 }
 0x92d   :  { %v2923_v38 = vmul.f32 %v2907_v58, %v2817_v28  ;;  %v2827_v16 = vadd.f32 %v3883_v11, %v2635_v44  ;;  %v2821_v22 = vpop.f32.mrb[53].mxu1 }
 0x92e   :  { %v2922_v49 = vmul.f32 %v2906_v34, %v2812_v39  ;;  %v2822_v30 = vadd.f32 %v2821_v22, %v2630_v4 }
 0x92f   :  { %v2939_v56 = vmul.f32 %v2923_v38, %v2817_v28  ;;  %v2909_v14 = vmul.f32 0.044715, %v2827_v16  ;;  %v2893_v33 = vmul.f32 0.5, %v2827_v16 }
 0x930   :  { %v2938_v7 = vmul.f32 %v2922_v49, %v2812_v39  ;;  %v2908_v60 = vmul.f32 0.044715, %v2822_v30  ;;  %v3886_v53 = vpop.f32.mrb[54].mxu1  ;;  %v2892_v11 = vmul.f32 0.5, %v2822_v30 }
 0x931   :  { %v2925_v6 = vmul.f32 %v2909_v14, %v2827_v16  ;;  %v5876_v63 = vadd.f32 %v3886_v53, %v2645_v9  ;;  %v2831_v47 = vpop.f32.mrb[55].mxu1  ;;  %v2955_v19 = vadd.f32 %v2939_v56, %v2817_v28  ;;  %v2685_v14 = vpop.permute.xlu0 %2684 }
 0x932   :  { %v2924_v40 = vmul.f32 %v2908_v60, %v2822_v30  ;;  %v5878_v29 = vadd.f32 %v2831_v47, %v2640_v26  ;;  %v2954_v43 = vadd.f32 %v2938_v7, %v2812_v39 }
 0x933   :  { %v2941_v45 = vmul.f32 %v2925_v6, %v2827_v16  ;;  %v2911_v10 = vmul.f32 0.044715, %v5876_v63  ;;  %v2971_v37 = vmul.f32 0.7978846, %v2955_v19  ;;  %v2680_v6 = vpop.permute.xlu1 %2679  ;;  %v2895_v19 = vmul.f32 0.5, %v5876_v63 }
 0x934   :  { %v2940_v12 = vmul.f32 %v2924_v40, %v2822_v30  ;;  %v2910_v24 = vmul.f32 0.044715, %v5878_v29  ;;  %v3889_v61 = vpop.f32.mrb[56].mxu1  ;;  %v2970_v35 = vmul.f32 0.7978846, %v2954_v43 }
 0x935   :  { %v2927_v54 = vmul.f32 %v2911_v10, %v5876_v63  ;;  %v5883_v36 = vadd.f32 %v3889_v61, %v2655_v55  ;;  %v2841_v32 = vpop.f32.mrb[57].mxu1  ;;  %4431 = vtanh.f32 %v2971_v37  ;;  %v2957_v48 = vadd.f32 %v2941_v45, %v2827_v16 }
 0x936   :  { %v2926_v17 = vmul.f32 %v2910_v24, %v5878_v29  ;;  %v5886_v15 = vadd.f32 %v2841_v32, %v2650_v3  ;;  %4433 = vtanh.f32 %v2970_v35  ;;  %v2956_v41 = vadd.f32 %v2940_v12, %v2822_v30 }
 0x937   :  { %v2943_v52 = vmul.f32 %v2927_v54, %v5876_v63  ;;  %v2913_v50 = vmul.f32 0.044715, %v5883_v36  ;;  %v2973_v46 = vmul.f32 0.7978846, %v2957_v48  ;;  %v2894_v35 = vmul.f32 0.5, %v5878_v29 }
 0x938   :  { %v2942_v57 = vmul.f32 %v2926_v17, %v5878_v29  ;;  %v2912_v27 = vmul.f32 0.044715, %v5886_v15  ;;  %v3892_v62 = vpop.f32.mrb[58].mxu1  ;;  %v2972_v25 = vmul.f32 0.7978846, %v2956_v41 }
 0x939   :  { %v2929_v18 = vmul.f32 %v2913_v50, %v5883_v36  ;;  %v5893_v21 = vadd.f32 %v3892_v62, %v2665_v42  ;;  %v2851_v5 = vpop.f32.mrb[59].mxu1  ;;  %4435 = vtanh.f32 %v2973_v46  ;;  %v2959_v44 = vadd.f32 %v2943_v52, %v5876_v63 }
 0x93a   :  { %v2928_v4 = vmul.f32 %v2912_v27, %v5886_v15  ;;  %v5897_v9 = vadd.f32 %v2851_v5, %v2660_v31  ;;  %4437 = vtanh.f32 %v2972_v25  ;;  %v2958_v26 = vadd.f32 %v2942_v57, %v5878_v29 }
 0x93b   :  { %v2945_v13 = vmul.f32 %v2929_v18, %v5883_v36  ;;  %v2915_v28 = vmul.f32 0.044715, %v5893_v21  ;;  %v2975_v39 = vmul.f32 0.7978846, %v2959_v44 }
 0x93c   :  { %v2944_v58 = vmul.f32 %v2928_v4, %v5886_v15  ;;  %v2914_v55 = vmul.f32 0.044715, %v5897_v9  ;;  %v3895_v34 = vpop.f32.mrb[60].mxu1  ;;  %v2974_v3 = vmul.f32 0.7978846, %v2958_v26 }
 0x93d   :  { %v2931_v38 = vmul.f32 %v2915_v28, %v5893_v21  ;;  %v5905_v22 = vadd.f32 %v3895_v34, %v2675_v59  ;;  %v2861_v49 = vpop.f32.mrb[61].mxu1  ;;  %4439 = vtanh.f32 %v2975_v39  ;;  %v2961_v56 = vadd.f32 %v2945_v13, %v5883_v36  ;;  %v2695_v59 = vpop.permute.xlu0 %2694 }
 0x93e   :  { %v2930_v7 = vmul.f32 %v2914_v55, %v5897_v9  ;;  %v5909_v16 = vadd.f32 %v2861_v49, %v2670_v23  ;;  %4441 = vtanh.f32 %v2974_v3  ;;  %v2960_v60 = vadd.f32 %v2944_v58, %v5886_v15 }
 0x93f   :  { %v4432_v53 = vpop.eup %4431  ;;  %v2947_v30 = vmul.f32 %v2931_v38, %v5893_v21  ;;  %v2917_v47 = vmul.f32 0.044715, %v5905_v22  ;;  %v2977_v42 = vmul.f32 0.7978846, %v2961_v56 }
 0x940   :  { %v4434_v40 = vpop.eup %4433  ;;  %v2946_v43 = vmul.f32 %v2930_v7, %v5897_v9  ;;  %v2916_v31 = vmul.f32 0.044715, %v5909_v16  ;;  %v3898_v45 = vpop.f32.mrb[62].mxu1  ;;  %v3003_v10 = vadd.f32 1.0, %v4432_v53  ;;  %v2976_v37 = vmul.f32 0.7978846, %v2960_v60 }
 0x941   :  { %v5917_v12 = vadd.f32 %v3898_v45, %v2685_v14  ;;  %v2871_v24 = vpop.f32.mrb[63].mxu1  ;;  %v3002_v61 = vadd.f32 1.0, %v4434_v40  ;;  %4443 = vtanh.f32 %v2977_v42  ;;  %v2933_v17 = vmul.f32 %v2917_v47, %v5905_v22 }
 0x942   :  { %v2932_v54 = vmul.f32 %v2916_v31, %v5909_v16  ;;  %v5921_v32 = vadd.f32 %v2871_v24, %v2680_v6  ;;  %v3019_v63 = vmul.f32 %v3003_v10, %v2891_v8  ;;  %4445 = vtanh.f32 %v2976_v37  ;;  %v2690_v8 = vpop.permute.xlu1 %2689 }
 0x943   :  { %v4436_v48 = vpop.eup %4435  ;;  %v2919_v41 = vmul.f32 0.044715, %v5917_v12  ;;  %v3018_v52 = vmul.f32 %v3002_v61, %v2890_v51  ;;  %v2962_v50 = vadd.f32 %v2946_v43, %v5897_v9  ;;  %v2963_v25 = vadd.f32 %v2947_v30, %v5893_v21 }
 0x944   :  { %v4438_v46 = vpop.eup %4437  ;;  %v2948_v57 = vmul.f32 %v2932_v54, %v5909_v16  ;;  %v2918_v29 = vmul.f32 0.044715, %v5921_v32  ;;  %v3901_v27 = vpop.f32.mrb[64].mxu1  ;;  %v3005_v62 = vadd.f32 1.0, %v4436_v48  ;;  %v2949_v58 = vmul.f32 %v2933_v17, %v5905_v22 }
 0x945   :  { %v2935_v23 = vmul.f32 %v2919_v41, %v5917_v12  ;;  %v5930_v18 = vadd.f32 %v3901_v27, %v2695_v59  ;;  %v2881_v5 = vpop.f32.mrb[65].mxu1  ;;  %v4124_v44 = vpack.c.bf16 %v3019_v63, %v3018_v52  ;;  %v3004_v51 = vadd.f32 1.0, %v4438_v46 }
 0x946   :  { %v2934_v4 = vmul.f32 %v2918_v29, %v5921_v32  ;;  %v5933_v26 = vadd.f32 %v2881_v5, %v2690_v8  ;;  %v3021_v13 = vmul.f32 %v3005_v62, %v2893_v33  ;;  %v2978_v28 = vmul.f32 0.7978846, %v2962_v50 }
 0x947   :  { %v4440_v39 = vpop.eup %4439  ;;  %v2921_v55 = vmul.f32 0.044715, %v5930_v18  ;;  %4125 = vmatprep.subr.bf16.mxu1 %v4124_v44  ;;  %v3020_v34 = vmul.f32 %v3004_v51, %v2892_v11  ;;  %v2979_v3 = vmul.f32 0.7978846, %v2963_v25  ;;  %v2951_v53 = vmul.f32 %v2935_v23, %v5917_v12 }
 0x948   :  { %v4442_v38 = vpop.eup %4441  ;;  %v2950_v49 = vmul.f32 %v2934_v4, %v5921_v32  ;;  %v2920_v56 = vmul.f32 0.044715, %v5933_v26  ;;  %4127 = vmatpush3.bf16.msra.mxu1 %v4124_v44  ;;  %v3007_v14 = vadd.f32 1.0, %v4440_v39  ;;  %4447 = vtanh.f32 %v2978_v28 }
 0x949   :  { %v2937_v7 = vmul.f32 %v2921_v55, %v5930_v18  ;;  %v4128_v33 = vpack.c.bf16 %v3021_v13, %v3020_v34  ;;  %v3006_v60 = vadd.f32 1.0, %v4442_v38  ;;  %4449 = vtanh.f32 %v2979_v3 }
 0x94a   :  { %v2936_v6 = vmul.f32 %v2920_v56, %v5933_v26  ;;  %v3023_v30 = vmul.f32 %v3007_v14, %v2895_v19  ;;  %v2964_v11 = vadd.f32 %v2948_v57, %v5909_v16  ;;  %v2896_v40 = vmul.f32 0.5, %v5886_v15 }
 0x94b   :  { %v4444_v47 = vpop.eup %4443  ;;  %4129 = vmatprep.subr.bf16.mxu1 %v4128_v33  ;;  %v3022_v42 = vmul.f32 %v3006_v60, %v2894_v35  ;;  %v2897_v43 = vmul.f32 0.5, %v5883_v36  ;;  %v2965_v31 = vadd.f32 %v2949_v58, %v5905_v22  ;;  %v2953_v10 = vmul.f32 %v2937_v7, %v5930_v18 }
 0x94c   :  { %v4446_v45 = vpop.eup %4445  ;;  %v2952_v37 = vmul.f32 %v2936_v6, %v5933_v26  ;;  %4131 = vmatpush3.bf16.msra.mxu1 %v4128_v33  ;;  %v3009_v24 = vadd.f32 1.0, %v4444_v47  ;;  %v2980_v61 = vmul.f32 0.7978846, %v2964_v11  ;;  %v2966_v48 = vadd.f32 %v2950_v49, %v5921_v32 }
 0x94d   :  { %v4132_v19 = vpack.c.bf16 %v3023_v30, %v3022_v42  ;;  %v3008_v54 = vadd.f32 1.0, %v4446_v45  ;;  %v2981_v63 = vmul.f32 0.7978846, %v2965_v31  ;;  %v2967_v15 = vadd.f32 %v2951_v53, %v5917_v12  ;;  %v3045_v31 = vpop.permute.xlu1 %3044 }
 0x94e   :  { %v3025_v35 = vmul.f32 %v3009_v24, %v2897_v43  ;;  %4451 = vtanh.f32 %v2980_v61  ;;  %v2982_v17 = vmul.f32 0.7978846, %v2966_v48  ;;  %v2968_v52 = vadd.f32 %v2952_v37, %v5933_v26  ;;  %v3050_v43 = vpop.permute.xlu0 %3049 }
 0x94f   :  { %4133 = vmatprep.subr.bf16.mxu1 %v4132_v19  ;;  %v3024_v36 = vmul.f32 %v3008_v54, %v2896_v40  ;;  %4453 = vtanh.f32 %v2981_v63  ;;  %v2983_v41 = vmul.f32 0.7978846, %v2967_v15  ;;  %v2969_v50 = vadd.f32 %v2953_v10, %v5930_v18 }
 0x950   :  { %4135 = vmatpush3.bf16.msra.mxu1 %v4132_v19  ;;  %4455 = vtanh.f32 %v2982_v17  ;;  %v2984_v57 = vmul.f32 0.7978846, %v2968_v52  ;;  %v2898_v62 = vmul.f32 0.5, %v5897_v9  ;;  %v2899_v8 = vmul.f32 0.5, %v5893_v21 }
 0x951   :  { %v4136_v46 = vpack.c.bf16 %v3025_v35, %v3024_v36  ;;  %4457 = vtanh.f32 %v2983_v41  ;;  %v2985_v29 = vmul.f32 0.7978846, %v2969_v50  ;;  %v2900_v28 = vmul.f32 0.5, %v5909_v16  ;;  %v3055_v48 = vpop.permute.xlu1 %3054 }
 0x952   :  { %v4448_v59 = vpop.eup %4447  ;;  %4459 = vtanh.f32 %v2984_v57  ;;  %v2901_v58 = vmul.f32 0.5, %v5905_v22  ;;  %v2902_v38 = vmul.f32 0.5, %v5921_v32  ;;  %v2903_v56 = vmul.f32 0.5, %v5917_v12  ;;  %v3035_v12 = vld [vmem:[%s5999_s11 + $0x8] sm:$0xff]  ;;  %v3060_v19 = vpop.permute.xlu0 %3059 }
 0x953   :  { %v4450_v27 = vpop.eup %4449  ;;  %4137 = vmatprep.subr.bf16.mxu1 %v4136_v46  ;;  %v3010_v25 = vadd.f32 1.0, %v4448_v59  ;;  %4461 = vtanh.f32 %v2985_v29  ;;  %v2904_v6 = vmul.f32 0.5, %v5933_v26  ;;  %v2905_v30 = vmul.f32 0.5, %v5930_v18  ;;  %v3036_v26 = vld [vmem:[%s5999_s11 + $0x10] sm:$0xff]  ;;  %v3037_v18 = vld [vmem:[%s5999_s11 + $0x18] sm:$0xff]  ;;  %s4555_s11 = scalar_lea.vmem %s3161_s2, 512 }
 0x954   :  { %4139 = vmatpush3.bf16.msra.mxu1 %v4136_v46  ;;  %v3011_v23 = vadd.f32 1.0, %v4450_v27  ;;  %p4556_p4 = scmp.ne.s32.totalorder %s3161_s2, %s4555_s11  ;;  %p4561_p6 = scmp.lt.s32.totalorder %s4555_s11, %s4555_s11 }
 0x955   :  { %v3026_v5 = vmul.f32 %v3010_v25, %v2898_v62 }
 0x956   :  { %v3027_v44 = vmul.f32 %v3011_v23, %v2899_v8  ;;  %p4562_p7 = por %p4561_p6, %p4560_p5 }
 0x958   :  { %v4452_v51 = vpop.eup %4451  ;;  %v4140_v4 = vpack.c.bf16 %v3027_v44, %v3026_v5  ;;  %p4563_p8 = pnand %p4562_p7, %p4556_p4 }
 0x959   :  { %v4454_v13 = vpop.eup %4453  ;;  %v3012_v39 = vadd.f32 1.0, %v4452_v51 }
 0x95a   :  { %4141 = vmatprep.subr.bf16.mxu1 %v4140_v4  ;;  %v3013_v55 = vadd.f32 1.0, %v4454_v13  ;;  %v4456_v9 = vpop.eup %4455 }
 0x95b   :  { %4143 = vmatpush3.bf16.msra.mxu1 %v4140_v4  ;;  %v3028_v34 = vmul.f32 %v3012_v39, %v2900_v28  ;;  %v4458_v3 = vpop.eup %4457  ;;  %v3014_v49 = vadd.f32 1.0, %v4456_v9 }
 0x95c   :  { %v3029_v21 = vmul.f32 %v3013_v55, %v2901_v58  ;;  %v3015_v14 = vadd.f32 1.0, %v4458_v3  ;;  %v4460_v7 = vpop.eup %4459 }
 0x95d   :  { %v3030_v60 = vmul.f32 %v3014_v49, %v2902_v38  ;;  %v4462_v16 = vpop.eup %4461  ;;  %v3016_v22 = vadd.f32 1.0, %v4460_v7 }
 0x95e   :  { %v4144_v33 = vpack.c.bf16 %v3029_v21, %v3028_v34  ;;  %v3031_v53 = vmul.f32 %v3015_v14, %v2903_v56  ;;  %v3017_v11 = vadd.f32 1.0, %v4462_v16 }
 0x95f   :  { %v3032_v42 = vmul.f32 %v3016_v22, %v2904_v6 }
 0x960   :  { %4145 = vmatprep.subr.bf16.mxu1 %v4144_v33  ;;  %v4148_v47 = vpack.c.bf16 %v3031_v53, %v3030_v60  ;;  %v3033_v32 = vmul.f32 %v3017_v11, %v2905_v30 }
 0x961   :  { %4147 = vmatpush3.bf16.msra.mxu1 %v4144_v33 }
 0x962   :  { %4149 = vmatprep.subr.bf16.mxu1 %v4148_v47  ;;  %v4152_v40 = vpack.c.bf16 %v3033_v32, %v3032_v42 }
 0x965   :  { %4151 = vmatpush3.bf16.msra.mxu1 %v4148_v47 }
 0x966   :  { %4153 = vmatprep.subr.bf16.mxu1 %v4152_v40 }
 0x969   :  { %4155 = vmatpush3.bf16.msra.mxu1 %v4152_v40 }
 0x96c   :  { %3935 = vmatmul.mubr.f32.vlgmr.msra.gmra.mrb[66].mxu1 %v3035_v12 }
 0x96d   :  { %3937 = vmatprep.mubr.f32.mxu1 %v3036_v26 }
 0x970   :  { %3938 = vmatmul.mubr.f32.gmra.mrb[68].mxu1 %v3037_v18 }
 0xa3f   :  { %v3936_v45 = vpop.f32.mrb[66].mxu1 }
 0xa40   :  { %v3134_v10 = vadd.f32 %v3936_v45, %v3050_v43  ;;  %v3128_v37 = vpop.f32.mrb[67].mxu1 }
 0xa41   :  { %v3129_v24 = vadd.f32 %v3128_v37, %v3045_v31 }
 0xa42   :  { %v3148_v61 = vadd.f32 %v3134_v10, %v5797_v2 }
 0xa43   :  { %v3147_v54 = vadd.f32 %v3129_v24, %v5799_v0  ;;  %v3939_v63 = vpop.f32.mrb[68].mxu1 }
 0xa44   :  { %3152 = vst [vmem:[#allocation10 + $0x8] sm:$0xff] %v3148_v61  ;;  %v3144_v35 = vadd.f32 %v3939_v63, %v3060_v19  ;;  %v3138_v15 = vpop.f32.mrb[69].mxu1 }
 0xa45   :  { %3151 = vst [vmem:[#allocation10] sm:$0xff] %v3147_v54  ;;  %v3139_v36 = vadd.f32 %v3138_v15, %v3055_v48 }
 0xa46   :  { %v3150_v17 = vadd.f32 %v3144_v35, %v5805_v20 }
 0xa47   :  { %v3149_v41 = vadd.f32 %v3139_v36, %v5803_v1 }
 0xa48   :  { %3154 = vst [vmem:[#allocation10 + $0x18] sm:$0xff] %v3150_v17 }
 0xa49   :  { %3153 = vst [vmem:[#allocation10 + $0x10] sm:$0xff] %v3149_v41 }
 0xa4a   :  { %4566 = shalt.err (!%p4563_p8)
}
 0xa4b   :  { %s4567_s22 = scalar_lea.hbm %s6001_s13, 512 }
 0xa4c   :  { %p4568_p9 = scmp.ne.s32.totalorder %s6001_s13, %s4567_s22  ;;  %p4571_p10 = scmp.lt.u32.totalorder %s4567_s22, %s6001_s13 }
 0xa4e   :  { %p4573_p11 = pnand %p4571_p10, %p4568_p9 }
 0xa50   :  { %4576 = shalt.err (!%p4573_p11)
}
 0xa51   :  { %3166 = dma.vmem_to_hbm [thread:$0]  %s3161_s2, 512, %s6001_s13, [#allocation4], %s4587_s20, %s4587_s20, %s4588_s21  }
 0xa52   :  { %4583 = dma.done.wait [#allocation4], 512  }
 0xa53   :  { %4584 = vsyncadd [#allocation4], 4294966784 }
 0xa54   :  { %3170 = vsyncpa [#allocation3], 1 }
 0xa55   :  { %3171 = vsyncpa [#allocation6], 1 }
 0xa56   :  { %3172 = vsyncpa [#allocation9], 1 }
 0xa57   :  { %3173 = vsyncpa [#allocation4], 1 }

</bundles_post_ra>
